<compile_context>
chip_gen: v7x
topology: tpu7x:2x2x1
jax: 0.10.0
libtpu: 0.0.40
codegen_flags: <defaults>
</compile_context>

<pallas_src>
import functools
import math

import jax
import jax.numpy as jnp
from jax.experimental import pallas as pl
from jax.experimental.pallas import tpu as pltpu

# ----------------------------- configuration --------------------------------
# Module defaults are 384/512/1024/128, depth 4, 6 heads; shrunk for a quick run.
B = 2             # batch
G = 8             # patches (groups) per cloud
N_PTS = 16        # points per patch
EMBED_DIM = 32    # embedding_dim
N_HEADS = 4       # n_heads  -> head_dim 8
DEPTH = 2         # transformer depth
POS_HIDDEN = 128  # pos_embedding hidden width (Linear(3, 128) in the module)
FFN_HIDDEN = 64   # SwiGLU hidden width
PROJ_DIM = 64     # projection_dim (= patch_out_dim, shared_head=True)
MLP_HIDDEN = 64   # iBOTHead hidden_dim
BOTTLENECK = 32   # iBOTHead bottleneck_dim
PN_C1, PN_C2, PN_C3 = 16, 32, 64   # TinyPointNet channel plan

HEAD_DIM = EMBED_DIM // N_HEADS
LN_EPS = 1e-5


def _vmem_spec():
    return pl.BlockSpec(memory_space=pltpu.MemorySpace.VMEM)


# ----------------------------- in-kernel math helpers ------------------------
def _gelu(x):
    # tanh-approximate GELU (EUP tanh); differs from torch's exact erf GELU by <1e-3.
    c = math.sqrt(2.0 / math.pi)
    return 0.5 * x * (1.0 + jnp.tanh(c * (x + 0.044715 * x * x * x)))


def _ln(x, g, b, eps=LN_EPS):
    mu = jnp.mean(x, axis=-1, keepdims=True)
    xc = x - mu
    var = jnp.mean(xc * xc, axis=-1, keepdims=True)
    return xc * jax.lax.rsqrt(var + eps) * g + b


def _bmm(x, w):
    # bf16 MXU matmul with f32 accumulation (w is already bf16).
    return jnp.dot(x.astype(jnp.bfloat16), w, preferred_element_type=jnp.float32)


# ------------------ fused TinyPointNet + positional MLP ----------------------
def _embed_kernel(pts_ref, ctr_ref,
                  w1_ref, b1_ref, s1_ref, t1_ref, w2_ref, b2_ref,
                  w3g_ref, w3p_ref, b3_ref, s3_ref, t3_ref, w4_ref, b4_ref,
                  pos_w1_ref, pos_b1_ref, pos_w2_ref, pos_b2_ref,
                  emb_ref, pos_out_ref, *, bg, npts):
    # pts_ref: (N*BG, 3) in POINT-MAJOR order (row j*BG + p holds point j of patch p),
    # so every per-patch pool is an elementwise max over npts aligned (BG, C) slices.
    pts = pts_ref[...].astype(jnp.float32)

    # Conv1d(3,c1,1) -> BN(eval, folded to scale/shift) -> ReLU -> Conv1d(c1,c2,1)
    h = _bmm(pts, w1_ref[...]) + b1_ref[...]
    h = jnp.maximum(h * s1_ref[...] + t1_ref[...], 0.0)
    f = _bmm(h, w2_ref[...]) + b2_ref[...]                       # (N*BG, C2)

    # per-patch global max pool over points
    g = f[0:bg, :]
    for j in range(1, npts):
        g = jnp.maximum(g, f[j * bg:(j + 1) * bg, :])            # (BG, C2)
    # broadcast global feature back to every point row (same point-major order)
    gb = jnp.concatenate([g] * npts, axis=0)                     # (N*BG, C2)

    # concat([global, per-point]) @ W3 done as split matmul -> BN -> ReLU -> Conv
    h2 = _bmm(gb, w3g_ref[...]) + _bmm(f, w3p_ref[...]) + b3_ref[...]
    h2 = jnp.maximum(h2 * s3_ref[...] + t3_ref[...], 0.0)
    out = _bmm(h2, w4_ref[...]) + b4_ref[...]                    # (N*BG, D)

    # final per-patch max pool -> patch embeddings
    emb = out[0:bg, :]
    for j in range(1, npts):
        emb = jnp.maximum(emb, out[j * bg:(j + 1) * bg, :])
    emb_ref[...] = emb.astype(emb_ref.dtype)                     # (BG, D)

    # positional MLP on patch centers: Linear(3,128) -> GELU -> Linear(128, D)
    c = ctr_ref[...].astype(jnp.float32)                         # (BG, 3)
    ph = _gelu(_bmm(c, pos_w1_ref[...]) + pos_b1_ref[...])
    pos_out_ref[...] = (_bmm(ph, pos_w2_ref[...]) + pos_b2_ref[...]).astype(pos_out_ref.dtype)


# --------------- fused transformer blocks + final norm + iBOTHead ------------
def _transformer_head_kernel(
        x_ref, pos_ref,
        ln1_g_ref, ln1_b_ref, qkv_w_ref, qkv_b_ref, proj_w_ref, proj_b_ref,
        ln2_g_ref, ln2_b_ref, ffn_w12_ref, ffn_b12_ref, ffn_w3_ref, ffn_b3_ref,
        norm_g_ref, norm_b_ref,
        hw1_ref, hb1_ref, hw2_ref, hb2_ref, hw3_ref, hb3_ref, last_w_ref,
        o_ref, *, depth, n_heads, head_dim, ffn_hidden):
    x = x_ref[0].astype(jnp.float32)                             # (T, D)
    pos = pos_ref[0].astype(jnp.float32)
    d = x.shape[-1]
    scale = 1.0 / math.sqrt(head_dim)

    for layer in range(depth):                                   # static unroll
        x = x + pos                                              # Point-MAE: x = block(x + pos)

        # ----- pre-norm multi-head attention -----
        h = _ln(x, ln1_g_ref[layer], ln1_b_ref[layer])
        qkv = _bmm(h, qkv_w_ref[layer]) + qkv_b_ref[layer]       # (T, 3D) f32
        pw = proj_w_ref[layer]                                   # (D, D) f32
        attn = jnp.zeros_like(x)
        for hd in range(n_heads):                                # static unroll over heads
            lo = hd * head_dim
            q = qkv[:, lo:lo + head_dim]
            k = qkv[:, d + lo:d + lo + head_dim]
            v = qkv[:, 2 * d + lo:2 * d + lo + head_dim]
            s = jnp.dot(q, k.T, preferred_element_type=jnp.float32) * scale
            s = s - jnp.max(s, axis=-1, keepdims=True)
            p = jnp.exp(s)
            p = p * pl.reciprocal(jnp.sum(p, axis=-1, keepdims=True), approx=True)
            o_h = jnp.dot(p, v, preferred_element_type=jnp.float32)          # (T, Dh)
            # fold the head-concat into the out-projection (per-head row slice of W_proj)
            attn = attn + jnp.dot(o_h, pw[lo:lo + head_dim, :],
                                  preferred_element_type=jnp.float32)
        x = x + attn + proj_b_ref[layer]

        # ----- pre-norm SwiGLU FFN -----
        h2 = _ln(x, ln2_g_ref[layer], ln2_b_ref[layer])
        hh = _bmm(h2, ffn_w12_ref[layer]) + ffn_b12_ref[layer]   # (T, 2F)
        x1 = hh[:, :ffn_hidden]
        x2 = hh[:, ffn_hidden:]
        gsw = x1 * jax.nn.sigmoid(x1) * x2
        x = x + _bmm(gsw, ffn_w3_ref[layer]) + ffn_b3_ref[layer]

    # ----- final LayerNorm + iBOTHead (pool=False path, f32 as in autocast block) -----
    f = _ln(x, norm_g_ref[...], norm_b_ref[...])
    z = _gelu(_bmm(f, hw1_ref[...]) + hb1_ref[...])
    z = _gelu(_bmm(z, hw2_ref[...]) + hb2_ref[...])
    z = _bmm(z, hw3_ref[...]) + hb3_ref[...]                     # (T, bottleneck)
    nrm = jnp.sqrt(jnp.sum(z * z, axis=-1, keepdims=True))       # F.normalize
    z = z / jnp.maximum(nrm, 1e-12)
    logits = _bmm(z, last_w_ref[...])                            # weight-normed, no bias
    o_ref[0] = logits.astype(o_ref.dtype)                        # (T, PROJ_DIM)


# ----------------------------- parameters ------------------------------------
def _trunc_normal(key, shape, std=0.02):
    return jnp.clip(std * jax.random.normal(key, shape, jnp.float32), -2 * std, 2 * std)


def init_params(key):
    kit = iter(jax.random.split(key, 64))

    def nrm(shape, std=0.02):
        return std * jax.random.normal(next(kit), shape, jnp.float32)

    bf = lambda x: x.astype(jnp.bfloat16)        # matmul weights -> bf16 (MXU path)
    zeros = lambda s: jnp.zeros(s, jnp.float32)
    ones = lambda s: jnp.ones(s, jnp.float32)

    params = {}
    w3 = nrm((2 * PN_C2, PN_C3))
    params["pointnet"] = dict(
        w1=bf(nrm((3, PN_C1))), b1=zeros((1, PN_C1)), s1=ones((1, PN_C1)), t1=zeros((1, PN_C1)),
        w2=bf(nrm((PN_C1, PN_C2))), b2=zeros((1, PN_C2)),
        w3g=bf(w3[:PN_C2]), w3p=bf(w3[PN_C2:]), b3=zeros((1, PN_C3)),
        s3=ones((1, PN_C3)), t3=zeros((1, PN_C3)),
        w4=bf(nrm((PN_C3, EMBED_DIM))), b4=zeros((1, EMBED_DIM)),
    )
    # pos_embedding: Linear(3, 128) -> GELU -> Linear(128, D)
    params["pos_w1"], params["pos_b1"] = bf(nrm((3, POS_HIDDEN))), zeros((1, POS_HIDDEN))
    params["pos_w2"], params["pos_b2"] = bf(nrm((POS_HIDDEN, EMBED_DIM))), zeros((1, EMBED_DIM))
    # tokens (trunc_normal_(std=0.02))
    params["cls_token"] = _trunc_normal(next(kit), (1, 1, EMBED_DIM))
    params["cls_pos_token"] = _trunc_normal(next(kit), (1, 1, EMBED_DIM))
    params["mask_token"] = _trunc_normal(next(kit), (1, 1, EMBED_DIM))   # unused (mask=None)
    # transformer blocks, stacked along a leading DEPTH axis (static ref[layer] in-kernel)
    params["blocks"] = dict(
        ln1_g=ones((DEPTH, 1, EMBED_DIM)), ln1_b=zeros((DEPTH, 1, EMBED_DIM)),
        qkv_w=bf(nrm((DEPTH, EMBED_DIM, 3 * EMBED_DIM))), qkv_b=zeros((DEPTH, 1, 3 * EMBED_DIM)),
        proj_w=nrm((DEPTH, EMBED_DIM, EMBED_DIM)),   # kept f32: sliced per-head on 8-row bounds
        proj_b=zeros((DEPTH, 1, EMBED_DIM)),
        ln2_g=ones((DEPTH, 1, EMBED_DIM)), ln2_b=zeros((DEPTH, 1, EMBED_DIM)),
        ffn_w12=bf(nrm((DEPTH, EMBED_DIM, 2 * FFN_HIDDEN))),
        ffn_b12=zeros((DEPTH, 1, 2 * FFN_HIDDEN)),
        ffn_w3=bf(nrm((DEPTH, FFN_HIDDEN, EMBED_DIM))), ffn_b3=zeros((DEPTH, 1, EMBED_DIM)),
    )
    params["norm_g"], params["norm_b"] = ones((1, EMBED_DIM)), zeros((1, EMBED_DIM))
    # iBOTHead (shared_head=True): 3-layer MLP -> l2 normalize -> weight-normed linear
    params["proj_w1"], params["proj_b1"] = bf(nrm((EMBED_DIM, MLP_HIDDEN))), zeros((1, MLP_HIDDEN))
    params["proj_w2"], params["proj_b2"] = bf(nrm((MLP_HIDDEN, MLP_HIDDEN))), zeros((1, MLP_HIDDEN))
    params["proj_w3"], params["proj_b3"] = bf(nrm((MLP_HIDDEN, BOTTLENECK))), zeros((1, BOTTLENECK))
    last_v = nrm((BOTTLENECK, PROJ_DIM))
    # weight_norm with weight_g frozen at 1 => unit-norm output columns
    params["last_w"] = bf(last_v / jnp.maximum(jnp.linalg.norm(last_v, axis=0, keepdims=True), 1e-12))
    return params


# ----------------------------- encoder forward -------------------------------
def encoder_forward(params, points, centers):
    b, g, n, _ = points.shape
    d = EMBED_DIM
    bg = b * g
    t = g + 1

    # Point-major flatten: row j*BG + p (p = b*G + g).  Per-patch pooling inside the
    # fused kernel then becomes an elementwise max over npts aligned (BG, C) slices.
    pts_pm = points.reshape(bg, n, 3).transpose(1, 0, 2).reshape(n * bg, 3)
    ctr = centers.reshape(bg, 3)

    pn = params["pointnet"]
    emb, pos = pl.pallas_call(
        functools.partial(_embed_kernel, bg=bg, npts=n),
        out_shape=(jax.ShapeDtypeStruct((bg, d), jnp.float32),
                   jax.ShapeDtypeStruct((bg, d), jnp.float32)),
        in_specs=[_vmem_spec()] * 19,
        out_specs=(_vmem_spec(), _vmem_spec()),
    )(pts_pm, ctr,
      pn["w1"], pn["b1"], pn["s1"], pn["t1"], pn["w2"], pn["b2"],
      pn["w3g"], pn["w3p"], pn["b3"], pn["s3"], pn["t3"], pn["w4"], pn["b4"],
      params["pos_w1"], params["pos_b1"], params["pos_w2"], params["pos_b2"])

    emb = emb.reshape(b, g, d)
    pos = pos.reshape(b, g, d)

    # TODO(synk): mask-token mixing branch (mask is not None) not exercised here.
    x = jnp.concatenate([jnp.broadcast_to(params["cls_token"], (b, 1, d)), emb], axis=1)
    pos = jnp.concatenate([jnp.broadcast_to(params["cls_pos_token"], (b, 1, d)), pos], axis=1)

    blk = params["blocks"]
    weight_args = (blk["ln1_g"], blk["ln1_b"], blk["qkv_w"], blk["qkv_b"],
                   blk["proj_w"], blk["proj_b"], blk["ln2_g"], blk["ln2_b"],
                   blk["ffn_w12"], blk["ffn_b12"], blk["ffn_w3"], blk["ffn_b3"],
                   params["norm_g"], params["norm_b"],
                   params["proj_w1"], params["proj_b1"],
                   params["proj_w2"], params["proj_b2"],
                   params["proj_w3"], params["proj_b3"], params["last_w"])

    def rep_spec(arr):
        nd = arr.ndim
        return pl.BlockSpec(arr.shape, lambda i, _nd=nd: (0,) * _nd)

    # TODO(synk): pool=True / return_hidden_states branches not exercised (default path).
    logits = pl.pallas_call(
        functools.partial(_transformer_head_kernel, depth=DEPTH, n_heads=N_HEADS,
                          head_dim=HEAD_DIM, ffn_hidden=FFN_HIDDEN),
        out_shape=jax.ShapeDtypeStruct((b, t, PROJ_DIM), jnp.float32),
        grid=(b,),
        in_specs=[pl.BlockSpec((1, t, d), lambda i: (i, 0, 0)),
                  pl.BlockSpec((1, t, d), lambda i: (i, 0, 0))]
                 + [rep_spec(w) for w in weight_args],
        out_specs=pl.BlockSpec((1, t, PROJ_DIM), lambda i: (i, 0, 0)),
        compiler_params=pltpu.CompilerParams(dimension_semantics=("parallel",)),
    )(x, pos, *weight_args)

    cls_out = logits[:, 0]        # (B, PROJ_DIM)
    patch_out = logits[:, 1:]     # (B, G, PROJ_DIM)   (shared_head=True)
    return cls_out, patch_out


if __name__ == "__main__":
    key = jax.random.PRNGKey(0)
    kp, kpts, kc = jax.random.split(key, 3)
    params = init_params(kp)
    points = 0.1 * jax.random.normal(kpts, (B, G, N_PTS, 3), jnp.float32)
    centers = jax.random.normal(kc, (B, G, 3), jnp.float32)
    cls_out, patch_out = jax.jit(encoder_forward)(params, points, centers)
    jax.block_until_ready((cls_out, patch_out))
    assert cls_out.shape == (B, PROJ_DIM)
    assert patch_out.shape == (B, G, PROJ_DIM)
    assert bool(jnp.all(jnp.isfinite(cls_out))) and bool(jnp.all(jnp.isfinite(patch_out)))
    print("KERNEL_OK")
</pallas_src>

<mosaic_0001>
module attributes {stable_mosaic.version = 11 : i64} {
  func.func @_embed_kernel(%arg0: memref<256x3xf32, #tpu.memory_space<vmem>>, %arg1: memref<16x3xf32, #tpu.memory_space<vmem>>, %arg2: memref<3x16xbf16, #tpu.memory_space<vmem>>, %arg3: memref<1x16xf32, #tpu.memory_space<vmem>>, %arg4: memref<1x16xf32, #tpu.memory_space<vmem>>, %arg5: memref<1x16xf32, #tpu.memory_space<vmem>>, %arg6: memref<16x32xbf16, #tpu.memory_space<vmem>>, %arg7: memref<1x32xf32, #tpu.memory_space<vmem>>, %arg8: memref<32x64xbf16, #tpu.memory_space<vmem>>, %arg9: memref<32x64xbf16, #tpu.memory_space<vmem>>, %arg10: memref<1x64xf32, #tpu.memory_space<vmem>>, %arg11: memref<1x64xf32, #tpu.memory_space<vmem>>, %arg12: memref<1x64xf32, #tpu.memory_space<vmem>>, %arg13: memref<64x32xbf16, #tpu.memory_space<vmem>>, %arg14: memref<1x32xf32, #tpu.memory_space<vmem>>, %arg15: memref<3x128xbf16, #tpu.memory_space<vmem>>, %arg16: memref<1x128xf32, #tpu.memory_space<vmem>>, %arg17: memref<128x32xbf16, #tpu.memory_space<vmem>>, %arg18: memref<1x32xf32, #tpu.memory_space<vmem>>, %arg19: memref<16x32xf32, #tpu.memory_space<vmem>>, %arg20: memref<16x32xf32, #tpu.memory_space<vmem>>) attributes {dimension_semantics = [], scalar_prefetch = 0 : i64, scratch_operands = 0 : i64, tpu.core_type = #tpu.core_type<tc>} {
    %c0 = arith.constant 0 : index
    %c0_0 = arith.constant 0 : index
    %0 = vector.load %arg0[%c0, %c0_0] : memref<256x3xf32, #tpu.memory_space<vmem>>, vector<256x3xf32>
    %c0_1 = arith.constant 0 : index
    %c0_2 = arith.constant 0 : index
    %1 = vector.load %arg2[%c0_1, %c0_2] : memref<3x16xbf16, #tpu.memory_space<vmem>>, vector<3x16xbf16>
    %2 = arith.truncf %0 : vector<256x3xf32> to vector<256x3xbf16>
    %cst = arith.constant dense<0.000000e+00> : vector<256x16xf32>
    %3 = tpu.matmul %2, %1, %cst {dimension_numbers = #tpu.dot_dimension_numbers<[1], [0], [0], [1], [0, 0, 1, 1], [], []>} : vector<256x3xbf16>, vector<3x16xbf16>, vector<256x16xf32> -> vector<256x16xf32>
    %c0_3 = arith.constant 0 : index
    %c0_4 = arith.constant 0 : index
    %4 = vector.load %arg3[%c0_3, %c0_4] : memref<1x16xf32, #tpu.memory_space<vmem>>, vector<1x16xf32>
    %5 = vector.broadcast %4 : vector<1x16xf32> to vector<256x16xf32>
    %6 = arith.addf %3, %5 : vector<256x16xf32>
    %c0_5 = arith.constant 0 : index
    %c0_6 = arith.constant 0 : index
    %7 = vector.load %arg4[%c0_5, %c0_6] : memref<1x16xf32, #tpu.memory_space<vmem>>, vector<1x16xf32>
    %8 = vector.broadcast %7 : vector<1x16xf32> to vector<256x16xf32>
    %9 = arith.mulf %6, %8 : vector<256x16xf32>
    %c0_7 = arith.constant 0 : index
    %c0_8 = arith.constant 0 : index
    %10 = vector.load %arg5[%c0_7, %c0_8] : memref<1x16xf32, #tpu.memory_space<vmem>>, vector<1x16xf32>
    %11 = vector.broadcast %10 : vector<1x16xf32> to vector<256x16xf32>
    %12 = arith.addf %9, %11 : vector<256x16xf32>
    %cst_9 = arith.constant 0.000000e+00 : f32
    %13 = vector.broadcast %cst_9 : f32 to vector<256x16xf32>
    %14 = arith.maximumf %12, %13 : vector<256x16xf32>
    %c0_10 = arith.constant 0 : index
    %c0_11 = arith.constant 0 : index
    %15 = vector.load %arg6[%c0_10, %c0_11] : memref<16x32xbf16, #tpu.memory_space<vmem>>, vector<16x32xbf16>
    %16 = arith.truncf %14 : vector<256x16xf32> to vector<256x16xbf16>
    %cst_12 = arith.constant dense<0.000000e+00> : vector<256x32xf32>
    %17 = tpu.matmul %16, %15, %cst_12 {dimension_numbers = #tpu.dot_dimension_numbers<[1], [0], [0], [1], [0, 0, 1, 1], [], []>} : vector<256x16xbf16>, vector<16x32xbf16>, vector<256x32xf32> -> vector<256x32xf32>
    %c0_13 = arith.constant 0 : index
    %c0_14 = arith.constant 0 : index
    %18 = vector.load %arg7[%c0_13, %c0_14] : memref<1x32xf32, #tpu.memory_space<vmem>>, vector<1x32xf32>
    %19 = vector.broadcast %18 : vector<1x32xf32> to vector<256x32xf32>
    %20 = arith.addf %17, %19 : vector<256x32xf32>
    %21 = vector.extract_strided_slice %20 {offsets = [0, 0], sizes = [16, 32], strides = [1, 1]} : vector<256x32xf32> to vector<16x32xf32>
    %22 = vector.extract_strided_slice %20 {offsets = [16, 0], sizes = [16, 32], strides = [1, 1]} : vector<256x32xf32> to vector<16x32xf32>
    %23 = arith.maximumf %21, %22 : vector<16x32xf32>
    %24 = vector.extract_strided_slice %20 {offsets = [32, 0], sizes = [16, 32], strides = [1, 1]} : vector<256x32xf32> to vector<16x32xf32>
    %25 = arith.maximumf %23, %24 : vector<16x32xf32>
    %26 = vector.extract_strided_slice %20 {offsets = [48, 0], sizes = [16, 32], strides = [1, 1]} : vector<256x32xf32> to vector<16x32xf32>
    %27 = arith.maximumf %25, %26 : vector<16x32xf32>
    %28 = vector.extract_strided_slice %20 {offsets = [64, 0], sizes = [16, 32], strides = [1, 1]} : vector<256x32xf32> to vector<16x32xf32>
    %29 = arith.maximumf %27, %28 : vector<16x32xf32>
    %30 = vector.extract_strided_slice %20 {offsets = [80, 0], sizes = [16, 32], strides = [1, 1]} : vector<256x32xf32> to vector<16x32xf32>
    %31 = arith.maximumf %29, %30 : vector<16x32xf32>
    %32 = vector.extract_strided_slice %20 {offsets = [96, 0], sizes = [16, 32], strides = [1, 1]} : vector<256x32xf32> to vector<16x32xf32>
    %33 = arith.maximumf %31, %32 : vector<16x32xf32>
    %34 = vector.extract_strided_slice %20 {offsets = [112, 0], sizes = [16, 32], strides = [1, 1]} : vector<256x32xf32> to vector<16x32xf32>
    %35 = arith.maximumf %33, %34 : vector<16x32xf32>
    %36 = vector.extract_strided_slice %20 {offsets = [128, 0], sizes = [16, 32], strides = [1, 1]} : vector<256x32xf32> to vector<16x32xf32>
    %37 = arith.maximumf %35, %36 : vector<16x32xf32>
    %38 = vector.extract_strided_slice %20 {offsets = [144, 0], sizes = [16, 32], strides = [1, 1]} : vector<256x32xf32> to vector<16x32xf32>
    %39 = arith.maximumf %37, %38 : vector<16x32xf32>
    %40 = vector.extract_strided_slice %20 {offsets = [160, 0], sizes = [16, 32], strides = [1, 1]} : vector<256x32xf32> to vector<16x32xf32>
    %41 = arith.maximumf %39, %40 : vector<16x32xf32>
    %42 = vector.extract_strided_slice %20 {offsets = [176, 0], sizes = [16, 32], strides = [1, 1]} : vector<256x32xf32> to vector<16x32xf32>
    %43 = arith.maximumf %41, %42 : vector<16x32xf32>
    %44 = vector.extract_strided_slice %20 {offsets = [192, 0], sizes = [16, 32], strides = [1, 1]} : vector<256x32xf32> to vector<16x32xf32>
    %45 = arith.maximumf %43, %44 : vector<16x32xf32>
    %46 = vector.extract_strided_slice %20 {offsets = [208, 0], sizes = [16, 32], strides = [1, 1]} : vector<256x32xf32> to vector<16x32xf32>
    %47 = arith.maximumf %45, %46 : vector<16x32xf32>
    %48 = vector.extract_strided_slice %20 {offsets = [224, 0], sizes = [16, 32], strides = [1, 1]} : vector<256x32xf32> to vector<16x32xf32>
    %49 = arith.maximumf %47, %48 : vector<16x32xf32>
    %50 = vector.extract_strided_slice %20 {offsets = [240, 0], sizes = [16, 32], strides = [1, 1]} : vector<256x32xf32> to vector<16x32xf32>
    %51 = arith.maximumf %49, %50 : vector<16x32xf32>
    %52 = tpu.concatenate %51, %51, %51, %51, %51, %51, %51, %51, %51, %51, %51, %51, %51, %51, %51, %51 in 0 : vector<16x32xf32>, vector<16x32xf32>, vector<16x32xf32>, vector<16x32xf32>, vector<16x32xf32>, vector<16x32xf32>, vector<16x32xf32>, vector<16x32xf32>, vector<16x32xf32>, vector<16x32xf32>, vector<16x32xf32>, vector<16x32xf32>, vector<16x32xf32>, vector<16x32xf32>, vector<16x32xf32>, vector<16x32xf32> -> vector<256x32xf32>
    %c0_15 = arith.constant 0 : index
    %c0_16 = arith.constant 0 : index
    %53 = vector.load %arg8[%c0_15, %c0_16] : memref<32x64xbf16, #tpu.memory_space<vmem>>, vector<32x64xbf16>
    %54 = arith.truncf %52 : vector<256x32xf32> to vector<256x32xbf16>
    %cst_17 = arith.constant dense<0.000000e+00> : vector<256x64xf32>
    %55 = tpu.matmul %54, %53, %cst_17 {dimension_numbers = #tpu.dot_dimension_numbers<[1], [0], [0], [1], [0, 0, 1, 1], [], []>} : vector<256x32xbf16>, vector<32x64xbf16>, vector<256x64xf32> -> vector<256x64xf32>
    %c0_18 = arith.constant 0 : index
    %c0_19 = arith.constant 0 : index
    %56 = vector.load %arg9[%c0_18, %c0_19] : memref<32x64xbf16, #tpu.memory_space<vmem>>, vector<32x64xbf16>
    %57 = arith.truncf %20 : vector<256x32xf32> to vector<256x32xbf16>
    %cst_20 = arith.constant dense<0.000000e+00> : vector<256x64xf32>
    %58 = tpu.matmul %57, %56, %cst_20 {dimension_numbers = #tpu.dot_dimension_numbers<[1], [0], [0], [1], [0, 0, 1, 1], [], []>} : vector<256x32xbf16>, vector<32x64xbf16>, vector<256x64xf32> -> vector<256x64xf32>
    %59 = arith.addf %55, %58 : vector<256x64xf32>
    %c0_21 = arith.constant 0 : index
    %c0_22 = arith.constant 0 : index
    %60 = vector.load %arg10[%c0_21, %c0_22] : memref<1x64xf32, #tpu.memory_space<vmem>>, vector<1x64xf32>
    %61 = vector.broadcast %60 : vector<1x64xf32> to vector<256x64xf32>
    %62 = arith.addf %59, %61 : vector<256x64xf32>
    %c0_23 = arith.constant 0 : index
    %c0_24 = arith.constant 0 : index
    %63 = vector.load %arg11[%c0_23, %c0_24] : memref<1x64xf32, #tpu.memory_space<vmem>>, vector<1x64xf32>
    %64 = vector.broadcast %63 : vector<1x64xf32> to vector<256x64xf32>
    %65 = arith.mulf %62, %64 : vector<256x64xf32>
    %c0_25 = arith.constant 0 : index
    %c0_26 = arith.constant 0 : index
    %66 = vector.load %arg12[%c0_25, %c0_26] : memref<1x64xf32, #tpu.memory_space<vmem>>, vector<1x64xf32>
    %67 = vector.broadcast %66 : vector<1x64xf32> to vector<256x64xf32>
    %68 = arith.addf %65, %67 : vector<256x64xf32>
    %cst_27 = arith.constant 0.000000e+00 : f32
    %69 = vector.broadcast %cst_27 : f32 to vector<256x64xf32>
    %70 = arith.maximumf %68, %69 : vector<256x64xf32>
    %c0_28 = arith.constant 0 : index
    %c0_29 = arith.constant 0 : index
    %71 = vector.load %arg13[%c0_28, %c0_29] : memref<64x32xbf16, #tpu.memory_space<vmem>>, vector<64x32xbf16>
    %72 = arith.truncf %70 : vector<256x64xf32> to vector<256x64xbf16>
    %cst_30 = arith.constant dense<0.000000e+00> : vector<256x32xf32>
    %73 = tpu.matmul %72, %71, %cst_30 {dimension_numbers = #tpu.dot_dimension_numbers<[1], [0], [0], [1], [0, 0, 1, 1], [], []>} : vector<256x64xbf16>, vector<64x32xbf16>, vector<256x32xf32> -> vector<256x32xf32>
    %c0_31 = arith.constant 0 : index
    %c0_32 = arith.constant 0 : index
    %74 = vector.load %arg14[%c0_31, %c0_32] : memref<1x32xf32, #tpu.memory_space<vmem>>, vector<1x32xf32>
    %75 = vector.broadcast %74 : vector<1x32xf32> to vector<256x32xf32>
    %76 = arith.addf %73, %75 : vector<256x32xf32>
    %77 = vector.extract_strided_slice %76 {offsets = [0, 0], sizes = [16, 32], strides = [1, 1]} : vector<256x32xf32> to vector<16x32xf32>
    %78 = vector.extract_strided_slice %76 {offsets = [16, 0], sizes = [16, 32], strides = [1, 1]} : vector<256x32xf32> to vector<16x32xf32>
    %79 = arith.maximumf %77, %78 : vector<16x32xf32>
    %80 = vector.extract_strided_slice %76 {offsets = [32, 0], sizes = [16, 32], strides = [1, 1]} : vector<256x32xf32> to vector<16x32xf32>
    %81 = arith.maximumf %79, %80 : vector<16x32xf32>
    %82 = vector.extract_strided_slice %76 {offsets = [48, 0], sizes = [16, 32], strides = [1, 1]} : vector<256x32xf32> to vector<16x32xf32>
    %83 = arith.maximumf %81, %82 : vector<16x32xf32>
    %84 = vector.extract_strided_slice %76 {offsets = [64, 0], sizes = [16, 32], strides = [1, 1]} : vector<256x32xf32> to vector<16x32xf32>
    %85 = arith.maximumf %83, %84 : vector<16x32xf32>
    %86 = vector.extract_strided_slice %76 {offsets = [80, 0], sizes = [16, 32], strides = [1, 1]} : vector<256x32xf32> to vector<16x32xf32>
    %87 = arith.maximumf %85, %86 : vector<16x32xf32>
    %88 = vector.extract_strided_slice %76 {offsets = [96, 0], sizes = [16, 32], strides = [1, 1]} : vector<256x32xf32> to vector<16x32xf32>
    %89 = arith.maximumf %87, %88 : vector<16x32xf32>
    %90 = vector.extract_strided_slice %76 {offsets = [112, 0], sizes = [16, 32], strides = [1, 1]} : vector<256x32xf32> to vector<16x32xf32>
    %91 = arith.maximumf %89, %90 : vector<16x32xf32>
    %92 = vector.extract_strided_slice %76 {offsets = [128, 0], sizes = [16, 32], strides = [1, 1]} : vector<256x32xf32> to vector<16x32xf32>
    %93 = arith.maximumf %91, %92 : vector<16x32xf32>
    %94 = vector.extract_strided_slice %76 {offsets = [144, 0], sizes = [16, 32], strides = [1, 1]} : vector<256x32xf32> to vector<16x32xf32>
    %95 = arith.maximumf %93, %94 : vector<16x32xf32>
    %96 = vector.extract_strided_slice %76 {offsets = [160, 0], sizes = [16, 32], strides = [1, 1]} : vector<256x32xf32> to vector<16x32xf32>
    %97 = arith.maximumf %95, %96 : vector<16x32xf32>
    %98 = vector.extract_strided_slice %76 {offsets = [176, 0], sizes = [16, 32], strides = [1, 1]} : vector<256x32xf32> to vector<16x32xf32>
    %99 = arith.maximumf %97, %98 : vector<16x32xf32>
    %100 = vector.extract_strided_slice %76 {offsets = [192, 0], sizes = [16, 32], strides = [1, 1]} : vector<256x32xf32> to vector<16x32xf32>
    %101 = arith.maximumf %99, %100 : vector<16x32xf32>
    %102 = vector.extract_strided_slice %76 {offsets = [208, 0], sizes = [16, 32], strides = [1, 1]} : vector<256x32xf32> to vector<16x32xf32>
    %103 = arith.maximumf %101, %102 : vector<16x32xf32>
    %104 = vector.extract_strided_slice %76 {offsets = [224, 0], sizes = [16, 32], strides = [1, 1]} : vector<256x32xf32> to vector<16x32xf32>
    %105 = arith.maximumf %103, %104 : vector<16x32xf32>
    %106 = vector.extract_strided_slice %76 {offsets = [240, 0], sizes = [16, 32], strides = [1, 1]} : vector<256x32xf32> to vector<16x32xf32>
    %107 = arith.maximumf %105, %106 : vector<16x32xf32>
    %c0_33 = arith.constant 0 : index
    %c0_34 = arith.constant 0 : index
    %108 = vector.load %arg19[%c0_33, %c0_34] : memref<16x32xf32, #tpu.memory_space<vmem>>, vector<16x32xf32>
    tpu.vector_store %arg19[%c0_33, %c0_34], %107 {strides = array<i32>} : memref<16x32xf32, #tpu.memory_space<vmem>>, vector<16x32xf32>,
    %c0_35 = arith.constant 0 : index
    %c0_36 = arith.constant 0 : index
    %109 = vector.load %arg1[%c0_35, %c0_36] : memref<16x3xf32, #tpu.memory_space<vmem>>, vector<16x3xf32>
    %c0_37 = arith.constant 0 : index
    %c0_38 = arith.constant 0 : index
    %110 = vector.load %arg15[%c0_37, %c0_38] : memref<3x128xbf16, #tpu.memory_space<vmem>>, vector<3x128xbf16>
    %111 = arith.truncf %109 : vector<16x3xf32> to vector<16x3xbf16>
    %cst_39 = arith.constant dense<0.000000e+00> : vector<16x128xf32>
    %112 = tpu.matmul %111, %110, %cst_39 {dimension_numbers = #tpu.dot_dimension_numbers<[1], [0], [0], [1], [0, 0, 1, 1], [], []>} : vector<16x3xbf16>, vector<3x128xbf16>, vector<16x128xf32> -> vector<16x128xf32>
    %c0_40 = arith.constant 0 : index
    %c0_41 = arith.constant 0 : index
    %113 = vector.load %arg16[%c0_40, %c0_41] : memref<1x128xf32, #tpu.memory_space<vmem>>, vector<1x128xf32>
    %114 = vector.broadcast %113 : vector<1x128xf32> to vector<16x128xf32>
    %115 = arith.addf %112, %114 : vector<16x128xf32>
    %cst_42 = arith.constant 5.000000e-01 : f32
    %116 = vector.broadcast %cst_42 : f32 to vector<16x128xf32>
    %117 = arith.mulf %116, %115 : vector<16x128xf32>
    %cst_43 = arith.constant 4.471500e-02 : f32
    %118 = vector.broadcast %cst_43 : f32 to vector<16x128xf32>
    %119 = arith.mulf %118, %115 : vector<16x128xf32>
    %120 = arith.mulf %119, %115 : vector<16x128xf32>
    %121 = arith.mulf %120, %115 : vector<16x128xf32>
    %122 = arith.addf %115, %121 : vector<16x128xf32>
    %cst_44 = arith.constant 0.797884583 : f32
    %123 = vector.broadcast %cst_44 : f32 to vector<16x128xf32>
    %124 = arith.mulf %123, %122 : vector<16x128xf32>
    %125 = math.tanh %124 : vector<16x128xf32>
    %cst_45 = arith.constant 1.000000e+00 : f32
    %126 = vector.broadcast %cst_45 : f32 to vector<16x128xf32>
    %127 = arith.addf %126, %125 : vector<16x128xf32>
    %128 = arith.mulf %117, %127 : vector<16x128xf32>
    %c0_46 = arith.constant 0 : index
    %c0_47 = arith.constant 0 : index
    %129 = vector.load %arg17[%c0_46, %c0_47] : memref<128x32xbf16, #tpu.memory_space<vmem>>, vector<128x32xbf16>
    %130 = arith.truncf %128 : vector<16x128xf32> to vector<16x128xbf16>
    %cst_48 = arith.constant dense<0.000000e+00> : vector<16x32xf32>
    %131 = tpu.matmul %130, %129, %cst_48 {dimension_numbers = #tpu.dot_dimension_numbers<[1], [0], [0], [1], [0, 0, 1, 1], [], []>} : vector<16x128xbf16>, vector<128x32xbf16>, vector<16x32xf32> -> vector<16x32xf32>
    %c0_49 = arith.constant 0 : index
    %c0_50 = arith.constant 0 : index
    %132 = vector.load %arg18[%c0_49, %c0_50] : memref<1x32xf32, #tpu.memory_space<vmem>>, vector<1x32xf32>
    %133 = vector.broadcast %132 : vector<1x32xf32> to vector<16x32xf32>
    %134 = arith.addf %131, %133 : vector<16x32xf32>
    %c0_51 = arith.constant 0 : index
    %c0_52 = arith.constant 0 : index
    %135 = vector.load %arg20[%c0_51, %c0_52] : memref<16x32xf32, #tpu.memory_space<vmem>>, vector<16x32xf32>
    tpu.vector_store %arg20[%c0_51, %c0_52], %134 {strides = array<i32>} : memref<16x32xf32, #tpu.memory_space<vmem>>, vector<16x32xf32>,
    return
  }
}

module attributes {stable_mosaic.version = 11 : i64} {
  func.func @_transformer_head_kernel(%arg0: i32, %arg1: memref<1x9x32xf32, #tpu.memory_space<vmem>>, %arg2: memref<1x9x32xf32, #tpu.memory_space<vmem>>, %arg3: memref<2x1x32xf32, #tpu.memory_space<vmem>>, %arg4: memref<2x1x32xf32, #tpu.memory_space<vmem>>, %arg5: memref<2x32x96xbf16, #tpu.memory_space<vmem>>, %arg6: memref<2x1x96xf32, #tpu.memory_space<vmem>>, %arg7: memref<2x32x32xf32, #tpu.memory_space<vmem>>, %arg8: memref<2x1x32xf32, #tpu.memory_space<vmem>>, %arg9: memref<2x1x32xf32, #tpu.memory_space<vmem>>, %arg10: memref<2x1x32xf32, #tpu.memory_space<vmem>>, %arg11: memref<2x32x128xbf16, #tpu.memory_space<vmem>>, %arg12: memref<2x1x128xf32, #tpu.memory_space<vmem>>, %arg13: memref<2x64x32xbf16, #tpu.memory_space<vmem>>, %arg14: memref<2x1x32xf32, #tpu.memory_space<vmem>>, %arg15: memref<1x32xf32, #tpu.memory_space<vmem>>, %arg16: memref<1x32xf32, #tpu.memory_space<vmem>>, %arg17: memref<32x64xbf16, #tpu.memory_space<vmem>>, %arg18: memref<1x64xf32, #tpu.memory_space<vmem>>, %arg19: memref<64x64xbf16, #tpu.memory_space<vmem>>, %arg20: memref<1x64xf32, #tpu.memory_space<vmem>>, %arg21: memref<64x32xbf16, #tpu.memory_space<vmem>>, %arg22: memref<1x32xf32, #tpu.memory_space<vmem>>, %arg23: memref<32x64xbf16, #tpu.memory_space<vmem>>, %arg24: memref<1x9x64xf32, #tpu.memory_space<vmem>>) attributes {dimension_semantics = [#tpu.dimension_semantics<parallel>], iteration_bounds = array<i64: 2>, scalar_prefetch = 0 : i64, scratch_operands = 0 : i64, tpu.core_type = #tpu.core_type<tc>, window_params = [{transform_indices = @transform_0, window_bounds = array<i64: 1, 9, 32>}, {transform_indices = @transform_1, window_bounds = array<i64: 1, 9, 32>}, {pipeline_mode = #tpu.pipeline_mode<synchronous>, transform_indices = @transform_2, window_bounds = array<i64: 2, 1, 32>}, {pipeline_mode = #tpu.pipeline_mode<synchronous>, transform_indices = @transform_3, window_bounds = array<i64: 2, 1, 32>}, {pipeline_mode = #tpu.pipeline_mode<synchronous>, transform_indices = @transform_4, window_bounds = array<i64: 2, 32, 96>}, {pipeline_mode = #tpu.pipeline_mode<synchronous>, transform_indices = @transform_5, window_bounds = array<i64: 2, 1, 96>}, {pipeline_mode = #tpu.pipeline_mode<synchronous>, transform_indices = @transform_6, window_bounds = array<i64: 2, 32, 32>}, {pipeline_mode = #tpu.pipeline_mode<synchronous>, transform_indices = @transform_7, window_bounds = array<i64: 2, 1, 32>}, {pipeline_mode = #tpu.pipeline_mode<synchronous>, transform_indices = @transform_8, window_bounds = array<i64: 2, 1, 32>}, {pipeline_mode = #tpu.pipeline_mode<synchronous>, transform_indices = @transform_9, window_bounds = array<i64: 2, 1, 32>}, {pipeline_mode = #tpu.pipeline_mode<synchronous>, transform_indices = @transform_10, window_bounds = array<i64: 2, 32, 128>}, {pipeline_mode = #tpu.pipeline_mode<synchronous>, transform_indices = @transform_11, window_bounds = array<i64: 2, 1, 128>}, {pipeline_mode = #tpu.pipeline_mode<synchronous>, transform_indices = @transform_12, window_bounds = array<i64: 2, 64, 32>}, {pipeline_mode = #tpu.pipeline_mode<synchronous>, transform_indices = @transform_13, window_bounds = array<i64: 2, 1, 32>}, {pipeline_mode = #tpu.pipeline_mode<synchronous>, transform_indices = @transform_14, window_bounds = array<i64: 1, 32>}, {pipeline_mode = #tpu.pipeline_mode<synchronous>, transform_indices = @transform_15, window_bounds = array<i64: 1, 32>}, {pipeline_mode = #tpu.pipeline_mode<synchronous>, transform_indices = @transform_16, window_bounds = array<i64: 32, 64>}, {pipeline_mode = #tpu.pipeline_mode<synchronous>, transform_indices = @transform_17, window_bounds = array<i64: 1, 64>}, {pipeline_mode = #tpu.pipeline_mode<synchronous>, transform_indices = @transform_18, window_bounds = array<i64: 64, 64>}, {pipeline_mode = #tpu.pipeline_mode<synchronous>, transform_indices = @transform_19, window_bounds = array<i64: 1, 64>}, {pipeline_mode = #tpu.pipeline_mode<synchronous>, transform_indices = @transform_20, window_bounds = array<i64: 64, 32>}, {pipeline_mode = #tpu.pipeline_mode<synchronous>, transform_indices = @transform_21, window_bounds = array<i64: 1, 32>}, {pipeline_mode = #tpu.pipeline_mode<synchronous>, transform_indices = @transform_22, window_bounds = array<i64: 32, 64>}, {transform_indices = @transform_23, window_bounds = array<i64: 1, 9, 64>}]} {
    %c0 = arith.constant 0 : index
    %c0_0 = arith.constant 0 : index
    %c0_1 = arith.constant 0 : index
    %0 = vector.load %arg1[%c0, %c0_0, %c0_1] : memref<1x9x32xf32, #tpu.memory_space<vmem>>, vector<1x9x32xf32>
    %1 = vector.shape_cast %0 : vector<1x9x32xf32> to vector<9x32xf32>
    %c0_2 = arith.constant 0 : index
    %c0_3 = arith.constant 0 : index
    %c0_4 = arith.constant 0 : index
    %2 = vector.load %arg2[%c0_2, %c0_3, %c0_4] : memref<1x9x32xf32, #tpu.memory_space<vmem>>, vector<1x9x32xf32>
    %3 = vector.shape_cast %2 : vector<1x9x32xf32> to vector<9x32xf32>
    %4 = arith.addf %1, %3 : vector<9x32xf32>
    %c0_5 = arith.constant 0 : index
    %c0_6 = arith.constant 0 : index
    %c0_7 = arith.constant 0 : index
    %5 = vector.load %arg3[%c0_5, %c0_6, %c0_7] : memref<2x1x32xf32, #tpu.memory_space<vmem>>, vector<1x1x32xf32>
    %6 = vector.shape_cast %5 : vector<1x1x32xf32> to vector<1x32xf32>
    %c0_8 = arith.constant 0 : index
    %c0_9 = arith.constant 0 : index
    %c0_10 = arith.constant 0 : index
    %7 = vector.load %arg4[%c0_8, %c0_9, %c0_10] : memref<2x1x32xf32, #tpu.memory_space<vmem>>, vector<1x1x32xf32>
    %8 = vector.shape_cast %7 : vector<1x1x32xf32> to vector<1x32xf32>
    %cst = arith.constant dense<0.000000e+00> : vector<9xf32>
    %9 = vector.multi_reduction <add>, %4, %cst [1] : vector<9x32xf32> to vector<9xf32>
    %10 = vector.shape_cast %9 : vector<9xf32> to vector<9x1xf32>
    %cst_11 = arith.constant 3.200000e+01 : f32
    %11 = vector.broadcast %cst_11 : f32 to vector<9x1xf32>
    %12 = arith.divf %10, %11 : vector<9x1xf32>
    %13 = vector.broadcast %12 : vector<9x1xf32> to vector<9x32xf32>
    %14 = arith.subf %4, %13 : vector<9x32xf32>
    %15 = arith.mulf %14, %14 : vector<9x32xf32>
    %cst_12 = arith.constant dense<0.000000e+00> : vector<9xf32>
    %16 = vector.multi_reduction <add>, %15, %cst_12 [1] : vector<9x32xf32> to vector<9xf32>
    %17 = vector.shape_cast %16 : vector<9xf32> to vector<9x1xf32>
    %cst_13 = arith.constant 3.200000e+01 : f32
    %18 = vector.broadcast %cst_13 : f32 to vector<9x1xf32>
    %19 = arith.divf %17, %18 : vector<9x1xf32>
    %cst_14 = arith.constant 9.99999974E-6 : f32
    %20 = vector.broadcast %cst_14 : f32 to vector<9x1xf32>
    %21 = arith.addf %19, %20 : vector<9x1xf32>
    %22 = math.rsqrt %21 : vector<9x1xf32>
    %23 = vector.broadcast %22 : vector<9x1xf32> to vector<9x32xf32>
    %24 = arith.mulf %14, %23 : vector<9x32xf32>
    %25 = vector.broadcast %6 : vector<1x32xf32> to vector<9x32xf32>
    %26 = arith.mulf %24, %25 : vector<9x32xf32>
    %27 = vector.broadcast %8 : vector<1x32xf32> to vector<9x32xf32>
    %28 = arith.addf %26, %27 : vector<9x32xf32>
    %c0_15 = arith.constant 0 : index
    %c0_16 = arith.constant 0 : index
    %c0_17 = arith.constant 0 : index
    %29 = vector.load %arg5[%c0_15, %c0_16, %c0_17] : memref<2x32x96xbf16, #tpu.memory_space<vmem>>, vector<1x32x96xbf16>
    %30 = vector.shape_cast %29 : vector<1x32x96xbf16> to vector<32x96xbf16>
    %31 = arith.truncf %28 : vector<9x32xf32> to vector<9x32xbf16>
    %cst_18 = arith.constant dense<0.000000e+00> : vector<9x96xf32>
    %32 = tpu.matmul %31, %30, %cst_18 {dimension_numbers = #tpu.dot_dimension_numbers<[1], [0], [0], [1], [0, 0, 1, 1], [], []>} : vector<9x32xbf16>, vector<32x96xbf16>, vector<9x96xf32> -> vector<9x96xf32>
    %c0_19 = arith.constant 0 : index
    %c0_20 = arith.constant 0 : index
    %c0_21 = arith.constant 0 : index
    %33 = vector.load %arg6[%c0_19, %c0_20, %c0_21] : memref<2x1x96xf32, #tpu.memory_space<vmem>>, vector<1x1x96xf32>
    %34 = vector.shape_cast %33 : vector<1x1x96xf32> to vector<1x96xf32>
    %35 = vector.broadcast %34 : vector<1x96xf32> to vector<9x96xf32>
    %36 = arith.addf %32, %35 : vector<9x96xf32>
    %c0_22 = arith.constant 0 : index
    %c0_23 = arith.constant 0 : index
    %c0_24 = arith.constant 0 : index
    %37 = vector.load %arg7[%c0_22, %c0_23, %c0_24] : memref<2x32x32xf32, #tpu.memory_space<vmem>>, vector<1x32x32xf32>
    %38 = vector.shape_cast %37 : vector<1x32x32xf32> to vector<32x32xf32>
    %cst_25 = arith.constant 0.000000e+00 : f32
    %39 = vector.broadcast %cst_25 : f32 to vector<9x32xf32>
    %40 = vector.extract_strided_slice %36 {offsets = [0, 0], sizes = [9, 8], strides = [1, 1]} : vector<9x96xf32> to vector<9x8xf32>
    %41 = vector.extract_strided_slice %36 {offsets = [0, 32], sizes = [9, 8], strides = [1, 1]} : vector<9x96xf32> to vector<9x8xf32>
    %42 = vector.extract_strided_slice %36 {offsets = [0, 64], sizes = [9, 8], strides = [1, 1]} : vector<9x96xf32> to vector<9x8xf32>
    %43 = tpu.transpose %41, [1, 0] : vector<9x8xf32> -> vector<8x9xf32>
    %cst_26 = arith.constant dense<0.000000e+00> : vector<9x9xf32>
    %44 = tpu.matmul %40, %43, %cst_26 {dimension_numbers = #tpu.dot_dimension_numbers<[1], [0], [0], [1], [0, 0, 1, 1], [], []>} : vector<9x8xf32>, vector<8x9xf32>, vector<9x9xf32> -> vector<9x9xf32>
    %cst_27 = arith.constant 0.353553385 : f32
    %45 = vector.broadcast %cst_27 : f32 to vector<9x9xf32>
    %46 = arith.mulf %44, %45 : vector<9x9xf32>
    %cst_28 = arith.constant dense<0xFF800000> : vector<9xf32>
    %47 = vector.multi_reduction <maximumf>, %46, %cst_28 [1] : vector<9x9xf32> to vector<9xf32>
    %48 = vector.shape_cast %47 : vector<9xf32> to vector<9x1xf32>
    %49 = vector.broadcast %48 : vector<9x1xf32> to vector<9x9xf32>
    %50 = arith.subf %46, %49 : vector<9x9xf32>
    %51 = math.exp %50 : vector<9x9xf32>
    %cst_29 = arith.constant dense<0.000000e+00> : vector<9xf32>
    %52 = vector.multi_reduction <add>, %51, %cst_29 [1] : vector<9x9xf32> to vector<9xf32>
    %53 = vector.shape_cast %52 : vector<9xf32> to vector<9x1xf32>
    %54 = tpu.reciprocal %53 {approx = true} : vector<9x1xf32> -> vector<9x1xf32>
    %55 = vector.broadcast %54 : vector<9x1xf32> to vector<9x9xf32>
    %56 = arith.mulf %51, %55 : vector<9x9xf32>
    %cst_30 = arith.constant dense<0.000000e+00> : vector<9x8xf32>
    %57 = tpu.matmul %56, %42, %cst_30 {dimension_numbers = #tpu.dot_dimension_numbers<[1], [0], [0], [1], [0, 0, 1, 1], [], []>} : vector<9x9xf32>, vector<9x8xf32>, vector<9x8xf32> -> vector<9x8xf32>
    %58 = vector.extract_strided_slice %38 {offsets = [0, 0], sizes = [8, 32], strides = [1, 1]} : vector<32x32xf32> to vector<8x32xf32>
    %cst_31 = arith.constant dense<0.000000e+00> : vector<9x32xf32>
    %59 = tpu.matmul %57, %58, %cst_31 {dimension_numbers = #tpu.dot_dimension_numbers<[1], [0], [0], [1], [0, 0, 1, 1], [], []>} : vector<9x8xf32>, vector<8x32xf32>, vector<9x32xf32> -> vector<9x32xf32>
    %60 = arith.addf %39, %59 : vector<9x32xf32>
    %61 = vector.extract_strided_slice %36 {offsets = [0, 8], sizes = [9, 8], strides = [1, 1]} : vector<9x96xf32> to vector<9x8xf32>
    %62 = vector.extract_strided_slice %36 {offsets = [0, 40], sizes = [9, 8], strides = [1, 1]} : vector<9x96xf32> to vector<9x8xf32>
    %63 = vector.extract_strided_slice %36 {offsets = [0, 72], sizes = [9, 8], strides = [1, 1]} : vector<9x96xf32> to vector<9x8xf32>
    %64 = tpu.transpose %62, [1, 0] : vector<9x8xf32> -> vector<8x9xf32>
    %cst_32 = arith.constant dense<0.000000e+00> : vector<9x9xf32>
    %65 = tpu.matmul %61, %64, %cst_32 {dimension_numbers = #tpu.dot_dimension_numbers<[1], [0], [0], [1], [0, 0, 1, 1], [], []>} : vector<9x8xf32>, vector<8x9xf32>, vector<9x9xf32> -> vector<9x9xf32>
    %cst_33 = arith.constant 0.353553385 : f32
    %66 = vector.broadcast %cst_33 : f32 to vector<9x9xf32>
    %67 = arith.mulf %65, %66 : vector<9x9xf32>
    %cst_34 = arith.constant dense<0xFF800000> : vector<9xf32>
    %68 = vector.multi_reduction <maximumf>, %67, %cst_34 [1] : vector<9x9xf32> to vector<9xf32>
    %69 = vector.shape_cast %68 : vector<9xf32> to vector<9x1xf32>
    %70 = vector.broadcast %69 : vector<9x1xf32> to vector<9x9xf32>
    %71 = arith.subf %67, %70 : vector<9x9xf32>
    %72 = math.exp %71 : vector<9x9xf32>
    %cst_35 = arith.constant dense<0.000000e+00> : vector<9xf32>
    %73 = vector.multi_reduction <add>, %72, %cst_35 [1] : vector<9x9xf32> to vector<9xf32>
    %74 = vector.shape_cast %73 : vector<9xf32> to vector<9x1xf32>
    %75 = tpu.reciprocal %74 {approx = true} : vector<9x1xf32> -> vector<9x1xf32>
    %76 = vector.broadcast %75 : vector<9x1xf32> to vector<9x9xf32>
    %77 = arith.mulf %72, %76 : vector<9x9xf32>
    %cst_36 = arith.constant dense<0.000000e+00> : vector<9x8xf32>
    %78 = tpu.matmul %77, %63, %cst_36 {dimension_numbers = #tpu.dot_dimension_numbers<[1], [0], [0], [1], [0, 0, 1, 1], [], []>} : vector<9x9xf32>, vector<9x8xf32>, vector<9x8xf32> -> vector<9x8xf32>
    %79 = vector.extract_strided_slice %38 {offsets = [8, 0], sizes = [8, 32], strides = [1, 1]} : vector<32x32xf32> to vector<8x32xf32>
    %cst_37 = arith.constant dense<0.000000e+00> : vector<9x32xf32>
    %80 = tpu.matmul %78, %79, %cst_37 {dimension_numbers = #tpu.dot_dimension_numbers<[1], [0], [0], [1], [0, 0, 1, 1], [], []>} : vector<9x8xf32>, vector<8x32xf32>, vector<9x32xf32> -> vector<9x32xf32>
    %81 = arith.addf %60, %80 : vector<9x32xf32>
    %82 = vector.extract_strided_slice %36 {offsets = [0, 16], sizes = [9, 8], strides = [1, 1]} : vector<9x96xf32> to vector<9x8xf32>
    %83 = vector.extract_strided_slice %36 {offsets = [0, 48], sizes = [9, 8], strides = [1, 1]} : vector<9x96xf32> to vector<9x8xf32>
    %84 = vector.extract_strided_slice %36 {offsets = [0, 80], sizes = [9, 8], strides = [1, 1]} : vector<9x96xf32> to vector<9x8xf32>
    %85 = tpu.transpose %83, [1, 0] : vector<9x8xf32> -> vector<8x9xf32>
    %cst_38 = arith.constant dense<0.000000e+00> : vector<9x9xf32>
    %86 = tpu.matmul %82, %85, %cst_38 {dimension_numbers = #tpu.dot_dimension_numbers<[1], [0], [0], [1], [0, 0, 1, 1], [], []>} : vector<9x8xf32>, vector<8x9xf32>, vector<9x9xf32> -> vector<9x9xf32>
    %cst_39 = arith.constant 0.353553385 : f32
    %87 = vector.broadcast %cst_39 : f32 to vector<9x9xf32>
    %88 = arith.mulf %86, %87 : vector<9x9xf32>
    %cst_40 = arith.constant dense<0xFF800000> : vector<9xf32>
    %89 = vector.multi_reduction <maximumf>, %88, %cst_40 [1] : vector<9x9xf32> to vector<9xf32>
    %90 = vector.shape_cast %89 : vector<9xf32> to vector<9x1xf32>
    %91 = vector.broadcast %90 : vector<9x1xf32> to vector<9x9xf32>
    %92 = arith.subf %88, %91 : vector<9x9xf32>
    %93 = math.exp %92 : vector<9x9xf32>
    %cst_41 = arith.constant dense<0.000000e+00> : vector<9xf32>
    %94 = vector.multi_reduction <add>, %93, %cst_41 [1] : vector<9x9xf32> to vector<9xf32>
    %95 = vector.shape_cast %94 : vector<9xf32> to vector<9x1xf32>
    %96 = tpu.reciprocal %95 {approx = true} : vector<9x1xf32> -> vector<9x1xf32>
    %97 = vector.broadcast %96 : vector<9x1xf32> to vector<9x9xf32>
    %98 = arith.mulf %93, %97 : vector<9x9xf32>
    %cst_42 = arith.constant dense<0.000000e+00> : vector<9x8xf32>
    %99 = tpu.matmul %98, %84, %cst_42 {dimension_numbers = #tpu.dot_dimension_numbers<[1], [0], [0], [1], [0, 0, 1, 1], [], []>} : vector<9x9xf32>, vector<9x8xf32>, vector<9x8xf32> -> vector<9x8xf32>
    %100 = vector.extract_strided_slice %38 {offsets = [16, 0], sizes = [8, 32], strides = [1, 1]} : vector<32x32xf32> to vector<8x32xf32>
    %cst_43 = arith.constant dense<0.000000e+00> : vector<9x32xf32>
    %101 = tpu.matmul %99, %100, %cst_43 {dimension_numbers = #tpu.dot_dimension_numbers<[1], [0], [0], [1], [0, 0, 1, 1], [], []>} : vector<9x8xf32>, vector<8x32xf32>, vector<9x32xf32> -> vector<9x32xf32>
    %102 = arith.addf %81, %101 : vector<9x32xf32>
    %103 = vector.extract_strided_slice %36 {offsets = [0, 24], sizes = [9, 8], strides = [1, 1]} : vector<9x96xf32> to vector<9x8xf32>
    %104 = vector.extract_strided_slice %36 {offsets = [0, 56], sizes = [9, 8], strides = [1, 1]} : vector<9x96xf32> to vector<9x8xf32>
    %105 = vector.extract_strided_slice %36 {offsets = [0, 88], sizes = [9, 8], strides = [1, 1]} : vector<9x96xf32> to vector<9x8xf32>
    %106 = tpu.transpose %104, [1, 0] : vector<9x8xf32> -> vector<8x9xf32>
    %cst_44 = arith.constant dense<0.000000e+00> : vector<9x9xf32>
    %107 = tpu.matmul %103, %106, %cst_44 {dimension_numbers = #tpu.dot_dimension_numbers<[1], [0], [0], [1], [0, 0, 1, 1], [], []>} : vector<9x8xf32>, vector<8x9xf32>, vector<9x9xf32> -> vector<9x9xf32>
    %cst_45 = arith.constant 0.353553385 : f32
    %108 = vector.broadcast %cst_45 : f32 to vector<9x9xf32>
    %109 = arith.mulf %107, %108 : vector<9x9xf32>
    %cst_46 = arith.constant dense<0xFF800000> : vector<9xf32>
    %110 = vector.multi_reduction <maximumf>, %109, %cst_46 [1] : vector<9x9xf32> to vector<9xf32>
    %111 = vector.shape_cast %110 : vector<9xf32> to vector<9x1xf32>
    %112 = vector.broadcast %111 : vector<9x1xf32> to vector<9x9xf32>
    %113 = arith.subf %109, %112 : vector<9x9xf32>
    %114 = math.exp %113 : vector<9x9xf32>
    %cst_47 = arith.constant dense<0.000000e+00> : vector<9xf32>
    %115 = vector.multi_reduction <add>, %114, %cst_47 [1] : vector<9x9xf32> to vector<9xf32>
    %116 = vector.shape_cast %115 : vector<9xf32> to vector<9x1xf32>
    %117 = tpu.reciprocal %116 {approx = true} : vector<9x1xf32> -> vector<9x1xf32>
    %118 = vector.broadcast %117 : vector<9x1xf32> to vector<9x9xf32>
    %119 = arith.mulf %114, %118 : vector<9x9xf32>
    %cst_48 = arith.constant dense<0.000000e+00> : vector<9x8xf32>
    %120 = tpu.matmul %119, %105, %cst_48 {dimension_numbers = #tpu.dot_dimension_numbers<[1], [0], [0], [1], [0, 0, 1, 1], [], []>} : vector<9x9xf32>, vector<9x8xf32>, vector<9x8xf32> -> vector<9x8xf32>
    %121 = vector.extract_strided_slice %38 {offsets = [24, 0], sizes = [8, 32], strides = [1, 1]} : vector<32x32xf32> to vector<8x32xf32>
    %cst_49 = arith.constant dense<0.000000e+00> : vector<9x32xf32>
    %122 = tpu.matmul %120, %121, %cst_49 {dimension_numbers = #tpu.dot_dimension_numbers<[1], [0], [0], [1], [0, 0, 1, 1], [], []>} : vector<9x8xf32>, vector<8x32xf32>, vector<9x32xf32> -> vector<9x32xf32>
    %123 = arith.addf %102, %122 : vector<9x32xf32>
    %124 = arith.addf %4, %123 : vector<9x32xf32>
    %c0_50 = arith.constant 0 : index
    %c0_51 = arith.constant 0 : index
    %c0_52 = arith.constant 0 : index
    %125 = vector.load %arg8[%c0_50, %c0_51, %c0_52] : memref<2x1x32xf32, #tpu.memory_space<vmem>>, vector<1x1x32xf32>
    %126 = vector.shape_cast %125 : vector<1x1x32xf32> to vector<1x32xf32>
    %127 = vector.broadcast %126 : vector<1x32xf32> to vector<9x32xf32>
    %128 = arith.addf %124, %127 : vector<9x32xf32>
    %c0_53 = arith.constant 0 : index
    %c0_54 = arith.constant 0 : index
    %c0_55 = arith.constant 0 : index
    %129 = vector.load %arg9[%c0_53, %c0_54, %c0_55] : memref<2x1x32xf32, #tpu.memory_space<vmem>>, vector<1x1x32xf32>
    %130 = vector.shape_cast %129 : vector<1x1x32xf32> to vector<1x32xf32>
    %c0_56 = arith.constant 0 : index
    %c0_57 = arith.constant 0 : index
    %c0_58 = arith.constant 0 : index
    %131 = vector.load %arg10[%c0_56, %c0_57, %c0_58] : memref<2x1x32xf32, #tpu.memory_space<vmem>>, vector<1x1x32xf32>
    %132 = vector.shape_cast %131 : vector<1x1x32xf32> to vector<1x32xf32>
    %cst_59 = arith.constant dense<0.000000e+00> : vector<9xf32>
    %133 = vector.multi_reduction <add>, %128, %cst_59 [1] : vector<9x32xf32> to vector<9xf32>
    %134 = vector.shape_cast %133 : vector<9xf32> to vector<9x1xf32>
    %cst_60 = arith.constant 3.200000e+01 : f32
    %135 = vector.broadcast %cst_60 : f32 to vector<9x1xf32>
    %136 = arith.divf %134, %135 : vector<9x1xf32>
    %137 = vector.broadcast %136 : vector<9x1xf32> to vector<9x32xf32>
    %138 = arith.subf %128, %137 : vector<9x32xf32>
    %139 = arith.mulf %138, %138 : vector<9x32xf32>
    %cst_61 = arith.constant dense<0.000000e+00> : vector<9xf32>
    %140 = vector.multi_reduction <add>, %139, %cst_61 [1] : vector<9x32xf32> to vector<9xf32>
    %141 = vector.shape_cast %140 : vector<9xf32> to vector<9x1xf32>
    %cst_62 = arith.constant 3.200000e+01 : f32
    %142 = vector.broadcast %cst_62 : f32 to vector<9x1xf32>
    %143 = arith.divf %141, %142 : vector<9x1xf32>
    %cst_63 = arith.constant 9.99999974E-6 : f32
    %144 = vector.broadcast %cst_63 : f32 to vector<9x1xf32>
    %145 = arith.addf %143, %144 : vector<9x1xf32>
    %146 = math.rsqrt %145 : vector<9x1xf32>
    %147 = vector.broadcast %146 : vector<9x1xf32> to vector<9x32xf32>
    %148 = arith.mulf %138, %147 : vector<9x32xf32>
    %149 = vector.broadcast %130 : vector<1x32xf32> to vector<9x32xf32>
    %150 = arith.mulf %148, %149 : vector<9x32xf32>
    %151 = vector.broadcast %132 : vector<1x32xf32> to vector<9x32xf32>
    %152 = arith.addf %150, %151 : vector<9x32xf32>
    %c0_64 = arith.constant 0 : index
    %c0_65 = arith.constant 0 : index
    %c0_66 = arith.constant 0 : index
    %153 = vector.load %arg11[%c0_64, %c0_65, %c0_66] : memref<2x32x128xbf16, #tpu.memory_space<vmem>>, vector<1x32x128xbf16>
    %154 = vector.shape_cast %153 : vector<1x32x128xbf16> to vector<32x128xbf16>
    %155 = arith.truncf %152 : vector<9x32xf32> to vector<9x32xbf16>
    %cst_67 = arith.constant dense<0.000000e+00> : vector<9x128xf32>
    %156 = tpu.matmul %155, %154, %cst_67 {dimension_numbers = #tpu.dot_dimension_numbers<[1], [0], [0], [1], [0, 0, 1, 1], [], []>} : vector<9x32xbf16>, vector<32x128xbf16>, vector<9x128xf32> -> vector<9x128xf32>
    %c0_68 = arith.constant 0 : index
    %c0_69 = arith.constant 0 : index
    %c0_70 = arith.constant 0 : index
    %157 = vector.load %arg12[%c0_68, %c0_69, %c0_70] : memref<2x1x128xf32, #tpu.memory_space<vmem>>, vector<1x1x128xf32>
    %158 = vector.shape_cast %157 : vector<1x1x128xf32> to vector<1x128xf32>
    %159 = vector.broadcast %158 : vector<1x128xf32> to vector<9x128xf32>
    %160 = arith.addf %156, %159 : vector<9x128xf32>
    %161 = vector.extract_strided_slice %160 {offsets = [0, 0], sizes = [9, 64], strides = [1, 1]} : vector<9x128xf32> to vector<9x64xf32>
    %162 = vector.extract_strided_slice %160 {offsets = [0, 64], sizes = [9, 64], strides = [1, 1]} : vector<9x128xf32> to vector<9x64xf32>
    %163 = arith.negf %161 : vector<9x64xf32>
    %164 = math.exp %163 : vector<9x64xf32>
    %cst_71 = arith.constant 1.000000e+00 : f32
    %165 = vector.broadcast %cst_71 : f32 to vector<9x64xf32>
    %166 = arith.addf %165, %164 : vector<9x64xf32>
    %167 = arith.divf %165, %166 : vector<9x64xf32>
    %168 = arith.mulf %161, %167 : vector<9x64xf32>
    %169 = arith.mulf %168, %162 : vector<9x64xf32>
    %c0_72 = arith.constant 0 : index
    %c0_73 = arith.constant 0 : index
    %c0_74 = arith.constant 0 : index
    %170 = vector.load %arg13[%c0_72, %c0_73, %c0_74] : memref<2x64x32xbf16, #tpu.memory_space<vmem>>, vector<1x64x32xbf16>
    %171 = vector.shape_cast %170 : vector<1x64x32xbf16> to vector<64x32xbf16>
    %172 = arith.truncf %169 : vector<9x64xf32> to vector<9x64xbf16>
    %cst_75 = arith.constant dense<0.000000e+00> : vector<9x32xf32>
    %173 = tpu.matmul %172, %171, %cst_75 {dimension_numbers = #tpu.dot_dimension_numbers<[1], [0], [0], [1], [0, 0, 1, 1], [], []>} : vector<9x64xbf16>, vector<64x32xbf16>, vector<9x32xf32> -> vector<9x32xf32>
    %174 = arith.addf %128, %173 : vector<9x32xf32>
    %c0_76 = arith.constant 0 : index
    %c0_77 = arith.constant 0 : index
    %c0_78 = arith.constant 0 : index
    %175 = vector.load %arg14[%c0_76, %c0_77, %c0_78] : memref<2x1x32xf32, #tpu.memory_space<vmem>>, vector<1x1x32xf32>
    %176 = vector.shape_cast %175 : vector<1x1x32xf32> to vector<1x32xf32>
    %177 = vector.broadcast %176 : vector<1x32xf32> to vector<9x32xf32>
    %178 = arith.addf %174, %177 : vector<9x32xf32>
    %179 = arith.addf %178, %3 : vector<9x32xf32>
    %c1 = arith.constant 1 : index
    %c0_79 = arith.constant 0 : index
    %c0_80 = arith.constant 0 : index
    %180 = vector.load %arg3[%c1, %c0_79, %c0_80] : memref<2x1x32xf32, #tpu.memory_space<vmem>>, vector<1x1x32xf32>
    %181 = vector.shape_cast %180 : vector<1x1x32xf32> to vector<1x32xf32>
    %c1_81 = arith.constant 1 : index
    %c0_82 = arith.constant 0 : index
    %c0_83 = arith.constant 0 : index
    %182 = vector.load %arg4[%c1_81, %c0_82, %c0_83] : memref<2x1x32xf32, #tpu.memory_space<vmem>>, vector<1x1x32xf32>
    %183 = vector.shape_cast %182 : vector<1x1x32xf32> to vector<1x32xf32>
    %cst_84 = arith.constant dense<0.000000e+00> : vector<9xf32>
    %184 = vector.multi_reduction <add>, %179, %cst_84 [1] : vector<9x32xf32> to vector<9xf32>
    %185 = vector.shape_cast %184 : vector<9xf32> to vector<9x1xf32>
    %cst_85 = arith.constant 3.200000e+01 : f32
    %186 = vector.broadcast %cst_85 : f32 to vector<9x1xf32>
    %187 = arith.divf %185, %186 : vector<9x1xf32>
    %188 = vector.broadcast %187 : vector<9x1xf32> to vector<9x32xf32>
    %189 = arith.subf %179, %188 : vector<9x32xf32>
    %190 = arith.mulf %189, %189 : vector<9x32xf32>
    %cst_86 = arith.constant dense<0.000000e+00> : vector<9xf32>
    %191 = vector.multi_reduction <add>, %190, %cst_86 [1] : vector<9x32xf32> to vector<9xf32>
    %192 = vector.shape_cast %191 : vector<9xf32> to vector<9x1xf32>
    %cst_87 = arith.constant 3.200000e+01 : f32
    %193 = vector.broadcast %cst_87 : f32 to vector<9x1xf32>
    %194 = arith.divf %192, %193 : vector<9x1xf32>
    %cst_88 = arith.constant 9.99999974E-6 : f32
    %195 = vector.broadcast %cst_88 : f32 to vector<9x1xf32>
    %196 = arith.addf %194, %195 : vector<9x1xf32>
    %197 = math.rsqrt %196 : vector<9x1xf32>
    %198 = vector.broadcast %197 : vector<9x1xf32> to vector<9x32xf32>
    %199 = arith.mulf %189, %198 : vector<9x32xf32>
    %200 = vector.broadcast %181 : vector<1x32xf32> to vector<9x32xf32>
    %201 = arith.mulf %199, %200 : vector<9x32xf32>
    %202 = vector.broadcast %183 : vector<1x32xf32> to vector<9x32xf32>
    %203 = arith.addf %201, %202 : vector<9x32xf32>
    %c1_89 = arith.constant 1 : index
    %c0_90 = arith.constant 0 : index
    %c0_91 = arith.constant 0 : index
    %204 = vector.load %arg5[%c1_89, %c0_90, %c0_91] : memref<2x32x96xbf16, #tpu.memory_space<vmem>>, vector<1x32x96xbf16>
    %205 = vector.shape_cast %204 : vector<1x32x96xbf16> to vector<32x96xbf16>
    %206 = arith.truncf %203 : vector<9x32xf32> to vector<9x32xbf16>
    %cst_92 = arith.constant dense<0.000000e+00> : vector<9x96xf32>
    %207 = tpu.matmul %206, %205, %cst_92 {dimension_numbers = #tpu.dot_dimension_numbers<[1], [0], [0], [1], [0, 0, 1, 1], [], []>} : vector<9x32xbf16>, vector<32x96xbf16>, vector<9x96xf32> -> vector<9x96xf32>
    %c1_93 = arith.constant 1 : index
    %c0_94 = arith.constant 0 : index
    %c0_95 = arith.constant 0 : index
    %208 = vector.load %arg6[%c1_93, %c0_94, %c0_95] : memref<2x1x96xf32, #tpu.memory_space<vmem>>, vector<1x1x96xf32>
    %209 = vector.shape_cast %208 : vector<1x1x96xf32> to vector<1x96xf32>
    %210 = vector.broadcast %209 : vector<1x96xf32> to vector<9x96xf32>
    %211 = arith.addf %207, %210 : vector<9x96xf32>
    %c1_96 = arith.constant 1 : index
    %c0_97 = arith.constant 0 : index
    %c0_98 = arith.constant 0 : index
    %212 = vector.load %arg7[%c1_96, %c0_97, %c0_98] : memref<2x32x32xf32, #tpu.memory_space<vmem>>, vector<1x32x32xf32>
    %213 = vector.shape_cast %212 : vector<1x32x32xf32> to vector<32x32xf32>
    %cst_99 = arith.constant 0.000000e+00 : f32
    %214 = vector.broadcast %cst_99 : f32 to vector<9x32xf32>
    %215 = vector.extract_strided_slice %211 {offsets = [0, 0], sizes = [9, 8], strides = [1, 1]} : vector<9x96xf32> to vector<9x8xf32>
    %216 = vector.extract_strided_slice %211 {offsets = [0, 32], sizes = [9, 8], strides = [1, 1]} : vector<9x96xf32> to vector<9x8xf32>
    %217 = vector.extract_strided_slice %211 {offsets = [0, 64], sizes = [9, 8], strides = [1, 1]} : vector<9x96xf32> to vector<9x8xf32>
    %218 = tpu.transpose %216, [1, 0] : vector<9x8xf32> -> vector<8x9xf32>
    %cst_100 = arith.constant dense<0.000000e+00> : vector<9x9xf32>
    %219 = tpu.matmul %215, %218, %cst_100 {dimension_numbers = #tpu.dot_dimension_numbers<[1], [0], [0], [1], [0, 0, 1, 1], [], []>} : vector<9x8xf32>, vector<8x9xf32>, vector<9x9xf32> -> vector<9x9xf32>
    %cst_101 = arith.constant 0.353553385 : f32
    %220 = vector.broadcast %cst_101 : f32 to vector<9x9xf32>
    %221 = arith.mulf %219, %220 : vector<9x9xf32>
    %cst_102 = arith.constant dense<0xFF800000> : vector<9xf32>
    %222 = vector.multi_reduction <maximumf>, %221, %cst_102 [1] : vector<9x9xf32> to vector<9xf32>
    %223 = vector.shape_cast %222 : vector<9xf32> to vector<9x1xf32>
    %224 = vector.broadcast %223 : vector<9x1xf32> to vector<9x9xf32>
    %225 = arith.subf %221, %224 : vector<9x9xf32>
    %226 = math.exp %225 : vector<9x9xf32>
    %cst_103 = arith.constant dense<0.000000e+00> : vector<9xf32>
    %227 = vector.multi_reduction <add>, %226, %cst_103 [1] : vector<9x9xf32> to vector<9xf32>
    %228 = vector.shape_cast %227 : vector<9xf32> to vector<9x1xf32>
    %229 = tpu.reciprocal %228 {approx = true} : vector<9x1xf32> -> vector<9x1xf32>
    %230 = vector.broadcast %229 : vector<9x1xf32> to vector<9x9xf32>
    %231 = arith.mulf %226, %230 : vector<9x9xf32>
    %cst_104 = arith.constant dense<0.000000e+00> : vector<9x8xf32>
    %232 = tpu.matmul %231, %217, %cst_104 {dimension_numbers = #tpu.dot_dimension_numbers<[1], [0], [0], [1], [0, 0, 1, 1], [], []>} : vector<9x9xf32>, vector<9x8xf32>, vector<9x8xf32> -> vector<9x8xf32>
    %233 = vector.extract_strided_slice %213 {offsets = [0, 0], sizes = [8, 32], strides = [1, 1]} : vector<32x32xf32> to vector<8x32xf32>
    %cst_105 = arith.constant dense<0.000000e+00> : vector<9x32xf32>
    %234 = tpu.matmul %232, %233, %cst_105 {dimension_numbers = #tpu.dot_dimension_numbers<[1], [0], [0], [1], [0, 0, 1, 1], [], []>} : vector<9x8xf32>, vector<8x32xf32>, vector<9x32xf32> -> vector<9x32xf32>
    %235 = arith.addf %214, %234 : vector<9x32xf32>
    %236 = vector.extract_strided_slice %211 {offsets = [0, 8], sizes = [9, 8], strides = [1, 1]} : vector<9x96xf32> to vector<9x8xf32>
    %237 = vector.extract_strided_slice %211 {offsets = [0, 40], sizes = [9, 8], strides = [1, 1]} : vector<9x96xf32> to vector<9x8xf32>
    %238 = vector.extract_strided_slice %211 {offsets = [0, 72], sizes = [9, 8], strides = [1, 1]} : vector<9x96xf32> to vector<9x8xf32>
    %239 = tpu.transpose %237, [1, 0] : vector<9x8xf32> -> vector<8x9xf32>
    %cst_106 = arith.constant dense<0.000000e+00> : vector<9x9xf32>
    %240 = tpu.matmul %236, %239, %cst_106 {dimension_numbers = #tpu.dot_dimension_numbers<[1], [0], [0], [1], [0, 0, 1, 1], [], []>} : vector<9x8xf32>, vector<8x9xf32>, vector<9x9xf32> -> vector<9x9xf32>
    %cst_107 = arith.constant 0.353553385 : f32
    %241 = vector.broadcast %cst_107 : f32 to vector<9x9xf32>
    %242 = arith.mulf %240, %241 : vector<9x9xf32>
    %cst_108 = arith.constant dense<0xFF800000> : vector<9xf32>
    %243 = vector.multi_reduction <maximumf>, %242, %cst_108 [1] : vector<9x9xf32> to vector<9xf32>
    %244 = vector.shape_cast %243 : vector<9xf32> to vector<9x1xf32>
    %245 = vector.broadcast %244 : vector<9x1xf32> to vector<9x9xf32>
    %246 = arith.subf %242, %245 : vector<9x9xf32>
    %247 = math.exp %246 : vector<9x9xf32>
    %cst_109 = arith.constant dense<0.000000e+00> : vector<9xf32>
    %248 = vector.multi_reduction <add>, %247, %cst_109 [1] : vector<9x9xf32> to vector<9xf32>
    %249 = vector.shape_cast %248 : vector<9xf32> to vector<9x1xf32>
    %250 = tpu.reciprocal %249 {approx = true} : vector<9x1xf32> -> vector<9x1xf32>
    %251 = vector.broadcast %250 : vector<9x1xf32> to vector<9x9xf32>
    %252 = arith.mulf %247, %251 : vector<9x9xf32>
    %cst_110 = arith.constant dense<0.000000e+00> : vector<9x8xf32>
    %253 = tpu.matmul %252, %238, %cst_110 {dimension_numbers = #tpu.dot_dimension_numbers<[1], [0], [0], [1], [0, 0, 1, 1], [], []>} : vector<9x9xf32>, vector<9x8xf32>, vector<9x8xf32> -> vector<9x8xf32>
    %254 = vector.extract_strided_slice %213 {offsets = [8, 0], sizes = [8, 32], strides = [1, 1]} : vector<32x32xf32> to vector<8x32xf32>
    %cst_111 = arith.constant dense<0.000000e+00> : vector<9x32xf32>
    %255 = tpu.matmul %253, %254, %cst_111 {dimension_numbers = #tpu.dot_dimension_numbers<[1], [0], [0], [1], [0, 0, 1, 1], [], []>} : vector<9x8xf32>, vector<8x32xf32>, vector<9x32xf32> -> vector<9x32xf32>
    %256 = arith.addf %235, %255 : vector<9x32xf32>
    %257 = vector.extract_strided_slice %211 {offsets = [0, 16], sizes = [9, 8], strides = [1, 1]} : vector<9x96xf32> to vector<9x8xf32>
    %258 = vector.extract_strided_slice %211 {offsets = [0, 48], sizes = [9, 8], strides = [1, 1]} : vector<9x96xf32> to vector<9x8xf32>
    %259 = vector.extract_strided_slice %211 {offsets = [0, 80], sizes = [9, 8], strides = [1, 1]} : vector<9x96xf32> to vector<9x8xf32>
    %260 = tpu.transpose %258, [1, 0] : vector<9x8xf32> -> vector<8x9xf32>
    %cst_112 = arith.constant dense<0.000000e+00> : vector<9x9xf32>
    %261 = tpu.matmul %257, %260, %cst_112 {dimension_numbers = #tpu.dot_dimension_numbers<[1], [0], [0], [1], [0, 0, 1, 1], [], []>} : vector<9x8xf32>, vector<8x9xf32>, vector<9x9xf32> -> vector<9x9xf32>
    %cst_113 = arith.constant 0.353553385 : f32
    %262 = vector.broadcast %cst_113 : f32 to vector<9x9xf32>
    %263 = arith.mulf %261, %262 : vector<9x9xf32>
    %cst_114 = arith.constant dense<0xFF800000> : vector<9xf32>
    %264 = vector.multi_reduction <maximumf>, %263, %cst_114 [1] : vector<9x9xf32> to vector<9xf32>
    %265 = vector.shape_cast %264 : vector<9xf32> to vector<9x1xf32>
    %266 = vector.broadcast %265 : vector<9x1xf32> to vector<9x9xf32>
    %267 = arith.subf %263, %266 : vector<9x9xf32>
    %268 = math.exp %267 : vector<9x9xf32>
    %cst_115 = arith.constant dense<0.000000e+00> : vector<9xf32>
    %269 = vector.multi_reduction <add>, %268, %cst_115 [1] : vector<9x9xf32> to vector<9xf32>
    %270 = vector.shape_cast %269 : vector<9xf32> to vector<9x1xf32>
    %271 = tpu.reciprocal %270 {approx = true} : vector<9x1xf32> -> vector<9x1xf32>
    %272 = vector.broadcast %271 : vector<9x1xf32> to vector<9x9xf32>
    %273 = arith.mulf %268, %272 : vector<9x9xf32>
    %cst_116 = arith.constant dense<0.000000e+00> : vector<9x8xf32>
    %274 = tpu.matmul %273, %259, %cst_116 {dimension_numbers = #tpu.dot_dimension_numbers<[1], [0], [0], [1], [0, 0, 1, 1], [], []>} : vector<9x9xf32>, vector<9x8xf32>, vector<9x8xf32> -> vector<9x8xf32>
    %275 = vector.extract_strided_slice %213 {offsets = [16, 0], sizes = [8, 32], strides = [1, 1]} : vector<32x32xf32> to vector<8x32xf32>
    %cst_117 = arith.constant dense<0.000000e+00> : vector<9x32xf32>
    %276 = tpu.matmul %274, %275, %cst_117 {dimension_numbers = #tpu.dot_dimension_numbers<[1], [0], [0], [1], [0, 0, 1, 1], [], []>} : vector<9x8xf32>, vector<8x32xf32>, vector<9x32xf32> -> vector<9x32xf32>
    %277 = arith.addf %256, %276 : vector<9x32xf32>
    %278 = vector.extract_strided_slice %211 {offsets = [0, 24], sizes = [9, 8], strides = [1, 1]} : vector<9x96xf32> to vector<9x8xf32>
    %279 = vector.extract_strided_slice %211 {offsets = [0, 56], sizes = [9, 8], strides = [1, 1]} : vector<9x96xf32> to vector<9x8xf32>
    %280 = vector.extract_strided_slice %211 {offsets = [0, 88], sizes = [9, 8], strides = [1, 1]} : vector<9x96xf32> to vector<9x8xf32>
    %281 = tpu.transpose %279, [1, 0] : vector<9x8xf32> -> vector<8x9xf32>
    %cst_118 = arith.constant dense<0.000000e+00> : vector<9x9xf32>
    %282 = tpu.matmul %278, %281, %cst_118 {dimension_numbers = #tpu.dot_dimension_numbers<[1], [0], [0], [1], [0, 0, 1, 1], [], []>} : vector<9x8xf32>, vector<8x9xf32>, vector<9x9xf32> -> vector<9x9xf32>
    %cst_119 = arith.constant 0.353553385 : f32
    %283 = vector.broadcast %cst_119 : f32 to vector<9x9xf32>
    %284 = arith.mulf %282, %283 : vector<9x9xf32>
    %cst_120 = arith.constant dense<0xFF800000> : vector<9xf32>
    %285 = vector.multi_reduction <maximumf>, %284, %cst_120 [1] : vector<9x9xf32> to vector<9xf32>
    %286 = vector.shape_cast %285 : vector<9xf32> to vector<9x1xf32>
    %287 = vector.broadcast %286 : vector<9x1xf32> to vector<9x9xf32>
    %288 = arith.subf %284, %287 : vector<9x9xf32>
    %289 = math.exp %288 : vector<9x9xf32>
    %cst_121 = arith.constant dense<0.000000e+00> : vector<9xf32>
    %290 = vector.multi_reduction <add>, %289, %cst_121 [1] : vector<9x9xf32> to vector<9xf32>
    %291 = vector.shape_cast %290 : vector<9xf32> to vector<9x1xf32>
    %292 = tpu.reciprocal %291 {approx = true} : vector<9x1xf32> -> vector<9x1xf32>
    %293 = vector.broadcast %292 : vector<9x1xf32> to vector<9x9xf32>
    %294 = arith.mulf %289, %293 : vector<9x9xf32>
    %cst_122 = arith.constant dense<0.000000e+00> : vector<9x8xf32>
    %295 = tpu.matmul %294, %280, %cst_122 {dimension_numbers = #tpu.dot_dimension_numbers<[1], [0], [0], [1], [0, 0, 1, 1], [], []>} : vector<9x9xf32>, vector<9x8xf32>, vector<9x8xf32> -> vector<9x8xf32>
    %296 = vector.extract_strided_slice %213 {offsets = [24, 0], sizes = [8, 32], strides = [1, 1]} : vector<32x32xf32> to vector<8x32xf32>
    %cst_123 = arith.constant dense<0.000000e+00> : vector<9x32xf32>
    %297 = tpu.matmul %295, %296, %cst_123 {dimension_numbers = #tpu.dot_dimension_numbers<[1], [0], [0], [1], [0, 0, 1, 1], [], []>} : vector<9x8xf32>, vector<8x32xf32>, vector<9x32xf32> -> vector<9x32xf32>
    %298 = arith.addf %277, %297 : vector<9x32xf32>
    %299 = arith.addf %179, %298 : vector<9x32xf32>
    %c1_124 = arith.constant 1 : index
    %c0_125 = arith.constant 0 : index
    %c0_126 = arith.constant 0 : index
    %300 = vector.load %arg8[%c1_124, %c0_125, %c0_126] : memref<2x1x32xf32, #tpu.memory_space<vmem>>, vector<1x1x32xf32>
    %301 = vector.shape_cast %300 : vector<1x1x32xf32> to vector<1x32xf32>
    %302 = vector.broadcast %301 : vector<1x32xf32> to vector<9x32xf32>
    %303 = arith.addf %299, %302 : vector<9x32xf32>
    %c1_127 = arith.constant 1 : index
    %c0_128 = arith.constant 0 : index
    %c0_129 = arith.constant 0 : index
    %304 = vector.load %arg9[%c1_127, %c0_128, %c0_129] : memref<2x1x32xf32, #tpu.memory_space<vmem>>, vector<1x1x32xf32>
    %305 = vector.shape_cast %304 : vector<1x1x32xf32> to vector<1x32xf32>
    %c1_130 = arith.constant 1 : index
    %c0_131 = arith.constant 0 : index
    %c0_132 = arith.constant 0 : index
    %306 = vector.load %arg10[%c1_130, %c0_131, %c0_132] : memref<2x1x32xf32, #tpu.memory_space<vmem>>, vector<1x1x32xf32>
    %307 = vector.shape_cast %306 : vector<1x1x32xf32> to vector<1x32xf32>
    %cst_133 = arith.constant dense<0.000000e+00> : vector<9xf32>
    %308 = vector.multi_reduction <add>, %303, %cst_133 [1] : vector<9x32xf32> to vector<9xf32>
    %309 = vector.shape_cast %308 : vector<9xf32> to vector<9x1xf32>
    %cst_134 = arith.constant 3.200000e+01 : f32
    %310 = vector.broadcast %cst_134 : f32 to vector<9x1xf32>
    %311 = arith.divf %309, %310 : vector<9x1xf32>
    %312 = vector.broadcast %311 : vector<9x1xf32> to vector<9x32xf32>
    %313 = arith.subf %303, %312 : vector<9x32xf32>
    %314 = arith.mulf %313, %313 : vector<9x32xf32>
    %cst_135 = arith.constant dense<0.000000e+00> : vector<9xf32>
    %315 = vector.multi_reduction <add>, %314, %cst_135 [1] : vector<9x32xf32> to vector<9xf32>
    %316 = vector.shape_cast %315 : vector<9xf32> to vector<9x1xf32>
    %cst_136 = arith.constant 3.200000e+01 : f32
    %317 = vector.broadcast %cst_136 : f32 to vector<9x1xf32>
    %318 = arith.divf %316, %317 : vector<9x1xf32>
    %cst_137 = arith.constant 9.99999974E-6 : f32
    %319 = vector.broadcast %cst_137 : f32 to vector<9x1xf32>
    %320 = arith.addf %318, %319 : vector<9x1xf32>
    %321 = math.rsqrt %320 : vector<9x1xf32>
    %322 = vector.broadcast %321 : vector<9x1xf32> to vector<9x32xf32>
    %323 = arith.mulf %313, %322 : vector<9x32xf32>
    %324 = vector.broadcast %305 : vector<1x32xf32> to vector<9x32xf32>
    %325 = arith.mulf %323, %324 : vector<9x32xf32>
    %326 = vector.broadcast %307 : vector<1x32xf32> to vector<9x32xf32>
    %327 = arith.addf %325, %326 : vector<9x32xf32>
    %c1_138 = arith.constant 1 : index
    %c0_139 = arith.constant 0 : index
    %c0_140 = arith.constant 0 : index
    %328 = vector.load %arg11[%c1_138, %c0_139, %c0_140] : memref<2x32x128xbf16, #tpu.memory_space<vmem>>, vector<1x32x128xbf16>
    %329 = vector.shape_cast %328 : vector<1x32x128xbf16> to vector<32x128xbf16>
    %330 = arith.truncf %327 : vector<9x32xf32> to vector<9x32xbf16>
    %cst_141 = arith.constant dense<0.000000e+00> : vector<9x128xf32>
    %331 = tpu.matmul %330, %329, %cst_141 {dimension_numbers = #tpu.dot_dimension_numbers<[1], [0], [0], [1], [0, 0, 1, 1], [], []>} : vector<9x32xbf16>, vector<32x128xbf16>, vector<9x128xf32> -> vector<9x128xf32>
    %c1_142 = arith.constant 1 : index
    %c0_143 = arith.constant 0 : index
    %c0_144 = arith.constant 0 : index
    %332 = vector.load %arg12[%c1_142, %c0_143, %c0_144] : memref<2x1x128xf32, #tpu.memory_space<vmem>>, vector<1x1x128xf32>
    %333 = vector.shape_cast %332 : vector<1x1x128xf32> to vector<1x128xf32>
    %334 = vector.broadcast %333 : vector<1x128xf32> to vector<9x128xf32>
    %335 = arith.addf %331, %334 : vector<9x128xf32>
    %336 = vector.extract_strided_slice %335 {offsets = [0, 0], sizes = [9, 64], strides = [1, 1]} : vector<9x128xf32> to vector<9x64xf32>
    %337 = vector.extract_strided_slice %335 {offsets = [0, 64], sizes = [9, 64], strides = [1, 1]} : vector<9x128xf32> to vector<9x64xf32>
    %338 = arith.negf %336 : vector<9x64xf32>
    %339 = math.exp %338 : vector<9x64xf32>
    %cst_145 = arith.constant 1.000000e+00 : f32
    %340 = vector.broadcast %cst_145 : f32 to vector<9x64xf32>
    %341 = arith.addf %340, %339 : vector<9x64xf32>
    %342 = arith.divf %340, %341 : vector<9x64xf32>
    %343 = arith.mulf %336, %342 : vector<9x64xf32>
    %344 = arith.mulf %343, %337 : vector<9x64xf32>
    %c1_146 = arith.constant 1 : index
    %c0_147 = arith.constant 0 : index
    %c0_148 = arith.constant 0 : index
    %345 = vector.load %arg13[%c1_146, %c0_147, %c0_148] : memref<2x64x32xbf16, #tpu.memory_space<vmem>>, vector<1x64x32xbf16>
    %346 = vector.shape_cast %345 : vector<1x64x32xbf16> to vector<64x32xbf16>
    %347 = arith.truncf %344 : vector<9x64xf32> to vector<9x64xbf16>
    %cst_149 = arith.constant dense<0.000000e+00> : vector<9x32xf32>
    %348 = tpu.matmul %347, %346, %cst_149 {dimension_numbers = #tpu.dot_dimension_numbers<[1], [0], [0], [1], [0, 0, 1, 1], [], []>} : vector<9x64xbf16>, vector<64x32xbf16>, vector<9x32xf32> -> vector<9x32xf32>
    %349 = arith.addf %303, %348 : vector<9x32xf32>
    %c1_150 = arith.constant 1 : index
    %c0_151 = arith.constant 0 : index
    %c0_152 = arith.constant 0 : index
    %350 = vector.load %arg14[%c1_150, %c0_151, %c0_152] : memref<2x1x32xf32, #tpu.memory_space<vmem>>, vector<1x1x32xf32>
    %351 = vector.shape_cast %350 : vector<1x1x32xf32> to vector<1x32xf32>
    %352 = vector.broadcast %351 : vector<1x32xf32> to vector<9x32xf32>
    %353 = arith.addf %349, %352 : vector<9x32xf32>
    %c0_153 = arith.constant 0 : index
    %c0_154 = arith.constant 0 : index
    %354 = vector.load %arg15[%c0_153, %c0_154] : memref<1x32xf32, #tpu.memory_space<vmem>>, vector<1x32xf32>
    %c0_155 = arith.constant 0 : index
    %c0_156 = arith.constant 0 : index
    %355 = vector.load %arg16[%c0_155, %c0_156] : memref<1x32xf32, #tpu.memory_space<vmem>>, vector<1x32xf32>
    %cst_157 = arith.constant dense<0.000000e+00> : vector<9xf32>
    %356 = vector.multi_reduction <add>, %353, %cst_157 [1] : vector<9x32xf32> to vector<9xf32>
    %357 = vector.shape_cast %356 : vector<9xf32> to vector<9x1xf32>
    %cst_158 = arith.constant 3.200000e+01 : f32
    %358 = vector.broadcast %cst_158 : f32 to vector<9x1xf32>
    %359 = arith.divf %357, %358 : vector<9x1xf32>
    %360 = vector.broadcast %359 : vector<9x1xf32> to vector<9x32xf32>
    %361 = arith.subf %353, %360 : vector<9x32xf32>
    %362 = arith.mulf %361, %361 : vector<9x32xf32>
    %cst_159 = arith.constant dense<0.000000e+00> : vector<9xf32>
    %363 = vector.multi_reduction <add>, %362, %cst_159 [1] : vector<9x32xf32> to vector<9xf32>
    %364 = vector.shape_cast %363 : vector<9xf32> to vector<9x1xf32>
    %cst_160 = arith.constant 3.200000e+01 : f32
    %365 = vector.broadcast %cst_160 : f32 to vector<9x1xf32>
    %366 = arith.divf %364, %365 : vector<9x1xf32>
    %cst_161 = arith.constant 9.99999974E-6 : f32
    %367 = vector.broadcast %cst_161 : f32 to vector<9x1xf32>
    %368 = arith.addf %366, %367 : vector<9x1xf32>
    %369 = math.rsqrt %368 : vector<9x1xf32>
    %370 = vector.broadcast %369 : vector<9x1xf32> to vector<9x32xf32>
    %371 = arith.mulf %361, %370 : vector<9x32xf32>
    %372 = vector.broadcast %354 : vector<1x32xf32> to vector<9x32xf32>
    %373 = arith.mulf %371, %372 : vector<9x32xf32>
    %374 = vector.broadcast %355 : vector<1x32xf32> to vector<9x32xf32>
    %375 = arith.addf %373, %374 : vector<9x32xf32>
    %c0_162 = arith.constant 0 : index
    %c0_163 = arith.constant 0 : index
    %376 = vector.load %arg17[%c0_162, %c0_163] : memref<32x64xbf16, #tpu.memory_space<vmem>>, vector<32x64xbf16>
    %377 = arith.truncf %375 : vector<9x32xf32> to vector<9x32xbf16>
    %cst_164 = arith.constant dense<0.000000e+00> : vector<9x64xf32>
    %378 = tpu.matmul %377, %376, %cst_164 {dimension_numbers = #tpu.dot_dimension_numbers<[1], [0], [0], [1], [0, 0, 1, 1], [], []>} : vector<9x32xbf16>, vector<32x64xbf16>, vector<9x64xf32> -> vector<9x64xf32>
    %c0_165 = arith.constant 0 : index
    %c0_166 = arith.constant 0 : index
    %379 = vector.load %arg18[%c0_165, %c0_166] : memref<1x64xf32, #tpu.memory_space<vmem>>, vector<1x64xf32>
    %380 = vector.broadcast %379 : vector<1x64xf32> to vector<9x64xf32>
    %381 = arith.addf %378, %380 : vector<9x64xf32>
    %cst_167 = arith.constant 5.000000e-01 : f32
    %382 = vector.broadcast %cst_167 : f32 to vector<9x64xf32>
    %383 = arith.mulf %382, %381 : vector<9x64xf32>
    %cst_168 = arith.constant 4.471500e-02 : f32
    %384 = vector.broadcast %cst_168 : f32 to vector<9x64xf32>
    %385 = arith.mulf %384, %381 : vector<9x64xf32>
    %386 = arith.mulf %385, %381 : vector<9x64xf32>
    %387 = arith.mulf %386, %381 : vector<9x64xf32>
    %388 = arith.addf %381, %387 : vector<9x64xf32>
    %cst_169 = arith.constant 0.797884583 : f32
    %389 = vector.broadcast %cst_169 : f32 to vector<9x64xf32>
    %390 = arith.mulf %389, %388 : vector<9x64xf32>
    %391 = math.tanh %390 : vector<9x64xf32>
    %cst_170 = arith.constant 1.000000e+00 : f32
    %392 = vector.broadcast %cst_170 : f32 to vector<9x64xf32>
    %393 = arith.addf %392, %391 : vector<9x64xf32>
    %394 = arith.mulf %383, %393 : vector<9x64xf32>
    %c0_171 = arith.constant 0 : index
    %c0_172 = arith.constant 0 : index
    %395 = vector.load %arg19[%c0_171, %c0_172] : memref<64x64xbf16, #tpu.memory_space<vmem>>, vector<64x64xbf16>
    %396 = arith.truncf %394 : vector<9x64xf32> to vector<9x64xbf16>
    %cst_173 = arith.constant dense<0.000000e+00> : vector<9x64xf32>
    %397 = tpu.matmul %396, %395, %cst_173 {dimension_numbers = #tpu.dot_dimension_numbers<[1], [0], [0], [1], [0, 0, 1, 1], [], []>} : vector<9x64xbf16>, vector<64x64xbf16>, vector<9x64xf32> -> vector<9x64xf32>
    %c0_174 = arith.constant 0 : index
    %c0_175 = arith.constant 0 : index
    %398 = vector.load %arg20[%c0_174, %c0_175] : memref<1x64xf32, #tpu.memory_space<vmem>>, vector<1x64xf32>
    %399 = vector.broadcast %398 : vector<1x64xf32> to vector<9x64xf32>
    %400 = arith.addf %397, %399 : vector<9x64xf32>
    %cst_176 = arith.constant 5.000000e-01 : f32
    %401 = vector.broadcast %cst_176 : f32 to vector<9x64xf32>
    %402 = arith.mulf %401, %400 : vector<9x64xf32>
    %cst_177 = arith.constant 4.471500e-02 : f32
    %403 = vector.broadcast %cst_177 : f32 to vector<9x64xf32>
    %404 = arith.mulf %403, %400 : vector<9x64xf32>
    %405 = arith.mulf %404, %400 : vector<9x64xf32>
    %406 = arith.mulf %405, %400 : vector<9x64xf32>
    %407 = arith.addf %400, %406 : vector<9x64xf32>
    %cst_178 = arith.constant 0.797884583 : f32
    %408 = vector.broadcast %cst_178 : f32 to vector<9x64xf32>
    %409 = arith.mulf %408, %407 : vector<9x64xf32>
    %410 = math.tanh %409 : vector<9x64xf32>
    %cst_179 = arith.constant 1.000000e+00 : f32
    %411 = vector.broadcast %cst_179 : f32 to vector<9x64xf32>
    %412 = arith.addf %411, %410 : vector<9x64xf32>
    %413 = arith.mulf %402, %412 : vector<9x64xf32>
    %c0_180 = arith.constant 0 : index
    %c0_181 = arith.constant 0 : index
    %414 = vector.load %arg21[%c0_180, %c0_181] : memref<64x32xbf16, #tpu.memory_space<vmem>>, vector<64x32xbf16>
    %415 = arith.truncf %413 : vector<9x64xf32> to vector<9x64xbf16>
    %cst_182 = arith.constant dense<0.000000e+00> : vector<9x32xf32>
    %416 = tpu.matmul %415, %414, %cst_182 {dimension_numbers = #tpu.dot_dimension_numbers<[1], [0], [0], [1], [0, 0, 1, 1], [], []>} : vector<9x64xbf16>, vector<64x32xbf16>, vector<9x32xf32> -> vector<9x32xf32>
    %c0_183 = arith.constant 0 : index
    %c0_184 = arith.constant 0 : index
    %417 = vector.load %arg22[%c0_183, %c0_184] : memref<1x32xf32, #tpu.memory_space<vmem>>, vector<1x32xf32>
    %418 = vector.broadcast %417 : vector<1x32xf32> to vector<9x32xf32>
    %419 = arith.addf %416, %418 : vector<9x32xf32>
    %420 = arith.mulf %419, %419 : vector<9x32xf32>
    %cst_185 = arith.constant dense<0.000000e+00> : vector<9xf32>
    %421 = vector.multi_reduction <add>, %420, %cst_185 [1] : vector<9x32xf32> to vector<9xf32>
    %422 = vector.shape_cast %421 : vector<9xf32> to vector<9x1xf32>
    %423 = math.sqrt %422 : vector<9x1xf32>
    %cst_186 = arith.constant 9.99999996E-13 : f32
    %424 = vector.broadcast %cst_186 : f32 to vector<9x1xf32>
    %425 = arith.maximumf %423, %424 : vector<9x1xf32>
    %426 = vector.broadcast %425 : vector<9x1xf32> to vector<9x32xf32>
    %427 = arith.divf %419, %426 : vector<9x32xf32>
    %c0_187 = arith.constant 0 : index
    %c0_188 = arith.constant 0 : index
    %428 = vector.load %arg23[%c0_187, %c0_188] : memref<32x64xbf16, #tpu.memory_space<vmem>>, vector<32x64xbf16>
    %429 = arith.truncf %427 : vector<9x32xf32> to vector<9x32xbf16>
    %cst_189 = arith.constant dense<0.000000e+00> : vector<9x64xf32>
    %430 = tpu.matmul %429, %428, %cst_189 {dimension_numbers = #tpu.dot_dimension_numbers<[1], [0], [0], [1], [0, 0, 1, 1], [], []>} : vector<9x32xbf16>, vector<32x64xbf16>, vector<9x64xf32> -> vector<9x64xf32>
    %c0_190 = arith.constant 0 : index
    %c0_191 = arith.constant 0 : index
    %c0_192 = arith.constant 0 : index
    %431 = vector.load %arg24[%c0_190, %c0_191, %c0_192] : memref<1x9x64xf32, #tpu.memory_space<vmem>>, vector<1x9x64xf32>
    %432 = vector.shape_cast %431 : vector<1x9x64xf32> to vector<9x64xf32>
    %433 = vector.shape_cast %430 : vector<9x64xf32> to vector<1x9x64xf32>
    tpu.vector_store %arg24[%c0_190, %c0_191, %c0_192], %433 {strides = array<i32>} : memref<1x9x64xf32, #tpu.memory_space<vmem>>, vector<1x9x64xf32>,
    return
  }
  func.func @transform_0(%arg0: i32) -> (i32, i32, i32) {
    %c0_i32 = arith.constant 0 : i32
    %c0_i32_0 = arith.constant 0 : i32
    %c0_i32_1 = arith.constant 0 : i32
    return %arg0, %c0_i32, %c0_i32_0 : i32, i32, i32
  }
  func.func @transform_1(%arg0: i32) -> (i32, i32, i32) {
    %c0_i32 = arith.constant 0 : i32
    %c0_i32_0 = arith.constant 0 : i32
    %c0_i32_1 = arith.constant 0 : i32
    return %arg0, %c0_i32, %c0_i32_0 : i32, i32, i32
  }
  func.func @transform_2(%arg0: i32) -> (i32, i32, i32) {
    %c0_i32 = arith.constant 0 : i32
    %c0_i32_0 = arith.constant 0 : i32
    %c0_i32_1 = arith.constant 0 : i32
    %c0_i32_2 = arith.constant 0 : i32
    return %c0_i32, %c0_i32_0, %c0_i32_1 : i32, i32, i32
  }
  func.func @transform_3(%arg0: i32) -> (i32, i32, i32) {
    %c0_i32 = arith.constant 0 : i32
    %c0_i32_0 = arith.constant 0 : i32
    %c0_i32_1 = arith.constant 0 : i32
    %c0_i32_2 = arith.constant 0 : i32
    return %c0_i32, %c0_i32_0, %c0_i32_1 : i32, i32, i32
  }
  func.func @transform_4(%arg0: i32) -> (i32, i32, i32) {
    %c0_i32 = arith.constant 0 : i32
    %c0_i32_0 = arith.constant 0 : i32
    %c0_i32_1 = arith.constant 0 : i32
    %c0_i32_2 = arith.constant 0 : i32
    return %c0_i32, %c0_i32_0, %c0_i32_1 : i32, i32, i32
  }
  func.func @transform_5(%arg0: i32) -> (i32, i32, i32) {
    %c0_i32 = arith.constant 0 : i32
    %c0_i32_0 = arith.constant 0 : i32
    %c0_i32_1 = arith.constant 0 : i32
    %c0_i32_2 = arith.constant 0 : i32
    return %c0_i32, %c0_i32_0, %c0_i32_1 : i32, i32, i32
  }
  func.func @transform_6(%arg0: i32) -> (i32, i32, i32) {
    %c0_i32 = arith.constant 0 : i32
    %c0_i32_0 = arith.constant 0 : i32
    %c0_i32_1 = arith.constant 0 : i32
    %c0_i32_2 = arith.constant 0 : i32
    return %c0_i32, %c0_i32_0, %c0_i32_1 : i32, i32, i32
  }
  func.func @transform_7(%arg0: i32) -> (i32, i32, i32) {
    %c0_i32 = arith.constant 0 : i32
    %c0_i32_0 = arith.constant 0 : i32
    %c0_i32_1 = arith.constant 0 : i32
    %c0_i32_2 = arith.constant 0 : i32
    return %c0_i32, %c0_i32_0, %c0_i32_1 : i32, i32, i32
  }
  func.func @transform_8(%arg0: i32) -> (i32, i32, i32) {
    %c0_i32 = arith.constant 0 : i32
    %c0_i32_0 = arith.constant 0 : i32
    %c0_i32_1 = arith.constant 0 : i32
    %c0_i32_2 = arith.constant 0 : i32
    return %c0_i32, %c0_i32_0, %c0_i32_1 : i32, i32, i32
  }
  func.func @transform_9(%arg0: i32) -> (i32, i32, i32) {
    %c0_i32 = arith.constant 0 : i32
    %c0_i32_0 = arith.constant 0 : i32
    %c0_i32_1 = arith.constant 0 : i32
    %c0_i32_2 = arith.constant 0 : i32
    return %c0_i32, %c0_i32_0, %c0_i32_1 : i32, i32, i32
  }
  func.func @transform_10(%arg0: i32) -> (i32, i32, i32) {
    %c0_i32 = arith.constant 0 : i32
    %c0_i32_0 = arith.constant 0 : i32
    %c0_i32_1 = arith.constant 0 : i32
    %c0_i32_2 = arith.constant 0 : i32
    return %c0_i32, %c0_i32_0, %c0_i32_1 : i32, i32, i32
  }
  func.func @transform_11(%arg0: i32) -> (i32, i32, i32) {
    %c0_i32 = arith.constant 0 : i32
    %c0_i32_0 = arith.constant 0 : i32
    %c0_i32_1 = arith.constant 0 : i32
    %c0_i32_2 = arith.constant 0 : i32
    return %c0_i32, %c0_i32_0, %c0_i32_1 : i32, i32, i32
  }
  func.func @transform_12(%arg0: i32) -> (i32, i32, i32) {
    %c0_i32 = arith.constant 0 : i32
    %c0_i32_0 = arith.constant 0 : i32
    %c0_i32_1 = arith.constant 0 : i32
    %c0_i32_2 = arith.constant 0 : i32
    return %c0_i32, %c0_i32_0, %c0_i32_1 : i32, i32, i32
  }
  func.func @transform_13(%arg0: i32) -> (i32, i32, i32) {
    %c0_i32 = arith.constant 0 : i32
    %c0_i32_0 = arith.constant 0 : i32
    %c0_i32_1 = arith.constant 0 : i32
    %c0_i32_2 = arith.constant 0 : i32
    return %c0_i32, %c0_i32_0, %c0_i32_1 : i32, i32, i32
  }
  func.func @transform_14(%arg0: i32) -> (i32, i32) {
    %c0_i32 = arith.constant 0 : i32
    %c0_i32_0 = arith.constant 0 : i32
    %c0_i32_1 = arith.constant 0 : i32
    return %c0_i32, %c0_i32_0 : i32, i32
  }
  func.func @transform_15(%arg0: i32) -> (i32, i32) {
    %c0_i32 = arith.constant 0 : i32
    %c0_i32_0 = arith.constant 0 : i32
    %c0_i32_1 = arith.constant 0 : i32
    return %c0_i32, %c0_i32_0 : i32, i32
  }
  func.func @transform_16(%arg0: i32) -> (i32, i32) {
    %c0_i32 = arith.constant 0 : i32
    %c0_i32_0 = arith.constant 0 : i32
    %c0_i32_1 = arith.constant 0 : i32
    return %c0_i32, %c0_i32_0 : i32, i32
  }
  func.func @transform_17(%arg0: i32) -> (i32, i32) {
    %c0_i32 = arith.constant 0 : i32
    %c0_i32_0 = arith.constant 0 : i32
    %c0_i32_1 = arith.constant 0 : i32
    return %c0_i32, %c0_i32_0 : i32, i32
  }
  func.func @transform_18(%arg0: i32) -> (i32, i32) {
    %c0_i32 = arith.constant 0 : i32
    %c0_i32_0 = arith.constant 0 : i32
    %c0_i32_1 = arith.constant 0 : i32
    return %c0_i32, %c0_i32_0 : i32, i32
  }
  func.func @transform_19(%arg0: i32) -> (i32, i32) {
    %c0_i32 = arith.constant 0 : i32
    %c0_i32_0 = arith.constant 0 : i32
    %c0_i32_1 = arith.constant 0 : i32
    return %c0_i32, %c0_i32_0 : i32, i32
  }
  func.func @transform_20(%arg0: i32) -> (i32, i32) {
    %c0_i32 = arith.constant 0 : i32
    %c0_i32_0 = arith.constant 0 : i32
    %c0_i32_1 = arith.constant 0 : i32
    return %c0_i32, %c0_i32_0 : i32, i32
  }
  func.func @transform_21(%arg0: i32) -> (i32, i32) {
    %c0_i32 = arith.constant 0 : i32
    %c0_i32_0 = arith.constant 0 : i32
    %c0_i32_1 = arith.constant 0 : i32
    return %c0_i32, %c0_i32_0 : i32, i32
  }
  func.func @transform_22(%arg0: i32) -> (i32, i32) {
    %c0_i32 = arith.constant 0 : i32
    %c0_i32_0 = arith.constant 0 : i32
    %c0_i32_1 = arith.constant 0 : i32
    return %c0_i32, %c0_i32_0 : i32, i32
  }
  func.func @transform_23(%arg0: i32) -> (i32, i32, i32) {
    %c0_i32 = arith.constant 0 : i32
    %c0_i32_0 = arith.constant 0 : i32
    %c0_i32_1 = arith.constant 0 : i32
    return %arg0, %c0_i32, %c0_i32_0 : i32, i32, i32
  }
}

</mosaic_0001>

<bundles_post_ra>
// kernel: encoder_forward.2
= control target key start
LH: loop header
LB: loop body
LE: loop exit
PB: predicated region body
PF: predicated region fallthrough
CT: control target
= control target key end

     0   :  { %vm170_vm0 = vcmask 1040384   ;;  %vm171_vm1 = vcmask 1041408   ;;  %v2260_v1 = vmov 65535   ;;  %vm121_vm2 = vcmask 23552   ;;  %s2947_s2 = inlined_call_operand.vmem [shape: bf16[3,16], index: 2, kind: input, shape index: {}]   ;;  %s2948_s0 = inlined_call_operand.vmem [shape: f32[256,3], index: 0, kind: input, shape index: {}]   ;;  %s2949_s6 = inlined_call_operand.vmem [shape: bf16[16,32], index: 6, kind: input, shape index: {}]   ;;  %s2950_s9 = inlined_call_operand.vmem [shape: bf16[32,64], index: 9, kind: input, shape index: {}]   ;;  %s2951_s3 = inlined_call_operand.vmem [shape: f32[1,16], index: 3, kind: input, shape index: {}]   ;;  %s2952_s4 = inlined_call_operand.vmem [shape: f32[1,16], index: 4, kind: input, shape index: {}]   ;;  %s2953_s5 = inlined_call_operand.vmem [shape: f32[1,16], index: 5, kind: input, shape index: {}]   ;;  %s2954_s8 = inlined_call_operand.vmem [shape: bf16[32,64], index: 8, kind: input, shape index: {}]   ;;  %s2955_s7 = inlined_call_operand.vmem [shape: f32[1,32], index: 7, kind: input, shape index: {}]   ;;  %s2956_s13 = inlined_call_operand.vmem [shape: bf16[64,32], index: 13, kind: input, shape index: {}]   ;;  %s2957_s10 = inlined_call_operand.vmem [shape: f32[1,64], index: 10, kind: input, shape index: {}]   ;;  %s2958_s11 = inlined_call_operand.vmem [shape: f32[1,64], index: 11, kind: input, shape index: {}]   ;;  %s2959_s12 = inlined_call_operand.vmem [shape: f32[1,64], index: 12, kind: input, shape index: {}]   ;;  %s2960_s15 = inlined_call_operand.vmem [shape: bf16[3,128], index: 15, kind: input, shape index: {}]   ;;  %s2961_s1 = inlined_call_operand.vmem [shape: f32[16,3], index: 1, kind: input, shape index: {}]   ;;  %s2962_s17 = inlined_call_operand.vmem [shape: bf16[128,32], index: 17, kind: input, shape index: {}]   ;;  %s2963_s14 = inlined_call_operand.vmem [shape: f32[1,32], index: 14, kind: input, shape index: {}]   ;;  %s2964_s16 = inlined_call_operand.vmem [shape: f32[1,128], index: 16, kind: input, shape index: {}]   ;;  %s2965_s19 = inlined_call_operand.vmem [shape: f32[16,32], index: 19, kind: output, shape index: {0}]   ;;  %s2966_s18 = inlined_call_operand.vmem [shape: f32[1,32], index: 18, kind: input, shape index: {}]   ;;  %s2967_s20 = inlined_call_operand.vmem [shape: f32[16,32], index: 20, kind: output, shape index: {1}]  }
   0x1   :  { %2970 = sst [smem:[#allocation2_spill]] %s2947_s2  ;;  %v172_v2 = vsel %vm170_vm0, 4294967295, %v2260_v1  ;;  %v2503_v58 = vld [vmem:[%s2952_s4] ss:$0 sm:$0xff]  ;;  %vm479_vm3 = vcmask 130048   ;;  %vm756_vm4 = vcmask 261120  }
   0x2   :  { %2971 = sst [smem:[#allocation3_spill]] %s2948_s0  ;;  %s2975_s23 = sld [smem:[#allocation2_spill]]  ;;  %v2377_v5 = vsel %vm171_vm1, %v172_v2, 0  ;;  %v2509_v61 = vld [vmem:[%s2953_s5] ss:$0 sm:$0xff]  ;;  %vm1346_vm5 = vcmask 523264  }
   0x3   :  { %2972 = sst [smem:[#allocation4_spill]] %s2949_s6  ;;  %s2976_s25 = sld [smem:[#allocation3_spill]]  ;;  %vm2262_vm6 = vmmov 0  }
   0x4   :  { %2973 = sst [smem:[#allocation5_spill]] %s2950_s9  ;;  %s2977_s21 = sld [smem:[#allocation4_spill]] }
   0x5   :  { %2974 = sst [smem:[#allocation6_spill]] %s2951_s3 }
   0x6   :  { %s2979_s26 = sld [smem:[#allocation6_spill]] }
   0x8   :  { %v97_v0 = vld [vmem:[%s2975_s23] sm:$0x3]  ;;  %s2978_s23 = sld [smem:[#allocation5_spill]] }
   0x9   :  { %v65_v3 = vld [vmem:[%s2976_s25] sm:$0xff]  ;;  %v66_v4 = vld [vmem:[%s2976_s25 + $0x8] sm:$0xff]  ;;  %v67_v7 = vld [vmem:[%s2976_s25 + $0x10] sm:$0xff]  ;;  %v175_v9 = vand.u32 %v2377_v5, %v97_v0 }
   0xa   :  { %v98_v6 = vpack.c.bf16 %v66_v4, %v65_v3  ;;  %v68_v8 = vld [vmem:[%s2976_s25 + $0x18] sm:$0xff]  ;;  %v69_v10 = vld [vmem:[%s2976_s25 + $0x20] sm:$0xff]  ;;  %v70_v11 = vld [vmem:[%s2976_s25 + $0x28] sm:$0xff] }
   0xb   :  { %1996 = vmatprep.subr.bf16.mxu0 %v175_v9  ;;  %v99_v12 = vpack.c.bf16 %v68_v8, %v67_v7  ;;  %2202 = vmatprep.subr.bf16.mxu1 %v175_v9  ;;  %v100_v13 = vpack.c.bf16 %v70_v11, %v69_v10  ;;  %v71_v14 = vld [vmem:[%s2976_s25 + $0x30] sm:$0xff]  ;;  %v72_v15 = vld [vmem:[%s2976_s25 + $0x38] sm:$0xff]  ;;  %v73_v16 = vld [vmem:[%s2976_s25 + $0x40] sm:$0xff] }
   0xc   :  { %1998 = vmatprep.mubr.msk.bf16.mxu0 %vm121_vm2, %v98_v6  ;;  %1997 = vmatpush3.bf16.msra.mxu0 %v175_v9  ;;  %v74_v17 = vld [vmem:[%s2976_s25 + $0x48] sm:$0xff]  ;;  %v93_v18 = vld [vmem:[%s2976_s25 + $0xe0] sm:$0xff]  ;;  %v95_v20 = vld [vmem:[%s2976_s25 + $0xf0] sm:$0xff]  ;;  %v101_v24 = vpack.c.bf16 %v72_v15, %v71_v14 }
   0xd   :  { %2203 = vmatpush3.bf16.msra.mxu1 %v175_v9  ;;  %v94_v19 = vld [vmem:[%s2976_s25 + $0xe8] sm:$0xff]  ;;  %v96_v21 = vld [vmem:[%s2976_s25 + $0xf8] sm:$0xff]  ;;  %v102_v25 = vpack.c.bf16 %v74_v17, %v73_v16  ;;  %v75_v26 = vld [vmem:[%s2976_s25 + $0x50] sm:$0xff] }
   0xe   :  { %v112_v22 = vpack.c.bf16 %v94_v19, %v93_v18  ;;  %v113_v23 = vpack.c.bf16 %v96_v21, %v95_v20  ;;  %v76_v27 = vld [vmem:[%s2976_s25 + $0x58] sm:$0xff]  ;;  %v77_v28 = vld [vmem:[%s2976_s25 + $0x60] sm:$0xff]  ;;  %v78_v29 = vld [vmem:[%s2976_s25 + $0x68] sm:$0xff] }
   0xf   :  { %1999 = vmatmul.mubr.msk.bf16.vlgmr.msra.gmra.mrb[0].mxu0 %vm121_vm2, %v99_v12  ;;  %v103_v30 = vpack.c.bf16 %v76_v27, %v75_v26  ;;  %v104_v31 = vpack.c.bf16 %v78_v29, %v77_v28  ;;  %v79_v32 = vld [vmem:[%s2976_s25 + $0x70] sm:$0xff]  ;;  %v80_v33 = vld [vmem:[%s2976_s25 + $0x78] sm:$0xff]  ;;  %v81_v34 = vld [vmem:[%s2976_s25 + $0x80] sm:$0xff] }
  0x10   :  { %2002 = vmatprep.mubr.msk.bf16.mxu0 %vm121_vm2, %v100_v13  ;;  %2026 = vmatprep.mubr.msk.bf16.mxu1 %vm121_vm2, %v112_v22  ;;  %v82_v35 = vld [vmem:[%s2976_s25 + $0x88] sm:$0xff]  ;;  %v105_v36 = vpack.c.bf16 %v80_v33, %v79_v32  ;;  %v83_v38 = vld [vmem:[%s2976_s25 + $0x90] sm:$0xff]  ;;  %v84_v39 = vld [vmem:[%s2976_s25 + $0x98] sm:$0xff] }
  0x11   :  { %2027 = vmatmul.mubr.msk.bf16.vlgmr.msra.gmra.mrb[0].mxu1 %vm121_vm2, %v113_v23  ;;  %v106_v37 = vpack.c.bf16 %v82_v35, %v81_v34  ;;  %v85_v40 = vld [vmem:[%s2976_s25 + $0xa0] sm:$0xff]  ;;  %v86_v41 = vld [vmem:[%s2976_s25 + $0xa8] sm:$0xff]  ;;  %v107_v42 = vpack.c.bf16 %v84_v39, %v83_v38  ;;  %v87_v44 = vld [vmem:[%s2976_s25 + $0xb0] sm:$0xff] }
  0x12   :  { %v108_v43 = vpack.c.bf16 %v86_v41, %v85_v40  ;;  %v88_v45 = vld [vmem:[%s2976_s25 + $0xb8] sm:$0xff]  ;;  %v89_v46 = vld [vmem:[%s2976_s25 + $0xc0] sm:$0xff]  ;;  %v90_v47 = vld [vmem:[%s2976_s25 + $0xc8] sm:$0xff] }
  0x13   :  { %v109_v48 = vpack.c.bf16 %v88_v45, %v87_v44  ;;  %v110_v49 = vpack.c.bf16 %v90_v47, %v89_v46  ;;  %v91_v50 = vld [vmem:[%s2976_s25 + $0xd0] sm:$0xff]  ;;  %v92_v51 = vld [vmem:[%s2976_s25 + $0xd8] sm:$0xff]  ;;  %v2239_v53 = vld [vmem:[%s2977_s21] sm:$0xff]  }
  0x14   :  { %v111_v52 = vpack.c.bf16 %v92_v51, %v91_v50  ;;  %2030 = vmatprep.subr.bf16.mxu1 %v2239_v53  ;;  %v2240_v54 = vld [vmem:[%s2978_s23] sm:$0xff]   ;;  %v2241_v55 = vld [vmem:[%s2978_s23 + $0x8] sm:$0xff]  }
  0x15   :  { %2031 = vmatpush3.bf16.msra.mxu1 %v2239_v53  ;;  %2064 = vmatprep.subr.bf16.mxu0 %v2240_v54  ;;  %v2498_v56 = vld [vmem:[%s2979_s26] ss:$0 sm:$0xff] }
  0x16   :  { %2065 = vmatpush3.bf16.msra.mxu0 %v2240_v54 }
  0x17   :  { %2003 = vmatmul.mubr.msk.bf16.gmra.mrb[4].mxu0 %vm121_vm2, %v101_v24  ;;  %2066 = vmatprep.subr.bf16.mxu0 %v2241_v55 }
  0x18   :  { %2006 = vmatprep.mubr.msk.bf16.mxu0 %vm121_vm2, %v102_v25 }
  0x1a   :  { %2067 = vmatpush3.bf16.msra.mxu0 %v2241_v55 }
  0x1f   :  { %2007 = vmatmul.mubr.msk.bf16.gmra.mrb[8].mxu0 %vm121_vm2, %v103_v30 }
  0x20   :  { %2010 = vmatprep.mubr.msk.bf16.mxu0 %vm121_vm2, %v104_v31 }
  0x27   :  { %2011 = vmatmul.mubr.msk.bf16.gmra.mrb[12].mxu0 %vm121_vm2, %v105_v36 }
  0x28   :  { %2014 = vmatprep.mubr.msk.bf16.mxu0 %vm121_vm2, %v106_v37 }
  0x2f   :  { %2015 = vmatmul.mubr.msk.bf16.gmra.mrb[16].mxu0 %vm121_vm2, %v107_v42 }
  0x30   :  { %2018 = vmatprep.mubr.msk.bf16.mxu0 %vm121_vm2, %v108_v43 }
  0x37   :  { %2019 = vmatmul.mubr.msk.bf16.gmra.mrb[20].mxu0 %vm121_vm2, %v109_v48 }
  0x38   :  { %2022 = vmatprep.mubr.msk.bf16.mxu0 %vm121_vm2, %v110_v49 }
  0x3f   :  { %2023 = vmatmul.mubr.msk.bf16.gmra.mrb[24].mxu0 %vm121_vm2, %v111_v52 }
  0xe2   :  { %v2000_v57 = vpop.f32.mrb[0].mxu0 }
  0xe3   :  { %v220_v59 = vadd.f32 %v2000_v57, %v2498_v56  ;;  %v211_v60 = vpop.f32.mrb[1].mxu0 }
  0xe4   :  { %v212_v62 = vadd.f32 %v2498_v56, %v211_v60  ;;  %v2001_v63 = vpop.f32.mrb[2].mxu0  ;;  %v2028_v10 = vpop.f32.mrb[0].mxu1 }
  0xe5   :  { %v347_v0 = vmul.f32 %v2503_v58, %v220_v59  ;;  %v223_v1 = vadd.f32 %v2001_v63, %v2498_v56  ;;  %v214_v2 = vpop.f32.mrb[3].mxu0  ;;  %v332_v12 = vadd.f32 %v2028_v10, %v2498_v56  ;;  %v323_v13 = vpop.f32.mrb[1].mxu1 }
  0xe6   :  { %v345_v3 = vmul.f32 %v2503_v58, %v212_v62  ;;  %v215_v4 = vadd.f32 %v2498_v56, %v214_v2  ;;  %v324_v18 = vadd.f32 %v2498_v56, %v323_v13  ;;  %v2029_v19 = vpop.f32.mrb[2].mxu1 }
  0xe7   :  { %v386_v6 = vadd.f32 %v2509_v61, %v347_v0  ;;  %v348_v7 = vmul.f32 %v2503_v58, %v223_v1  ;;  %v375_v23 = vmul.f32 %v2503_v58, %v332_v12  ;;  %v335_v24 = vadd.f32 %v2029_v19, %v2498_v56  ;;  %v326_v25 = vpop.f32.mrb[3].mxu1 }
  0xe8   :  { %v384_v8 = vadd.f32 %v2509_v61, %v345_v3  ;;  %v346_v9 = vmul.f32 %v2503_v58, %v215_v4  ;;  %v373_v29 = vmul.f32 %v2503_v58, %v324_v18  ;;  %v327_v30 = vadd.f32 %v2498_v56, %v326_v25 }
  0xe9   :  { %v387_v11 = vadd.f32 %v2509_v61, %v348_v7  ;;  %v418_v14 = vmax.f32 %v386_v6, 0.0  ;;  %v414_v35 = vadd.f32 %v2509_v61, %v375_v23  ;;  %v376_v42 = vmul.f32 %v2503_v58, %v335_v24 }
  0xea   :  { %v416_v15 = vmax.f32 %v384_v8, 0.0  ;;  %v385_v16 = vadd.f32 %v2509_v61, %v346_v9  ;;  %v2004_v17 = vpop.f32.mrb[4].mxu0  ;;  %v412_v39 = vadd.f32 %v2509_v61, %v373_v29  ;;  %v374_v45 = vmul.f32 %v2503_v58, %v327_v30 }
  0xeb   :  { %v419_v20 = vmax.f32 %v387_v11, 0.0  ;;  %v236_v21 = vadd.f32 %v2004_v17, %v2498_v56  ;;  %v227_v22 = vpop.f32.mrb[5].mxu0  ;;  %v446_v47 = vmax.f32 %v414_v35, 0.0  ;;  %v415_v48 = vadd.f32 %v2509_v61, %v376_v42 }
  0xec   :  { %v417_v26 = vmax.f32 %v385_v16, 0.0  ;;  %v228_v27 = vadd.f32 %v2498_v56, %v227_v22  ;;  %v2005_v28 = vpop.f32.mrb[6].mxu0  ;;  %v444_v51 = vmax.f32 %v412_v39, 0.0  ;;  %v413_v52 = vadd.f32 %v2509_v61, %v374_v45 }
  0xed   :  { %v451_v31 = vpack.c.bf16 %v419_v20, %v418_v14  ;;  %v351_v32 = vmul.f32 %v2503_v58, %v236_v21  ;;  %v239_v33 = vadd.f32 %v2005_v28, %v2498_v56  ;;  %v230_v34 = vpop.f32.mrb[7].mxu0  ;;  %v447_v59 = vmax.f32 %v415_v48, 0.0 }
  0xee   :  { %v450_v36 = vpack.c.bf16 %v417_v26, %v416_v15  ;;  %v349_v37 = vmul.f32 %v2503_v58, %v228_v27  ;;  %v231_v38 = vadd.f32 %v2498_v56, %v230_v34  ;;  %v445_v1 = vmax.f32 %v413_v52, 0.0 }
  0xef   :  { %v390_v40 = vadd.f32 %v2509_v61, %v351_v32  ;;  %v352_v41 = vmul.f32 %v2503_v58, %v239_v33  ;;  %v2552_v7 = vpack.c.bf16 %v447_v59, %v446_v47 }
  0xf0   :  { %v388_v43 = vadd.f32 %v2509_v61, %v349_v37  ;;  %v350_v44 = vmul.f32 %v2503_v58, %v231_v38  ;;  %2032 = vmatprep.mubr.msk.bf16.mxu1 %vm479_vm3, %v450_v36  ;;  %v2556_v11 = vpack.c.bf16 %v445_v1, %v444_v51 }
  0xf1   :  { %v391_v46 = vadd.f32 %v2509_v61, %v352_v41  ;;  %2033 = vmatmul.mubr.msk.bf16.vlgmr.msra.gmra.mrb[4].mxu1 %vm479_vm3, %v451_v31  ;;  %v422_v53 = vmax.f32 %v390_v40, 0.0 }
  0xf2   :  { %v389_v49 = vadd.f32 %v2509_v61, %v350_v44  ;;  %v2008_v50 = vpop.f32.mrb[8].mxu0  ;;  %v420_v60 = vmax.f32 %v388_v43, 0.0 }
  0xf3   :  { %v423_v54 = vmax.f32 %v391_v46, 0.0  ;;  %v252_v55 = vadd.f32 %v2008_v50, %v2498_v56  ;;  %v243_v57 = vpop.f32.mrb[9].mxu0 }
  0xf4   :  { %v421_v62 = vmax.f32 %v389_v49, 0.0  ;;  %v244_v63 = vadd.f32 %v2498_v56, %v243_v57  ;;  %v2009_v0 = vpop.f32.mrb[10].mxu0 }
  0xf5   :  { %v453_v2 = vpack.c.bf16 %v423_v54, %v422_v53  ;;  %v355_v3 = vmul.f32 %v2503_v58, %v252_v55  ;;  %v255_v4 = vadd.f32 %v2009_v0, %v2498_v56  ;;  %v246_v6 = vpop.f32.mrb[11].mxu0 }
  0xf6   :  { %v452_v8 = vpack.c.bf16 %v421_v62, %v420_v60  ;;  %v353_v9 = vmul.f32 %v2503_v58, %v244_v63  ;;  %v247_v10 = vadd.f32 %v2498_v56, %v246_v6 }
  0xf7   :  { %v394_v12 = vadd.f32 %v2509_v61, %v355_v3  ;;  %v356_v13 = vmul.f32 %v2503_v58, %v255_v4 }
  0xf8   :  { %v392_v14 = vadd.f32 %v2509_v61, %v353_v9  ;;  %v354_v15 = vmul.f32 %v2503_v58, %v247_v10  ;;  %2036 = vmatprep.mubr.msk.bf16.mxu1 %vm479_vm3, %v452_v8 }
  0xf9   :  { %v395_v16 = vadd.f32 %v2509_v61, %v356_v13  ;;  %2037 = vmatmul.mubr.msk.bf16.gmra.mrb[8].mxu1 %vm479_vm3, %v453_v2  ;;  %v426_v19 = vmax.f32 %v394_v12, 0.0 }
  0xfa   :  { %v393_v17 = vadd.f32 %v2509_v61, %v354_v15  ;;  %v2012_v18 = vpop.f32.mrb[12].mxu0  ;;  %v424_v23 = vmax.f32 %v392_v14, 0.0 }
  0xfb   :  { %v427_v20 = vmax.f32 %v395_v16, 0.0  ;;  %v268_v21 = vadd.f32 %v2012_v18, %v2498_v56  ;;  %v259_v22 = vpop.f32.mrb[13].mxu0 }
  0xfc   :  { %v425_v24 = vmax.f32 %v393_v17, 0.0  ;;  %v260_v25 = vadd.f32 %v2498_v56, %v259_v22  ;;  %v2013_v26 = vpop.f32.mrb[14].mxu0 }
  0xfd   :  { %v455_v27 = vpack.c.bf16 %v427_v20, %v426_v19  ;;  %v359_v28 = vmul.f32 %v2503_v58, %v268_v21  ;;  %v271_v29 = vadd.f32 %v2013_v26, %v2498_v56  ;;  %v262_v30 = vpop.f32.mrb[15].mxu0 }
  0xfe   :  { %v454_v31 = vpack.c.bf16 %v425_v24, %v424_v23  ;;  %v357_v32 = vmul.f32 %v2503_v58, %v260_v25  ;;  %v263_v33 = vadd.f32 %v2498_v56, %v262_v30 }
  0xff   :  { %v398_v34 = vadd.f32 %v2509_v61, %v359_v28  ;;  %v360_v35 = vmul.f32 %v2503_v58, %v271_v29 }
 0x100   :  { %v396_v36 = vadd.f32 %v2509_v61, %v357_v32  ;;  %v358_v37 = vmul.f32 %v2503_v58, %v263_v33  ;;  %2040 = vmatprep.mubr.msk.bf16.mxu1 %vm479_vm3, %v454_v31 }
 0x101   :  { %v399_v38 = vadd.f32 %v2509_v61, %v360_v35  ;;  %2041 = vmatmul.mubr.msk.bf16.gmra.mrb[12].mxu1 %vm479_vm3, %v455_v27  ;;  %v430_v41 = vmax.f32 %v398_v34, 0.0 }
 0x102   :  { %v397_v39 = vadd.f32 %v2509_v61, %v358_v37  ;;  %v2016_v40 = vpop.f32.mrb[16].mxu0  ;;  %v428_v45 = vmax.f32 %v396_v36, 0.0 }
 0x103   :  { %v431_v42 = vmax.f32 %v399_v38, 0.0  ;;  %v284_v43 = vadd.f32 %v2016_v40, %v2498_v56  ;;  %v275_v44 = vpop.f32.mrb[17].mxu0 }
 0x104   :  { %v429_v46 = vmax.f32 %v397_v39, 0.0  ;;  %v276_v47 = vadd.f32 %v2498_v56, %v275_v44  ;;  %v2017_v48 = vpop.f32.mrb[18].mxu0 }
 0x105   :  { %v457_v49 = vpack.c.bf16 %v431_v42, %v430_v41  ;;  %v363_v50 = vmul.f32 %v2503_v58, %v284_v43  ;;  %v287_v51 = vadd.f32 %v2017_v48, %v2498_v56  ;;  %v278_v52 = vpop.f32.mrb[19].mxu0 }
 0x106   :  { %v456_v53 = vpack.c.bf16 %v429_v46, %v428_v45  ;;  %v361_v54 = vmul.f32 %v2503_v58, %v276_v47  ;;  %v279_v55 = vadd.f32 %v2498_v56, %v278_v52 }
 0x107   :  { %v402_v57 = vadd.f32 %v2509_v61, %v363_v50  ;;  %v364_v59 = vmul.f32 %v2503_v58, %v287_v51 }
 0x108   :  { %v400_v60 = vadd.f32 %v2509_v61, %v361_v54  ;;  %v362_v62 = vmul.f32 %v2503_v58, %v279_v55  ;;  %2044 = vmatprep.mubr.msk.bf16.mxu1 %vm479_vm3, %v456_v53 }
 0x109   :  { %v403_v63 = vadd.f32 %v2509_v61, %v364_v59  ;;  %2045 = vmatmul.mubr.msk.bf16.gmra.mrb[16].mxu1 %vm479_vm3, %v457_v49  ;;  %v434_v2 = vmax.f32 %v402_v57, 0.0 }
 0x10a   :  { %v401_v0 = vadd.f32 %v2509_v61, %v362_v62  ;;  %v2020_v1 = vpop.f32.mrb[20].mxu0  ;;  %v432_v8 = vmax.f32 %v400_v60, 0.0  ;;  %v2245_v62 = vld [vmem:[%s2956_s13 + $0x8] sm:$0xff]  }
 0x10b   :  { %v435_v3 = vmax.f32 %v403_v63, 0.0  ;;  %v300_v4 = vadd.f32 %v2020_v1, %v2498_v56  ;;  %v291_v6 = vpop.f32.mrb[21].mxu0 }
 0x10c   :  { %v433_v9 = vmax.f32 %v401_v0, 0.0  ;;  %v292_v10 = vadd.f32 %v2498_v56, %v291_v6  ;;  %v2021_v12 = vpop.f32.mrb[22].mxu0  ;;  %v2243_v6 = vld [vmem:[%s2954_s8 + $0x8] sm:$0xff]  }
 0x10d   :  { %v459_v13 = vpack.c.bf16 %v435_v3, %v434_v2  ;;  %v367_v14 = vmul.f32 %v2503_v58, %v300_v4  ;;  %v303_v15 = vadd.f32 %v2021_v12, %v2498_v56  ;;  %v294_v16 = vpop.f32.mrb[23].mxu0  ;;  %v2246_v4 = vld [vmem:[%s2956_s13 + $0x10] sm:$0xff]  }
 0x10e   :  { %v458_v17 = vpack.c.bf16 %v433_v9, %v432_v8  ;;  %v365_v18 = vmul.f32 %v2503_v58, %v292_v10  ;;  %v295_v19 = vadd.f32 %v2498_v56, %v294_v16 }
 0x10f   :  { %v406_v20 = vadd.f32 %v2509_v61, %v367_v14  ;;  %v368_v21 = vmul.f32 %v2503_v58, %v303_v15 }
 0x110   :  { %v404_v22 = vadd.f32 %v2509_v61, %v365_v18  ;;  %v366_v23 = vmul.f32 %v2503_v58, %v295_v19  ;;  %2048 = vmatprep.mubr.msk.bf16.mxu1 %vm479_vm3, %v458_v17 }
 0x111   :  { %v407_v24 = vadd.f32 %v2509_v61, %v368_v21  ;;  %2049 = vmatmul.mubr.msk.bf16.gmra.mrb[20].mxu1 %vm479_vm3, %v459_v13  ;;  %v438_v27 = vmax.f32 %v406_v20, 0.0  ;;  %v2247_v13 = vld [vmem:[%s2956_s13 + $0x18] sm:$0xff]  }
 0x112   :  { %v405_v25 = vadd.f32 %v2509_v61, %v366_v23  ;;  %v2024_v26 = vpop.f32.mrb[24].mxu0  ;;  %v436_v31 = vmax.f32 %v404_v22, 0.0 }
 0x113   :  { %v439_v28 = vmax.f32 %v407_v24, 0.0  ;;  %v316_v29 = vadd.f32 %v2024_v26, %v2498_v56  ;;  %v307_v30 = vpop.f32.mrb[25].mxu0 }
 0x114   :  { %v437_v32 = vmax.f32 %v405_v25, 0.0  ;;  %v308_v33 = vadd.f32 %v2498_v56, %v307_v30  ;;  %v2025_v34 = vpop.f32.mrb[26].mxu0 }
 0x115   :  { %v461_v35 = vpack.c.bf16 %v439_v28, %v438_v27  ;;  %v371_v36 = vmul.f32 %v2503_v58, %v316_v29  ;;  %v319_v37 = vadd.f32 %v2025_v34, %v2498_v56  ;;  %v310_v38 = vpop.f32.mrb[27].mxu0 }
 0x116   :  { %v460_v39 = vpack.c.bf16 %v437_v32, %v436_v31  ;;  %v369_v40 = vmul.f32 %v2503_v58, %v308_v33  ;;  %v311_v41 = vadd.f32 %v2498_v56, %v310_v38 }
 0x117   :  { %v410_v42 = vadd.f32 %v2509_v61, %v371_v36  ;;  %v372_v43 = vmul.f32 %v2503_v58, %v319_v37 }
 0x118   :  { %v408_v44 = vadd.f32 %v2509_v61, %v369_v40  ;;  %v370_v45 = vmul.f32 %v2503_v58, %v311_v41  ;;  %2052 = vmatprep.mubr.msk.bf16.mxu1 %vm479_vm3, %v460_v39  ;;  %v2242_v58 = vld [vmem:[%s2954_s8] sm:$0xff]  }
 0x119   :  { %v411_v46 = vadd.f32 %v2509_v61, %v372_v43  ;;  %2053 = vmatmul.mubr.msk.bf16.gmra.mrb[24].mxu1 %vm479_vm3, %v461_v35  ;;  %v442_v48 = vmax.f32 %v410_v42, 0.0  ;;  %2100 = vmatprep.subr.bf16.mxu0 %v2242_v58 }
 0x11a   :  { %v409_v47 = vadd.f32 %v2509_v61, %v370_v45  ;;  %v440_v50 = vmax.f32 %v408_v44, 0.0  ;;  %v2634_v61 = vld [vmem:[%s2955_s7] ss:$0 sm:$0xff] }
 0x11b   :  { %v443_v49 = vmax.f32 %v411_v46, 0.0 }
 0x11c   :  { %v441_v56 = vmax.f32 %v409_v47, 0.0 }
 0x11d   :  { %v463_v51 = vpack.c.bf16 %v443_v49, %v442_v48 }
 0x11e   :  { %v462_v52 = vpack.c.bf16 %v441_v56, %v440_v50 }
 0x120   :  { %2056 = vmatprep.mubr.msk.bf16.mxu1 %vm479_vm3, %v462_v52 }
 0x121   :  { %2057 = vmatmul.mubr.msk.bf16.gmra.mrb[28].mxu1 %vm479_vm3, %v463_v51 }
 0x122   :  { %2060 = vmatprep.mubr.msk.bf16.mxu1 %vm479_vm3, %v2556_v11 }
 0x129   :  { %2061 = vmatmul.mubr.msk.bf16.gmra.mrb[32].mxu1 %vm479_vm3, %v2552_v7  ;;  %v2244_v7 = vld [vmem:[%s2956_s13] sm:$0xff]  }
 0x12a   :  { %2136 = vmatprep.subr.bf16.mxu1 %v2244_v7 }
 0x12b   :  { %2137 = vmatpush3.bf16.msra.mxu1 %v2244_v7 }
 0x12c   :  { %2138 = vmatprep.subr.bf16.mxu1 %v2245_v62 }
 0x12f   :  { %2139 = vmatpush3.bf16.msra.mxu1 %v2245_v62 }
 0x130   :  { %2140 = vmatprep.subr.bf16.mxu1 %v2246_v4 }
 0x133   :  { %2141 = vmatpush3.bf16.msra.mxu1 %v2246_v4 }
 0x134   :  { %2142 = vmatprep.subr.bf16.mxu1 %v2247_v13 }
 0x137   :  { %2143 = vmatpush3.bf16.msra.mxu1 %v2247_v13 }
 0x1c4   :  { %v2034_v53 = vpop.f32.mrb[4].mxu1 }
 0x1c5   :  { %v571_v54 = vadd.f32 %v2034_v53, %v2634_v61  ;;  %v562_v55 = vpop.f32.mrb[5].mxu1 }
 0x1c6   :  { %v563_v57 = vadd.f32 %v2634_v61, %v562_v55  ;;  %v2035_v11 = vpop.f32.mrb[6].mxu1 }
 0x1c7   :  { %v574_v59 = vadd.f32 %v2035_v11, %v2634_v61  ;;  %v565_v60 = vpop.f32.mrb[7].mxu1 }
 0x1c8   :  { %v689_v63 = vmax.f32 %v563_v57, %v571_v54  ;;  %v566_v0 = vadd.f32 %v2634_v61, %v565_v60 }
 0x1c9   :  { %v729_v1 = vpack.c.bf16 %v574_v59, %v571_v54 }
 0x1ca   :  { %v690_v2 = vmax.f32 %v566_v0, %v574_v59  ;;  %v728_v3 = vpack.c.bf16 %v566_v0, %v563_v57 }
 0x1cc   :  { %v2038_v8 = vpop.f32.mrb[8].mxu1  ;;  %2068 = vmatprep.mubr.msk.bf16.mxu0 %vm756_vm4, %v728_v3 }
 0x1cd   :  { %v578_v9 = vpop.f32.mrb[9].mxu1  ;;  %2069 = vmatmul.mubr.msk.bf16.vlgmr.msra.gmra.mrb[28].mxu0 %vm756_vm4, %v729_v1  ;;  %v587_v14 = vadd.f32 %v2038_v8, %v2634_v61 }
 0x1ce   :  { %v579_v10 = vadd.f32 %v2634_v61, %v578_v9  ;;  %2101 = vmatpush3.bf16.msra.mxu0 %v2242_v58  ;;  %v2039_v12 = vpop.f32.mrb[10].mxu1 }
 0x1cf   :  { %v590_v15 = vadd.f32 %v2039_v12, %v2634_v61  ;;  %v581_v16 = vpop.f32.mrb[11].mxu1  ;;  %2102 = vmatprep.subr.bf16.mxu0 %v2243_v6 }
 0x1d0   :  { %v691_v17 = vmax.f32 %v689_v63, %v579_v10  ;;  %v582_v18 = vadd.f32 %v2634_v61, %v581_v16 }
 0x1d1   :  { %v731_v19 = vpack.c.bf16 %v590_v15, %v587_v14 }
 0x1d2   :  { %v692_v20 = vmax.f32 %v690_v2, %v582_v18  ;;  %v730_v21 = vpack.c.bf16 %v582_v18, %v579_v10  ;;  %v693_v22 = vmax.f32 %v691_v17, %v587_v14  ;;  %2103 = vmatpush3.bf16.msra.mxu0 %v2243_v6 }
 0x1d4   :  { %v2042_v23 = vpop.f32.mrb[12].mxu1  ;;  %2072 = vmatprep.mubr.msk.bf16.mxu0 %vm756_vm4, %v730_v21  ;;  %v694_v24 = vmax.f32 %v692_v20, %v590_v15 }
 0x1d5   :  { %v594_v25 = vpop.f32.mrb[13].mxu1  ;;  %2073 = vmatmul.mubr.msk.bf16.gmra.mrb[32].mxu0 %vm756_vm4, %v731_v19  ;;  %v603_v28 = vadd.f32 %v2042_v23, %v2634_v61 }
 0x1d6   :  { %v595_v26 = vadd.f32 %v2634_v61, %v594_v25  ;;  %v2043_v27 = vpop.f32.mrb[14].mxu1 }
 0x1d7   :  { %v606_v29 = vadd.f32 %v2043_v27, %v2634_v61  ;;  %v597_v30 = vpop.f32.mrb[15].mxu1 }
 0x1d8   :  { %v695_v31 = vmax.f32 %v693_v22, %v595_v26  ;;  %v598_v32 = vadd.f32 %v2634_v61, %v597_v30 }
 0x1d9   :  { %v733_v33 = vpack.c.bf16 %v606_v29, %v603_v28 }
 0x1da   :  { %v696_v34 = vmax.f32 %v694_v24, %v598_v32  ;;  %v732_v35 = vpack.c.bf16 %v598_v32, %v595_v26  ;;  %v697_v36 = vmax.f32 %v695_v31, %v603_v28 }
 0x1dc   :  { %v2046_v37 = vpop.f32.mrb[16].mxu1  ;;  %2076 = vmatprep.mubr.msk.bf16.mxu0 %vm756_vm4, %v732_v35  ;;  %v698_v38 = vmax.f32 %v696_v34, %v606_v29 }
 0x1dd   :  { %v610_v39 = vpop.f32.mrb[17].mxu1  ;;  %2077 = vmatmul.mubr.msk.bf16.gmra.mrb[36].mxu0 %vm756_vm4, %v733_v33  ;;  %v619_v42 = vadd.f32 %v2046_v37, %v2634_v61 }
 0x1de   :  { %v611_v40 = vadd.f32 %v2634_v61, %v610_v39  ;;  %v2047_v41 = vpop.f32.mrb[18].mxu1 }
 0x1df   :  { %v622_v43 = vadd.f32 %v2047_v41, %v2634_v61  ;;  %v613_v44 = vpop.f32.mrb[19].mxu1 }
 0x1e0   :  { %v699_v45 = vmax.f32 %v697_v36, %v611_v40  ;;  %v614_v46 = vadd.f32 %v2634_v61, %v613_v44 }
 0x1e1   :  { %v735_v47 = vpack.c.bf16 %v622_v43, %v619_v42 }
 0x1e2   :  { %v700_v48 = vmax.f32 %v698_v38, %v614_v46  ;;  %v734_v49 = vpack.c.bf16 %v614_v46, %v611_v40  ;;  %v701_v50 = vmax.f32 %v699_v45, %v619_v42 }
 0x1e4   :  { %v2050_v56 = vpop.f32.mrb[20].mxu1  ;;  %2080 = vmatprep.mubr.msk.bf16.mxu0 %vm756_vm4, %v734_v49  ;;  %v702_v51 = vmax.f32 %v700_v48, %v622_v43  ;;  %v2724_v49 = vld [vmem:[%s2958_s11] ss:$0 sm:$0xff] }
 0x1e5   :  { %v626_v52 = vpop.f32.mrb[21].mxu1  ;;  %2081 = vmatmul.mubr.msk.bf16.gmra.mrb[40].mxu0 %vm756_vm4, %v735_v47  ;;  %v635_v54 = vadd.f32 %v2050_v56, %v2634_v61  ;;  %v2719_v47 = vld [vmem:[%s2957_s10] ss:$0 sm:$0xff] }
 0x1e6   :  { %v627_v58 = vadd.f32 %v2634_v61, %v626_v52  ;;  %v2051_v53 = vpop.f32.mrb[22].mxu1 }
 0x1e7   :  { %v638_v55 = vadd.f32 %v2051_v53, %v2634_v61  ;;  %v629_v57 = vpop.f32.mrb[23].mxu1 }
 0x1e8   :  { %v703_v11 = vmax.f32 %v701_v50, %v627_v58  ;;  %v630_v7 = vadd.f32 %v2634_v61, %v629_v57 }
 0x1e9   :  { %v737_v59 = vpack.c.bf16 %v638_v55, %v635_v54 }
 0x1ea   :  { %v704_v60 = vmax.f32 %v702_v51, %v630_v7  ;;  %v736_v62 = vpack.c.bf16 %v630_v7, %v627_v58  ;;  %v705_v63 = vmax.f32 %v703_v11, %v635_v54  ;;  %v2730_v51 = vld [vmem:[%s2959_s12] ss:$0 sm:$0xff] }
 0x1ec   :  { %v2054_v0 = vpop.f32.mrb[24].mxu1  ;;  %2084 = vmatprep.mubr.msk.bf16.mxu0 %vm756_vm4, %v736_v62  ;;  %v706_v1 = vmax.f32 %v704_v60, %v638_v55 }
 0x1ed   :  { %v642_v2 = vpop.f32.mrb[25].mxu1  ;;  %2085 = vmatmul.mubr.msk.bf16.gmra.mrb[44].mxu0 %vm756_vm4, %v737_v59  ;;  %v651_v6 = vadd.f32 %v2054_v0, %v2634_v61 }
 0x1ee   :  { %v643_v3 = vadd.f32 %v2634_v61, %v642_v2  ;;  %v2055_v4 = vpop.f32.mrb[26].mxu1 }
 0x1ef   :  { %v654_v8 = vadd.f32 %v2055_v4, %v2634_v61  ;;  %v645_v9 = vpop.f32.mrb[27].mxu1 }
 0x1f0   :  { %v707_v10 = vmax.f32 %v705_v63, %v643_v3  ;;  %v646_v12 = vadd.f32 %v2634_v61, %v645_v9 }
 0x1f1   :  { %v739_v13 = vpack.c.bf16 %v654_v8, %v651_v6 }
 0x1f2   :  { %v708_v14 = vmax.f32 %v706_v1, %v646_v12  ;;  %v738_v15 = vpack.c.bf16 %v646_v12, %v643_v3  ;;  %v709_v16 = vmax.f32 %v707_v10, %v651_v6 }
 0x1f4   :  { %v2058_v17 = vpop.f32.mrb[28].mxu1  ;;  %2088 = vmatprep.mubr.msk.bf16.mxu0 %vm756_vm4, %v738_v15  ;;  %v710_v18 = vmax.f32 %v708_v14, %v654_v8  ;;  %v1590_v8 = vld [vmem:[%s2960_s15] sm:$0x3] }
 0x1f5   :  { %v658_v19 = vpop.f32.mrb[29].mxu1  ;;  %2089 = vmatmul.mubr.msk.bf16.gmra.mrb[48].mxu0 %vm756_vm4, %v739_v13  ;;  %v667_v22 = vadd.f32 %v2058_v17, %v2634_v61 }
 0x1f6   :  { %v659_v20 = vadd.f32 %v2634_v61, %v658_v19  ;;  %v2059_v21 = vpop.f32.mrb[30].mxu1 }
 0x1f7   :  { %v670_v23 = vadd.f32 %v2059_v21, %v2634_v61  ;;  %v661_v24 = vpop.f32.mrb[31].mxu1  ;;  %v1603_v21 = vand.u32 %v1590_v8, %v2377_v5 }
 0x1f8   :  { %v711_v25 = vmax.f32 %v709_v16, %v659_v20  ;;  %v662_v26 = vadd.f32 %v2634_v61, %v661_v24 }
 0x1f9   :  { %v741_v27 = vpack.c.bf16 %v670_v23, %v667_v22 }
 0x1fa   :  { %v712_v28 = vmax.f32 %v710_v18, %v662_v26  ;;  %v740_v29 = vpack.c.bf16 %v662_v26, %v659_v20  ;;  %v713_v30 = vmax.f32 %v711_v25, %v667_v22 }
 0x1fc   :  { %v2062_v31 = vpop.f32.mrb[32].mxu1  ;;  %2092 = vmatprep.mubr.msk.bf16.mxu0 %vm756_vm4, %v740_v29  ;;  %v714_v32 = vmax.f32 %v712_v28, %v670_v23 }
 0x1fd   :  { %v674_v33 = vpop.f32.mrb[33].mxu1  ;;  %2093 = vmatmul.mubr.msk.bf16.gmra.mrb[52].mxu0 %vm756_vm4, %v741_v27  ;;  %v683_v36 = vadd.f32 %v2062_v31, %v2634_v61 }
 0x1fe   :  { %v675_v34 = vadd.f32 %v2634_v61, %v674_v33  ;;  %v2063_v35 = vpop.f32.mrb[34].mxu1 }
 0x1ff   :  { %v686_v37 = vadd.f32 %v2063_v35, %v2634_v61  ;;  %v677_v38 = vpop.f32.mrb[35].mxu1 }
 0x200   :  { %v715_v39 = vmax.f32 %v713_v30, %v675_v34  ;;  %v678_v40 = vadd.f32 %v2634_v61, %v677_v38  ;;  %v2261_v61 = vmov 0.0  }
 0x201   :  { %v743_v41 = vpack.c.bf16 %v686_v37, %v683_v36  ;;  %2176 = vmatprep.subr.bf16.mxu1 %v2261_v61 }
 0x202   :  { %v717_v42 = vmax.f32 %v715_v39, %v683_v36  ;;  %v716_v43 = vmax.f32 %v714_v32, %v678_v40  ;;  %v742_v44 = vpack.c.bf16 %v678_v40, %v675_v34 }
 0x204   :  { %v718_v45 = vmax.f32 %v716_v43, %v686_v37  ;;  %2096 = vmatprep.mubr.msk.bf16.mxu0 %vm756_vm4, %v742_v44 }
 0x205   :  { %2097 = vmatmul.mubr.msk.bf16.gmra.mrb[56].mxu0 %vm756_vm4, %v743_v41 }
 0x206   :  { %v723_v46 = vpack.c.bf16 %v718_v45, %v717_v42 }
 0x208   :  { %2104 = vmatprep.mubr.msk.bf16.mxu0 %vm756_vm4, %v723_v46 }
 0x20d   :  { %2105 = vmatmul.mubr.msk.bf16.vlgmr.msra.gmra.mrb[28].mxu0 %vm756_vm4, %v723_v46 }
 0x20e   :  { %2108 = vmatprep.mubr.msk.bf16.mxu0 %vm756_vm4, %v723_v46 }
 0x215   :  { %2109 = vmatmul.mubr.msk.bf16.gmra.mrb[32].mxu0 %vm756_vm4, %v723_v46 }
 0x216   :  { %2112 = vmatprep.mubr.msk.bf16.mxu0 %vm756_vm4, %v723_v46 }
 0x21d   :  { %2113 = vmatmul.mubr.msk.bf16.gmra.mrb[36].mxu0 %vm756_vm4, %v723_v46 }
 0x21e   :  { %2116 = vmatprep.mubr.msk.bf16.mxu0 %vm756_vm4, %v723_v46 }
 0x225   :  { %2117 = vmatmul.mubr.msk.bf16.gmra.mrb[40].mxu0 %vm756_vm4, %v723_v46 }
 0x226   :  { %2120 = vmatprep.mubr.msk.bf16.mxu0 %vm756_vm4, %v723_v46 }
 0x22d   :  { %2121 = vmatmul.mubr.msk.bf16.gmra.mrb[44].mxu0 %vm756_vm4, %v723_v46 }
 0x22e   :  { %2124 = vmatprep.mubr.msk.bf16.mxu0 %vm756_vm4, %v723_v46 }
 0x235   :  { %2125 = vmatmul.mubr.msk.bf16.gmra.mrb[48].mxu0 %vm756_vm4, %v723_v46 }
 0x236   :  { %2128 = vmatprep.mubr.msk.bf16.mxu0 %vm756_vm4, %v723_v46 }
 0x23d   :  { %2129 = vmatmul.mubr.msk.bf16.gmra.mrb[52].mxu0 %vm756_vm4, %v723_v46 }
 0x23e   :  { %2132 = vmatprep.mubr.msk.bf16.mxu0 %vm756_vm4, %v723_v46 }
 0x245   :  { %2133 = vmatmul.mubr.msk.bf16.gmra.mrb[56].mxu0 %vm756_vm4, %v723_v46 }
 0x2e0   :  { %v2106_v48 = vpop.f32.mrb[28].mxu0 }
 0x2e1   :  { %v1151_v50 = vadd.f32 %v2106_v48, %v2719_v47  ;;  %v1015_v56 = vpop.f32.mrb[29].mxu0 }
 0x2e2   :  { %v1149_v52 = vadd.f32 %v2719_v47, %v1015_v56  ;;  %v2107_v58 = vpop.f32.mrb[30].mxu0 }
 0x2e3   :  { %v1190_v53 = vmul.f32 %v2724_v49, %v1151_v50  ;;  %v1152_v54 = vadd.f32 %v2107_v58, %v2719_v47  ;;  %v1018_v55 = vpop.f32.mrb[31].mxu0 }
 0x2e4   :  { %v1188_v57 = vmul.f32 %v2724_v49, %v1149_v52  ;;  %v1150_v11 = vadd.f32 %v2719_v47, %v1018_v55 }
 0x2e5   :  { %v1229_v7 = vadd.f32 %v2730_v51, %v1190_v53  ;;  %v1191_v59 = vmul.f32 %v2724_v49, %v1152_v54 }
 0x2e6   :  { %v1227_v60 = vadd.f32 %v2730_v51, %v1188_v57  ;;  %v1189_v62 = vmul.f32 %v2724_v49, %v1150_v11 }
 0x2e7   :  { %v1230_v63 = vadd.f32 %v2730_v51, %v1191_v59  ;;  %v1261_v2 = vmax.f32 %v1229_v7, 0.0 }
 0x2e8   :  { %v1228_v0 = vadd.f32 %v2730_v51, %v1189_v62  ;;  %v2110_v1 = vpop.f32.mrb[32].mxu0  ;;  %v1259_v9 = vmax.f32 %v1227_v60, 0.0 }
 0x2e9   :  { %v1262_v3 = vmax.f32 %v1230_v63, 0.0  ;;  %v1155_v4 = vadd.f32 %v2110_v1, %v2719_v47  ;;  %v1031_v6 = vpop.f32.mrb[33].mxu0 }
 0x2ea   :  { %v1260_v10 = vmax.f32 %v1228_v0, 0.0  ;;  %v1153_v12 = vadd.f32 %v2719_v47, %v1031_v6  ;;  %v2111_v13 = vpop.f32.mrb[34].mxu0 }
 0x2eb   :  { %v1300_v14 = vpack.c.bf16 %v1262_v3, %v1261_v2  ;;  %v1194_v15 = vmul.f32 %v2724_v49, %v1155_v4  ;;  %v1156_v16 = vadd.f32 %v2111_v13, %v2719_v47  ;;  %v1034_v17 = vpop.f32.mrb[35].mxu0 }
 0x2ec   :  { %v1299_v18 = vpack.c.bf16 %v1260_v10, %v1259_v9  ;;  %v1192_v19 = vmul.f32 %v2724_v49, %v1153_v12  ;;  %v1154_v20 = vadd.f32 %v2719_v47, %v1034_v17 }
 0x2ed   :  { %v1233_v22 = vadd.f32 %v2730_v51, %v1194_v15  ;;  %v1195_v23 = vmul.f32 %v2724_v49, %v1156_v16 }
 0x2ee   :  { %v1231_v24 = vadd.f32 %v2730_v51, %v1192_v19  ;;  %v1193_v25 = vmul.f32 %v2724_v49, %v1154_v20  ;;  %2144 = vmatprep.mubr.msk.bf16.mxu1 %vm1346_vm5, %v1299_v18 }
 0x2ef   :  { %v1234_v26 = vadd.f32 %v2730_v51, %v1195_v23  ;;  %2145 = vmatmul.mubr.msk.bf16.vlgmr.msra.gmra.mrb[36].mxu1 %vm1346_vm5, %v1300_v14  ;;  %v1265_v29 = vmax.f32 %v1233_v22, 0.0 }
 0x2f0   :  { %v1232_v27 = vadd.f32 %v2730_v51, %v1193_v25  ;;  %2177 = vmatpush3.bf16.msra.mxu1 %v1603_v21  ;;  %v2114_v28 = vpop.f32.mrb[36].mxu0  ;;  %v1263_v32 = vmax.f32 %v1231_v24, 0.0 }
 0x2f1   :  { %v1266_v5 = vmax.f32 %v1234_v26, 0.0  ;;  %v1159_v30 = vadd.f32 %v2114_v28, %v2719_v47  ;;  %v1047_v31 = vpop.f32.mrb[37].mxu0  ;;  %2182 = vmatprep.subr.bf16.mxu1 %v2261_v61 }
 0x2f2   :  { %v1264_v33 = vmax.f32 %v1232_v27, 0.0  ;;  %v1157_v34 = vadd.f32 %v2719_v47, %v1047_v31  ;;  %v2115_v35 = vpop.f32.mrb[38].mxu0 }
 0x2f3   :  { %v1302_v36 = vpack.c.bf16 %v1266_v5, %v1265_v29  ;;  %v1198_v37 = vmul.f32 %v2724_v49, %v1159_v30  ;;  %v1160_v38 = vadd.f32 %v2115_v35, %v2719_v47  ;;  %v1050_v39 = vpop.f32.mrb[39].mxu0 }
 0x2f4   :  { %v1301_v40 = vpack.c.bf16 %v1264_v33, %v1263_v32  ;;  %v1196_v41 = vmul.f32 %v2724_v49, %v1157_v34  ;;  %v1158_v42 = vadd.f32 %v2719_v47, %v1050_v39 }
 0x2f5   :  { %v1237_v43 = vadd.f32 %v2730_v51, %v1198_v37  ;;  %v1199_v44 = vmul.f32 %v2724_v49, %v1160_v38 }
 0x2f6   :  { %v1235_v45 = vadd.f32 %v2730_v51, %v1196_v41  ;;  %v1197_v46 = vmul.f32 %v2724_v49, %v1158_v42  ;;  %2148 = vmatprep.mubr.msk.bf16.mxu1 %vm1346_vm5, %v1301_v40 }
 0x2f7   :  { %v1238_v48 = vadd.f32 %v2730_v51, %v1199_v44  ;;  %2149 = vmatmul.mubr.msk.bf16.gmra.mrb[40].mxu1 %vm1346_vm5, %v1302_v36  ;;  %v1269_v52 = vmax.f32 %v1237_v43, 0.0 }
 0x2f8   :  { %v1236_v50 = vadd.f32 %v2730_v51, %v1197_v46  ;;  %v2118_v56 = vpop.f32.mrb[40].mxu0  ;;  %v1267_v55 = vmax.f32 %v1235_v45, 0.0 }
 0x2f9   :  { %v1270_v58 = vmax.f32 %v1238_v48, 0.0  ;;  %v1163_v53 = vadd.f32 %v2118_v56, %v2719_v47  ;;  %v1063_v54 = vpop.f32.mrb[41].mxu0 }
 0x2fa   :  { %v1268_v57 = vmax.f32 %v1236_v50, 0.0  ;;  %v1161_v11 = vadd.f32 %v2719_v47, %v1063_v54  ;;  %v2119_v7 = vpop.f32.mrb[42].mxu0 }
 0x2fb   :  { %v1304_v59 = vpack.c.bf16 %v1270_v58, %v1269_v52  ;;  %v1202_v60 = vmul.f32 %v2724_v49, %v1163_v53  ;;  %v1164_v62 = vadd.f32 %v2119_v7, %v2719_v47  ;;  %v1066_v63 = vpop.f32.mrb[43].mxu0 }
 0x2fc   :  { %v1303_v0 = vpack.c.bf16 %v1268_v57, %v1267_v55  ;;  %v1200_v1 = vmul.f32 %v2724_v49, %v1161_v11  ;;  %v1162_v2 = vadd.f32 %v2719_v47, %v1066_v63 }
 0x2fd   :  { %v1241_v3 = vadd.f32 %v2730_v51, %v1202_v60  ;;  %v1203_v4 = vmul.f32 %v2724_v49, %v1164_v62 }
 0x2fe   :  { %v1239_v6 = vadd.f32 %v2730_v51, %v1200_v1  ;;  %v1201_v8 = vmul.f32 %v2724_v49, %v1162_v2  ;;  %2152 = vmatprep.mubr.msk.bf16.mxu1 %vm1346_vm5, %v1303_v0 }
 0x2ff   :  { %v1242_v9 = vadd.f32 %v2730_v51, %v1203_v4  ;;  %2153 = vmatmul.mubr.msk.bf16.gmra.mrb[44].mxu1 %vm1346_vm5, %v1304_v59  ;;  %v1273_v13 = vmax.f32 %v1241_v3, 0.0 }
 0x300   :  { %v1240_v10 = vadd.f32 %v2730_v51, %v1201_v8  ;;  %v2122_v12 = vpop.f32.mrb[44].mxu0  ;;  %v1271_v17 = vmax.f32 %v1239_v6, 0.0 }
 0x301   :  { %v1274_v14 = vmax.f32 %v1242_v9, 0.0  ;;  %v1167_v15 = vadd.f32 %v2122_v12, %v2719_v47  ;;  %v1079_v16 = vpop.f32.mrb[45].mxu0 }
 0x302   :  { %v1272_v18 = vmax.f32 %v1240_v10, 0.0  ;;  %v1165_v19 = vadd.f32 %v2719_v47, %v1079_v16  ;;  %v2123_v20 = vpop.f32.mrb[46].mxu0 }
 0x303   :  { %v1306_v21 = vpack.c.bf16 %v1274_v14, %v1273_v13  ;;  %v1206_v22 = vmul.f32 %v2724_v49, %v1167_v15  ;;  %v1168_v23 = vadd.f32 %v2123_v20, %v2719_v47  ;;  %v1082_v24 = vpop.f32.mrb[47].mxu0 }
 0x304   :  { %v1305_v25 = vpack.c.bf16 %v1272_v18, %v1271_v17  ;;  %v1204_v26 = vmul.f32 %v2724_v49, %v1165_v19  ;;  %v1166_v27 = vadd.f32 %v2719_v47, %v1082_v24 }
 0x305   :  { %v1245_v28 = vadd.f32 %v2730_v51, %v1206_v22  ;;  %v1207_v29 = vmul.f32 %v2724_v49, %v1168_v23 }
 0x306   :  { %v1243_v5 = vadd.f32 %v2730_v51, %v1204_v26  ;;  %v1205_v30 = vmul.f32 %v2724_v49, %v1166_v27  ;;  %2156 = vmatprep.mubr.msk.bf16.mxu1 %vm1346_vm5, %v1305_v25 }
 0x307   :  { %v1246_v31 = vadd.f32 %v2730_v51, %v1207_v29  ;;  %2157 = vmatmul.mubr.msk.bf16.gmra.mrb[48].mxu1 %vm1346_vm5, %v1306_v21  ;;  %v1277_v34 = vmax.f32 %v1245_v28, 0.0 }
 0x308   :  { %v1244_v32 = vadd.f32 %v2730_v51, %v1205_v30  ;;  %v2126_v33 = vpop.f32.mrb[48].mxu0  ;;  %v1275_v38 = vmax.f32 %v1243_v5, 0.0 }
 0x309   :  { %v1278_v35 = vmax.f32 %v1246_v31, 0.0  ;;  %v1171_v36 = vadd.f32 %v2126_v33, %v2719_v47  ;;  %v1095_v37 = vpop.f32.mrb[49].mxu0 }
 0x30a   :  { %v1276_v39 = vmax.f32 %v1244_v32, 0.0  ;;  %v1169_v40 = vadd.f32 %v2719_v47, %v1095_v37  ;;  %v2127_v41 = vpop.f32.mrb[50].mxu0 }
 0x30b   :  { %v1308_v42 = vpack.c.bf16 %v1278_v35, %v1277_v34  ;;  %v1210_v43 = vmul.f32 %v2724_v49, %v1171_v36  ;;  %v1172_v44 = vadd.f32 %v2127_v41, %v2719_v47  ;;  %v1098_v45 = vpop.f32.mrb[51].mxu0 }
 0x30c   :  { %v1307_v46 = vpack.c.bf16 %v1276_v39, %v1275_v38  ;;  %v1208_v48 = vmul.f32 %v2724_v49, %v1169_v40  ;;  %v1170_v50 = vadd.f32 %v2719_v47, %v1098_v45  ;;  %v2248_v45 = vld [vmem:[%s2962_s17] sm:$0xff]  }
 0x30d   :  { %v1249_v56 = vadd.f32 %v2730_v51, %v1210_v43  ;;  %v1211_v52 = vmul.f32 %v2724_v49, %v1172_v44 }
 0x30e   :  { %v1247_v58 = vadd.f32 %v2730_v51, %v1208_v48  ;;  %v1209_v53 = vmul.f32 %v2724_v49, %v1170_v50  ;;  %2160 = vmatprep.mubr.msk.bf16.mxu1 %vm1346_vm5, %v1307_v46  ;;  %v2249_v46 = vld [vmem:[%s2962_s17 + $0x8] sm:$0xff]   ;;  %v2250_v48 = vld [vmem:[%s2962_s17 + $0x10] sm:$0xff]   ;;  %v2251_v50 = vld [vmem:[%s2962_s17 + $0x18] sm:$0xff]  }
 0x30f   :  { %v1250_v54 = vadd.f32 %v2730_v51, %v1211_v52  ;;  %2161 = vmatmul.mubr.msk.bf16.gmra.mrb[52].mxu1 %vm1346_vm5, %v1308_v42  ;;  %v1281_v11 = vmax.f32 %v1249_v56, 0.0  ;;  %v2252_v56 = vld [vmem:[%s2962_s17 + $0x20] sm:$0xff]   ;;  %v2253_v52 = vld [vmem:[%s2962_s17 + $0x28] sm:$0xff]  }
 0x310   :  { %v1248_v55 = vadd.f32 %v2730_v51, %v1209_v53  ;;  %v2130_v57 = vpop.f32.mrb[52].mxu0  ;;  %v1279_v62 = vmax.f32 %v1247_v58, 0.0  ;;  %v2254_v58 = vld [vmem:[%s2962_s17 + $0x30] sm:$0xff]   ;;  %v2255_v53 = vld [vmem:[%s2962_s17 + $0x38] sm:$0xff]  }
 0x311   :  { %v1282_v7 = vmax.f32 %v1250_v54, 0.0  ;;  %v1175_v59 = vadd.f32 %v2130_v57, %v2719_v47  ;;  %v1111_v60 = vpop.f32.mrb[53].mxu0  ;;  %v2891_v54 = vld [vmem:[%s2963_s14] ss:$0 sm:$0xff] }
 0x312   :  { %v1280_v63 = vmax.f32 %v1248_v55, 0.0  ;;  %v1173_v0 = vadd.f32 %v2719_v47, %v1111_v60  ;;  %v2131_v1 = vpop.f32.mrb[54].mxu0 }
 0x313   :  { %v1310_v2 = vpack.c.bf16 %v1282_v7, %v1281_v11  ;;  %v1214_v3 = vmul.f32 %v2724_v49, %v1175_v59  ;;  %v1176_v4 = vadd.f32 %v2131_v1, %v2719_v47  ;;  %v1114_v6 = vpop.f32.mrb[55].mxu0 }
 0x314   :  { %v1309_v8 = vpack.c.bf16 %v1280_v63, %v1279_v62  ;;  %v1212_v9 = vmul.f32 %v2724_v49, %v1173_v0  ;;  %v1174_v10 = vadd.f32 %v2719_v47, %v1114_v6 }
 0x315   :  { %v1253_v12 = vadd.f32 %v2730_v51, %v1214_v3  ;;  %v1215_v13 = vmul.f32 %v2724_v49, %v1176_v4 }
 0x316   :  { %v1251_v14 = vadd.f32 %v2730_v51, %v1212_v9  ;;  %v1213_v15 = vmul.f32 %v2724_v49, %v1174_v10  ;;  %2164 = vmatprep.mubr.msk.bf16.mxu1 %vm1346_vm5, %v1309_v8 }
 0x317   :  { %v1254_v16 = vadd.f32 %v2730_v51, %v1215_v13  ;;  %2165 = vmatmul.mubr.msk.bf16.gmra.mrb[56].mxu1 %vm1346_vm5, %v1310_v2  ;;  %v1285_v19 = vmax.f32 %v1253_v12, 0.0 }
 0x318   :  { %v1252_v17 = vadd.f32 %v2730_v51, %v1213_v15  ;;  %v2134_v18 = vpop.f32.mrb[56].mxu0  ;;  %v1283_v23 = vmax.f32 %v1251_v14, 0.0 }
 0x319   :  { %v1286_v20 = vmax.f32 %v1254_v16, 0.0  ;;  %v1179_v21 = vadd.f32 %v2134_v18, %v2719_v47  ;;  %v1127_v22 = vpop.f32.mrb[57].mxu0 }
 0x31a   :  { %v1284_v24 = vmax.f32 %v1252_v17, 0.0  ;;  %v1177_v25 = vadd.f32 %v2719_v47, %v1127_v22  ;;  %v2135_v26 = vpop.f32.mrb[58].mxu0 }
 0x31b   :  { %v1312_v27 = vpack.c.bf16 %v1286_v20, %v1285_v19  ;;  %v1218_v28 = vmul.f32 %v2724_v49, %v1179_v21  ;;  %v1180_v29 = vadd.f32 %v2135_v26, %v2719_v47  ;;  %v1130_v5 = vpop.f32.mrb[59].mxu0 }
 0x31c   :  { %v1311_v30 = vpack.c.bf16 %v1284_v24, %v1283_v23  ;;  %v1216_v31 = vmul.f32 %v2724_v49, %v1177_v25  ;;  %v1178_v32 = vadd.f32 %v2719_v47, %v1130_v5 }
 0x31d   :  { %v1257_v33 = vadd.f32 %v2730_v51, %v1218_v28  ;;  %v1219_v34 = vmul.f32 %v2724_v49, %v1180_v29 }
 0x31e   :  { %v1255_v35 = vadd.f32 %v2730_v51, %v1216_v31  ;;  %v1217_v36 = vmul.f32 %v2724_v49, %v1178_v32  ;;  %2168 = vmatprep.mubr.msk.bf16.mxu1 %vm1346_vm5, %v1311_v30  ;;  %v1588_v49 = vld [vmem:[%s2961_s1] sm:$0xff] }
 0x31f   :  { %v1258_v37 = vadd.f32 %v2730_v51, %v1219_v34  ;;  %2169 = vmatmul.mubr.msk.bf16.gmra.mrb[60].mxu1 %vm1346_vm5, %v1312_v27  ;;  %v1289_v39 = vmax.f32 %v1257_v33, 0.0 }
 0x320   :  { %v1256_v38 = vadd.f32 %v2730_v51, %v1217_v36  ;;  %v1287_v41 = vmax.f32 %v1255_v35, 0.0  ;;  %v1589_v51 = vld [vmem:[%s2961_s1 + $0x8] sm:$0xff] }
 0x321   :  { %v1290_v40 = vmax.f32 %v1258_v37, 0.0  ;;  %v1591_v44 = vpack.c.bf16 %v1589_v51, %v1588_v49 }
 0x322   :  { %v1288_v47 = vmax.f32 %v1256_v38, 0.0 }
 0x323   :  { %v1314_v42 = vpack.c.bf16 %v1290_v40, %v1289_v39 }
 0x324   :  { %v1313_v43 = vpack.c.bf16 %v1288_v47, %v1287_v41 }
 0x326   :  { %2172 = vmatprep.mubr.msk.bf16.mxu1 %vm1346_vm5, %v1313_v43 }
 0x327   :  { %2173 = vmatmul.mubr.msk.bf16.gmra.mrb[64].mxu1 %vm1346_vm5, %v1314_v42 }
 0x328   :  { %2178 = vmatprep.mubr.msk.bf16.mxu1 %vm2262_vm6, %v2261_v61 }
 0x32f   :  { %2179 = vmatmul.mubr.msk.bf16.vlgmr.msra.gmra.mrb[68].mxu1 %vm121_vm2, %v1591_v44 }
 0x330   :  { %2198 = vmatprep.mubr.msk.bf16.mxu1 %vm2262_vm6, %v2261_v61  ;;  %2183 = vmatpush3.bf16.msra.mxu1 %v2248_v45 }
 0x331   :  { %2184 = vmatprep.subr.bf16.mxu1 %v2261_v61 }
 0x334   :  { %2185 = vmatpush3.bf16.msra.mxu1 %v2249_v46 }
 0x335   :  { %2186 = vmatprep.subr.bf16.mxu1 %v2261_v61 }
 0x338   :  { %2187 = vmatpush3.bf16.msra.mxu1 %v2250_v48 }
 0x339   :  { %2188 = vmatprep.subr.bf16.mxu1 %v2261_v61 }
 0x33c   :  { %2189 = vmatpush3.bf16.msra.mxu1 %v2251_v50 }
 0x33d   :  { %2190 = vmatprep.subr.bf16.mxu1 %v2261_v61 }
 0x340   :  { %2191 = vmatpush3.bf16.msra.mxu1 %v2252_v56 }
 0x341   :  { %2192 = vmatprep.subr.bf16.mxu1 %v2261_v61 }
 0x344   :  { %2193 = vmatpush3.bf16.msra.mxu1 %v2253_v52 }
 0x345   :  { %2194 = vmatprep.subr.bf16.mxu1 %v2261_v61 }
 0x348   :  { %2195 = vmatpush3.bf16.msra.mxu1 %v2254_v58 }
 0x349   :  { %2196 = vmatprep.subr.bf16.mxu1 %v2261_v61 }
 0x34c   :  { %2197 = vmatpush3.bf16.msra.mxu1 %v2255_v53 }
 0x3c2   :  { %v2146_v55 = vpop.f32.mrb[36].mxu1 }
 0x3c3   :  { %v1438_v57 = vadd.f32 %v2146_v55, %v2891_v54  ;;  %v1429_v11 = vpop.f32.mrb[37].mxu1 }
 0x3c4   :  { %v1430_v7 = vadd.f32 %v2891_v54, %v1429_v11  ;;  %v2147_v59 = vpop.f32.mrb[38].mxu1 }
 0x3c5   :  { %v1441_v60 = vadd.f32 %v2147_v59, %v2891_v54  ;;  %v1432_v62 = vpop.f32.mrb[39].mxu1 }
 0x3c6   :  { %v1556_v63 = vmax.f32 %v1430_v7, %v1438_v57  ;;  %v1433_v0 = vadd.f32 %v2891_v54, %v1432_v62 }
 0x3c8   :  { %v1557_v61 = vmax.f32 %v1433_v0, %v1441_v60 }
 0x3ca   :  { %v2150_v1 = vpop.f32.mrb[40].mxu1 }
 0x3cb   :  { %v1445_v2 = vpop.f32.mrb[41].mxu1  ;;  %v1454_v8 = vadd.f32 %v2150_v1, %v2891_v54 }
 0x3cc   :  { %v1446_v3 = vadd.f32 %v2891_v54, %v1445_v2  ;;  %v2151_v4 = vpop.f32.mrb[42].mxu1 }
 0x3cd   :  { %v1448_v6 = vpop.f32.mrb[43].mxu1  ;;  %v1457_v12 = vadd.f32 %v2151_v4, %v2891_v54 }
 0x3ce   :  { %v1558_v9 = vmax.f32 %v1556_v63, %v1446_v3  ;;  %v1449_v10 = vadd.f32 %v2891_v54, %v1448_v6 }
 0x3d0   :  { %v1559_v13 = vmax.f32 %v1557_v61, %v1449_v10  ;;  %v1560_v14 = vmax.f32 %v1558_v9, %v1454_v8 }
 0x3d2   :  { %v2154_v15 = vpop.f32.mrb[44].mxu1  ;;  %v1561_v16 = vmax.f32 %v1559_v13, %v1457_v12 }
 0x3d3   :  { %v1461_v17 = vpop.f32.mrb[45].mxu1  ;;  %v1470_v21 = vadd.f32 %v2154_v15, %v2891_v54 }
 0x3d4   :  { %v1462_v18 = vadd.f32 %v2891_v54, %v1461_v17  ;;  %v2155_v19 = vpop.f32.mrb[46].mxu1 }
 0x3d5   :  { %v1464_v20 = vpop.f32.mrb[47].mxu1  ;;  %v1473_v24 = vadd.f32 %v2155_v19, %v2891_v54 }
 0x3d6   :  { %v1562_v22 = vmax.f32 %v1560_v14, %v1462_v18  ;;  %v1465_v23 = vadd.f32 %v2891_v54, %v1464_v20 }
 0x3d8   :  { %v1563_v25 = vmax.f32 %v1561_v16, %v1465_v23  ;;  %v1564_v26 = vmax.f32 %v1562_v22, %v1470_v21 }
 0x3da   :  { %v2158_v27 = vpop.f32.mrb[48].mxu1  ;;  %v1565_v28 = vmax.f32 %v1563_v25, %v1473_v24  ;;  %v1884_v24 = vld [vmem:[%s2964_s16] ss:$0 sm:$0xff] }
 0x3db   :  { %v1477_v29 = vpop.f32.mrb[49].mxu1  ;;  %v1486_v32 = vadd.f32 %v2158_v27, %v2891_v54 }
 0x3dc   :  { %v1478_v5 = vadd.f32 %v2891_v54, %v1477_v29  ;;  %v2159_v30 = vpop.f32.mrb[50].mxu1 }
 0x3dd   :  { %v1480_v31 = vpop.f32.mrb[51].mxu1  ;;  %v1489_v35 = vadd.f32 %v2159_v30, %v2891_v54 }
 0x3de   :  { %v1566_v33 = vmax.f32 %v1564_v26, %v1478_v5  ;;  %v1481_v34 = vadd.f32 %v2891_v54, %v1480_v31 }
 0x3e0   :  { %v1567_v36 = vmax.f32 %v1565_v28, %v1481_v34  ;;  %v1568_v37 = vmax.f32 %v1566_v33, %v1486_v32 }
 0x3e2   :  { %v2162_v38 = vpop.f32.mrb[52].mxu1  ;;  %v1569_v39 = vmax.f32 %v1567_v36, %v1489_v35 }
 0x3e3   :  { %v1493_v40 = vpop.f32.mrb[53].mxu1  ;;  %v1502_v43 = vadd.f32 %v2162_v38, %v2891_v54 }
 0x3e4   :  { %v1494_v41 = vadd.f32 %v2891_v54, %v1493_v40  ;;  %v2163_v47 = vpop.f32.mrb[54].mxu1 }
 0x3e5   :  { %v1496_v42 = vpop.f32.mrb[55].mxu1  ;;  %v1505_v44 = vadd.f32 %v2163_v47, %v2891_v54 }
 0x3e6   :  { %v1570_v49 = vmax.f32 %v1568_v37, %v1494_v41  ;;  %v1497_v51 = vadd.f32 %v2891_v54, %v1496_v42 }
 0x3e8   :  { %v1571_v45 = vmax.f32 %v1569_v39, %v1497_v51  ;;  %v1572_v46 = vmax.f32 %v1570_v49, %v1502_v43 }
 0x3ea   :  { %v2166_v48 = vpop.f32.mrb[56].mxu1  ;;  %v1573_v50 = vmax.f32 %v1571_v45, %v1505_v44 }
 0x3eb   :  { %v1509_v56 = vpop.f32.mrb[57].mxu1  ;;  %v1518_v55 = vadd.f32 %v2166_v48, %v2891_v54 }
 0x3ec   :  { %v1510_v52 = vadd.f32 %v2891_v54, %v1509_v56  ;;  %v2167_v58 = vpop.f32.mrb[58].mxu1 }
 0x3ed   :  { %v1512_v53 = vpop.f32.mrb[59].mxu1  ;;  %v1521_v7 = vadd.f32 %v2167_v58, %v2891_v54 }
 0x3ee   :  { %v1574_v57 = vmax.f32 %v1572_v46, %v1510_v52  ;;  %v1513_v11 = vadd.f32 %v2891_v54, %v1512_v53  ;;  %v1886_v46 = vld [vmem:[%s2966_s18] ss:$0 sm:$0xff] }
 0x3f0   :  { %v1575_v59 = vmax.f32 %v1573_v50, %v1513_v11  ;;  %v1576_v60 = vmax.f32 %v1574_v57, %v1518_v55 }
 0x3f2   :  { %v2170_v62 = vpop.f32.mrb[60].mxu1  ;;  %v1577_v63 = vmax.f32 %v1575_v59, %v1521_v7 }
 0x3f3   :  { %v1525_v0 = vpop.f32.mrb[61].mxu1  ;;  %v1534_v3 = vadd.f32 %v2170_v62, %v2891_v54 }
 0x3f4   :  { %v1526_v61 = vadd.f32 %v2891_v54, %v1525_v0  ;;  %v2171_v1 = vpop.f32.mrb[62].mxu1 }
 0x3f5   :  { %v1528_v2 = vpop.f32.mrb[63].mxu1  ;;  %v1537_v8 = vadd.f32 %v2171_v1, %v2891_v54 }
 0x3f6   :  { %v1578_v4 = vmax.f32 %v1576_v60, %v1526_v61  ;;  %v1529_v6 = vadd.f32 %v2891_v54, %v1528_v2 }
 0x3f8   :  { %v1579_v9 = vmax.f32 %v1577_v63, %v1529_v6  ;;  %v1580_v10 = vmax.f32 %v1578_v4, %v1534_v3 }
 0x3fa   :  { %v2174_v12 = vpop.f32.mrb[64].mxu1  ;;  %v1581_v13 = vmax.f32 %v1579_v9, %v1537_v8 }
 0x3fb   :  { %v1541_v14 = vpop.f32.mrb[65].mxu1  ;;  %v1550_v18 = vadd.f32 %v2174_v12, %v2891_v54 }
 0x3fc   :  { %v1542_v15 = vadd.f32 %v2891_v54, %v1541_v14  ;;  %v2175_v16 = vpop.f32.mrb[66].mxu1 }
 0x3fd   :  { %v1544_v17 = vpop.f32.mrb[67].mxu1  ;;  %v1553_v22 = vadd.f32 %v2175_v16, %v2891_v54 }
 0x3fe   :  { %v1582_v19 = vmax.f32 %v1580_v10, %v1542_v15  ;;  %v1545_v20 = vadd.f32 %v2891_v54, %v1544_v17 }
 0x400   :  { %v1584_v21 = vmax.f32 %v1582_v19, %v1550_v18  ;;  %v1583_v23 = vmax.f32 %v1581_v13, %v1545_v20 }
 0x402   :  { %1586 = vst.msk [vmem:[%s2965_s19] sm:$0xff] %vm756_vm4, %v1584_v21  ;;  %v1585_v25 = vmax.f32 %v1583_v23, %v1553_v22  ;;  %v1639_v26 = vpop.f32.mrb[68].mxu1 }
 0x403   :  { %v1640_v27 = vadd.f32 %v1884_v24, %v1639_v26  ;;  %v2180_v28 = vpop.f32.mrb[69].mxu1 }
 0x404   :  { %1587 = vst.msk [vmem:[%s2965_s19 + $0x8] sm:$0xff] %vm756_vm4, %v1585_v25  ;;  %v1642_v54 = vpop.f32.mrb[70].mxu1 }
 0x405   :  { %v1648_v29 = vmul.f32 0.044715, %v1640_v27  ;;  %v1643_v5 = vadd.f32 %v1884_v24, %v1642_v54  ;;  %v2181_v30 = vpop.f32.mrb[71].mxu1  ;;  %v1646_v42 = vmul.f32 0.5, %v1640_v27 }
 0x407   :  { %v1650_v31 = vmul.f32 %v1648_v29, %v1640_v27  ;;  %v1649_v32 = vmul.f32 0.044715, %v1643_v5  ;;  %v1647_v43 = vmul.f32 0.5, %v1643_v5 }
 0x409   :  { %v1652_v33 = vmul.f32 %v1650_v31, %v1640_v27  ;;  %v1651_v34 = vmul.f32 %v1649_v32, %v1643_v5 }
 0x40b   :  { %v1654_v35 = vadd.f32 %v1652_v33, %v1640_v27  ;;  %v1653_v36 = vmul.f32 %v1651_v34, %v1643_v5 }
 0x40d   :  { %v1656_v37 = vmul.f32 0.7978846, %v1654_v35  ;;  %v1655_v38 = vadd.f32 %v1653_v36, %v1643_v5 }
 0x40f   :  { %2256 = vtanh.f32 %v1656_v37  ;;  %v1657_v39 = vmul.f32 0.7978846, %v1655_v38 }
 0x411   :  { %2258 = vtanh.f32 %v1657_v39 }
 0x419   :  { %v2257_v40 = vpop.eup %2256 }
 0x41a   :  { %v1660_v41 = vadd.f32 1.0, %v2257_v40 }
 0x41b   :  { %v2259_v47 = vpop.eup %2258 }
 0x41c   :  { %v1661_v49 = vadd.f32 1.0, %v2259_v47  ;;  %v1662_v51 = vmul.f32 %v1660_v41, %v1646_v42 }
 0x41e   :  { %v1663_v44 = vmul.f32 %v1661_v49, %v1647_v43 }
 0x420   :  { %v1680_v45 = vpack.c.bf16 %v1663_v44, %v1662_v51 }
 0x422   :  { %2199 = vmatmul.mubr.bf16.vlgmr.msra.gmra.mrb[72].mxu1 %v1680_v45 }
 0x4f5   :  { %v1770_v48 = vpop.f32.mrb[72].mxu1 }
 0x4f6   :  { %v1771_v50 = vadd.f32 %v1886_v46, %v1770_v48  ;;  %v2200_v56 = vpop.f32.mrb[73].mxu1 }
 0x4f7   :  { %v1773_v52 = vpop.f32.mrb[74].mxu1 }
 0x4f8   :  { %1777 = vst.msk [vmem:[%s2967_s20] sm:$0xff] %vm756_vm4, %v1771_v50  ;;  %v1774_v58 = vadd.f32 %v1886_v46, %v1773_v52  ;;  %v2201_v53 = vpop.f32.mrb[75].mxu1 }
 0x4fa   :  { %1778 = vst.msk [vmem:[%s2967_s20 + $0x8] sm:$0xff] %vm756_vm4, %v1774_v58 }

// kernel: encoder_forward.3
= control target key start
LH: loop header
LB: loop body
LE: loop exit
PB: predicated region body
PF: predicated region fallthrough
CT: control target
= control target key end

     0   :  { %s5821_s0 = inlined_call_operand.vmem [shape: f32[2,9,32], index: 0, kind: input, shape index: {}]   ;;  %s5822_s1 = inlined_call_operand.vmem [shape: f32[2,9,32], index: 1, kind: input, shape index: {}]   ;;  %s5823_s2 = inlined_call_operand.vmem [shape: f32[2,1,32], index: 2, kind: input, shape index: {}]   ;;  %s5824_s3 = inlined_call_operand.vmem [shape: f32[2,1,32], index: 3, kind: input, shape index: {}]   ;;  %s5825_s4 = inlined_call_operand.vmem [shape: bf16[2,32,96], index: 4, kind: input, shape index: {}]   ;;  %s5826_s5 = inlined_call_operand.vmem [shape: f32[2,1,96], index: 5, kind: input, shape index: {}]   ;;  %s5827_s6 = inlined_call_operand.vmem [shape: f32[2,32,32], index: 6, kind: input, shape index: {}]   ;;  %s5828_s7 = inlined_call_operand.vmem [shape: f32[2,1,32], index: 7, kind: input, shape index: {}]   ;;  %s5829_s8 = inlined_call_operand.vmem [shape: f32[2,1,32], index: 8, kind: input, shape index: {}]   ;;  %s5830_s9 = inlined_call_operand.vmem [shape: f32[2,1,32], index: 9, kind: input, shape index: {}]   ;;  %s5831_s10 = inlined_call_operand.vmem [shape: bf16[2,32,128], index: 10, kind: input, shape index: {}]   ;;  %s5832_s11 = inlined_call_operand.vmem [shape: f32[2,1,128], index: 11, kind: input, shape index: {}]   ;;  %s5833_s12 = inlined_call_operand.vmem [shape: bf16[2,64,32], index: 12, kind: input, shape index: {}]   ;;  %s5834_s13 = inlined_call_operand.vmem [shape: f32[2,1,32], index: 13, kind: input, shape index: {}]   ;;  %s5835_s14 = inlined_call_operand.vmem [shape: f32[1,32], index: 14, kind: input, shape index: {}]   ;;  %s5836_s15 = inlined_call_operand.vmem [shape: f32[1,32], index: 15, kind: input, shape index: {}]   ;;  %s5837_s16 = inlined_call_operand.vmem [shape: bf16[32,64], index: 16, kind: input, shape index: {}]   ;;  %s5838_s17 = inlined_call_operand.vmem [shape: f32[1,64], index: 17, kind: input, shape index: {}]   ;;  %s5839_s18 = inlined_call_operand.vmem [shape: bf16[64,64], index: 18, kind: input, shape index: {}]   ;;  %s5840_s19 = inlined_call_operand.vmem [shape: f32[1,64], index: 19, kind: input, shape index: {}]   ;;  %s5841_s20 = inlined_call_operand.vmem [shape: bf16[64,32], index: 20, kind: input, shape index: {}]   ;;  %s5842_s21 = inlined_call_operand.vmem [shape: f32[1,32], index: 21, kind: input, shape index: {}]   ;;  %s5843_s22 = inlined_call_operand.vmem [shape: bf16[32,64], index: 22, kind: input, shape index: {}]   ;;  %s5844_s23 = inlined_call_operand.vmem [shape: f32[2,9,64], index: 23, kind: output, shape index: {}]  }
   0x1   :  { %5867 = sst [smem:[#allocation2_spill]] %s5821_s0 }
   0x2   :  { %5868 = sst [smem:[#allocation3_spill]] %s5822_s1 }
   0x3   :  { %5869 = sst [smem:[#allocation4_spill]] %s5823_s2 }
   0x4   :  { %5870 = sst [smem:[#allocation5_spill]] %s5824_s3 }
   0x5   :  { %5871 = sst [smem:[#allocation6_spill]] %s5825_s4  ;;  %s5262_s4 = smov 0  }
   0x6   :  { %5872 = sst [smem:[#allocation7_spill]] %s5826_s5 }
   0x7   :  { %5873 = sst [smem:[#allocation8_spill]] %s5827_s6 }
   0x8   :  { %5874 = sst [smem:[#allocation9_spill]] %s5828_s7 }
   0x9 LB: > { %s4213_s30 = sadd.s32 4294967295, %s5126_s4   ;;  %p4217_p0 = scmp.ge.s32.totalorder %s5126_s4, 1  ;;  %s5126_s4 = sphi %s5262_s4, %s33_s4  }
   0xa   : > { %p647_p1 = scmp.lt.s32.totalorder %s5126_s4, 3 }
   0xc   : > { %p648_p2 = pnand %p4217_p0, %p647_p1 }
   0xd   : > { %p716_p3 = scmp.lt.s32.totalorder (!%p648_p2), %s4213_s30, 1  ;;  %s5875_s1 = sld [smem:[#allocation2_spill]] (!%p648_p2)  ;;  %vm740_vm0 = vcmask (!%p648_p2), 261120   ;;  %vm744_vm1 = vcmask (!%p648_p2), 253952   ;;  %v5128_v19 = vmov (!%p648_p2), 0.0   ;;  %vm5129_vm2 = vmmov (!%p648_p2), 0  }
   0xe   : > { %651 = sbr.rel (%p648_p2) target bundleno = 7973 (0x1f25), region = 112  ;;  %s5876_s27 = sld [smem:[#allocation3_spill]] (!%p648_p2)  ;;  %4518 = vmatprep.subr.bf16.mxu0 (!%p648_p2), %v5128_v19  ;;  %4522 = vmatprep.mubr.msk.bf16.mxu0 (!%p648_p2), %vm5129_vm2, %v5128_v19  ;;  %vm863_vm3 = vcmask (!%p648_p2), 64512   ;;  %vm953_vm5 = vcmask (!%p648_p2), 65536   ;;  %vm949_vm6 = vcmask (!%p648_p2), 72704   ;;  %vm984_vm7 = vcmask (!%p648_p2), 1040384  }
   0xf   : > { %s5877_s3 = sld [smem:[#allocation6_spill]] (!%p648_p2)  ;;  %s5879_s6 = sld [smem:[#allocation5_spill]] (!%p648_p2)  ;;  %vm5338_vm4 = vmpackc.low (!%p648_p2), %vm863_vm3, %vm863_vm3  ;;  %vm5139_vm8 = vmmov (!%p648_p2), 1   ;;  %vm2179_vm10 = vcmask (!%p648_p2), 523264   ;;  %vm4144_vm15 = vcmask (!%p648_p2), 516096  }
  0x10   : > { %s5880_s28 = sld [smem:[#allocation7_spill]] (!%p648_p2)  ;;  %s5863_s29 = smov (!%p648_p2), 88   ;;  %vm5378_vm9 = vmpackc.low (!%p648_p2), %vm984_vm7, %vm5139_vm8 }
  0x11   : > { %s5862_s0 = smov (!%p648_p2), 96   ;;  %s5857_s25 = smov (!%p648_p2), 56  }
  0x12   : > { %s5864_s5 = smov (!%p648_p2), 64   ;;  %s5854_s2 = smov (!%p648_p2), 112  }
  0x15   : > { %s5899_s30 = smov (!%p716_p3, %s4213_s30), 1  ;;  %v4976_v18 = vld [vmem:[%s5877_s3] sm:$0xff]   ;;  %v4977_v20 = vld [vmem:[%s5877_s3 + $0x8] sm:$0xff]  }
  0x16   : > { %s5270_s24 = sshll.u32 %s5899_s30, 4  ;;  %4519 = vmatpush3.bf16.msra.mxu0 %v4976_v18  ;;  %v4225_v33 = vld [vmem:[%s5879_s6] ss:$0 sm:$0xff]  ;;  %s5860_s30 = smov 120  }
  0x17   : > { %s720_s26 = scalar_lea.vmem %s5875_s1, %s5270_s24  ;;  %s725_s7 = scalar_lea.vmem %s5876_s27, %s5270_s24  ;;  %4520 = vmatprep.subr.bf16.mxu0 %v5128_v19  ;;  %v4226_v38 = vld [vmem:[%s5880_s28] ss:$0 sm:$0xff] }
  0x18   : > { %v732_v0 = vld [vmem:[%s720_s26] sm:$0xff]  ;;  %v733_v2 = vld [vmem:[%s720_s26 + $0x8] sm:$0x1]  ;;  %s5878_s1 = sld [smem:[#allocation4_spill]]  ;;  %s5856_s26 = smov 80  }
  0x19   : > { %v5280_v1 = vld [vmem:[%s725_s7] sm:$0xff]  ;;  %v5285_v4 = vld [vmem:[%s725_s7 + $0x8] sm:$0x1]  ;;  %s5852_s27 = smov 104   ;;  %s5851_s7 = smov 72  }
  0x1a   : > { %v5283_v3 = vadd.f32 %v5280_v1, %v732_v0  ;;  %v5288_v5 = vadd.f32 %v5285_v4, %v733_v2  ;;  %4521 = vmatpush3.bf16.msra.mxu0 %v4977_v20 }
  0x1c   : > { %v741_v6 = vsel %vm740_vm0, %v5283_v3, 0.0  ;;  %v745_v7 = vsel %vm744_vm1, %v5288_v5, 0.0 }
  0x1d   : > { %742 = vadd.xlane.f32.xlu0 %v741_v6 }
  0x1e   : > { %v4224_v29 = vld [vmem:[%s5878_s1] ss:$0 sm:$0xff] }
  0x21   : > { %746 = vadd.xlane.f32.xlu0 %v745_v7 }
  0xaa   : > { %v743_v8 = vpop.xlane.xlu0 %742 }
  0xab   : > { %v749_v9 = vmul.f32 0.03125, %v743_v8 }
  0xad   : > { %v751_v10 = vsub.f32 %v5283_v3, %v749_v9 }
  0xae   : > { %v747_v11 = vpop.xlane.xlu0 %746 }
  0xaf   : > { %v750_v12 = vmul.f32 0.03125, %v747_v11  ;;  %v753_v13 = vmul.f32 %v751_v10, %v751_v10 }
  0xb1   : > { %v752_v14 = vsub.f32 %v5288_v5, %v750_v12  ;;  %v755_v15 = vsel %vm740_vm0, %v753_v13, 0.0 }
  0xb2   : > { %756 = vadd.xlane.f32.xlu1 %v755_v15 }
  0xb3   : > { %v754_v16 = vmul.f32 %v752_v14, %v752_v14 }
  0xb5   : > { %v758_v17 = vsel %vm744_vm1, %v754_v16, 0.0 }
  0xb6   : > { %759 = vadd.xlane.f32.xlu1 %v758_v17 }
 0x13f   : > { %v757_v21 = vpop.xlane.xlu1 %756 }
 0x140   : > { %v761_v22 = vmul.f32 0.03125, %v757_v21 }
 0x142   : > { %v763_v23 = vadd.f32 1e-05, %v761_v22 }
 0x143   : > { %v760_v24 = vpop.xlane.xlu1 %759 }
 0x144   : > { %5004 = vrsqrt.f32 %v763_v23  ;;  %v762_v25 = vmul.f32 0.03125, %v760_v24 }
 0x146   : > { %v764_v26 = vadd.f32 1e-05, %v762_v25 }
 0x148   : > { %5006 = vrsqrt.f32 %v764_v26 }
 0x14e   : > { %v5005_v27 = vpop.eup %5004 }
 0x14f   : > { %v767_v28 = vmul.f32 %v5005_v27, %v751_v10 }
 0x151   : > { %v775_v32 = vmul.f32 %v4224_v29, %v767_v28 }
 0x152   : > { %v5007_v30 = vpop.eup %5006 }
 0x153   : > { %v768_v31 = vmul.f32 %v5007_v30, %v752_v14  ;;  %v783_v35 = vadd.f32 %v4225_v33, %v775_v32 }
 0x155   : > { %v776_v34 = vmul.f32 %v4224_v29, %v768_v31 }
 0x157   : > { %v784_v36 = vadd.f32 %v4225_v33, %v776_v34 }
 0x159   : > { %v789_v37 = vpack.c.bf16 %v784_v36, %v783_v35 }
 0x15b   : > { %4523 = vmatmul.mubr.msk.bf16.vlgmr.msra.gmra.mrb[0].mxu0 %vm740_vm0, %v789_v37 }
 0x22e   : > { %v846_v39 = vpop.f32.mrb[0].mxu0 }
 0x22f   : > { %v5318_v40 = vadd.f32 %v4226_v38, %v846_v39  ;;  %v4524_v41 = vpop.f32.mrb[1].mxu0 }
 0x230   : > { %v849_v42 = vpop.f32.mrb[2].mxu0 }
 0x231   : > { %v5320_v43 = vadd.f32 %v4226_v38, %v849_v42  ;;  %v4525_v44 = vpop.f32.mrb[3].mxu0  ;;  %4530 = vmatprep.mubr.msk.f32.mxu1 %vm863_vm3, %v5318_v40 }
 0x233   : > { %v5326_v45 = vpack.i.bf16 %v5320_v43, %v5318_v40 }
 0x235   : > { %4902 = vrot.lane.b32.xlu1 %v5326_v45, %s5863_s29  ;;  %4897 = vrot.lane.b32.xlu0 %v5326_v45, %s5862_s0  ;;  %s5891_s29 = smov 56   ;;  %s5892_s0 = smov 80  }
 0x239   : > { %1062 = vrot.lane.b32.xlu1 %v5318_v40, %s5860_s30 }
 0x23d   : > { %1064 = vrot.lane.b32.xlu1 %v5320_v43, %s5860_s30  ;;  %s5889_s30 = smov 96  }
 0x2a7   : > { %v4903_v46 = vpop.permute.xlu1 %4902  ;;  %v4898_v47 = vpop.permute.xlu0 %4897 }
 0x2a8   : > { %v4905_v48 = vunpack.i.h.bf16 %v4903_v46  ;;  %v4904_v49 = vunpack.i.l.bf16 %v4903_v46  ;;  %v4900_v50 = vunpack.i.h.bf16 %v4898_v47  ;;  %v4899_v51 = vunpack.i.l.bf16 %v4898_v47 }
 0x2aa   : > { %v4778_v53 = vpack.c.bf16 %v4905_v48, %v4904_v49  ;;  %v4766_v54 = vpack.c.bf16 %v4900_v50, %v4899_v51 }
 0x2ab   : > { %v1063_v55 = vpop.permute.xlu1 %1062 }
 0x2ac   : > { %4768 = vmatprep.subr.msk.bf16.mxu1 %vm5338_vm4, %v4766_v54  ;;  %4780 = vmatprep.subr.msk.bf16.mxu0 %vm5338_vm4, %v4778_v53 }
 0x2ad   : > { %4544 = vmatprep.mubr.msk.f32.mxu0 %vm863_vm3, %v1063_v55  ;;  %4771 = vmatpush3.bf16.xpose.msk.msra.mxu1 %vm5338_vm4, %v4766_v54 }
 0x2ae   : > { %4783 = vmatpush3.bf16.xpose.msk.msra.mxu0 %vm5338_vm4, %v4778_v53 }
 0x2af   : > { %v1065_v56 = vpop.permute.xlu1 %1064 }
 0x2b4   : > { %4531 = vmatmul.mubr.msk.f32.vlgmr.msra.gmra.mrb[0].mxu1 %vm863_vm3, %v5320_v43 }
 0x2b5   : > { %4545 = vmatmul.mubr.msk.f32.vlgmr.msra.gmra.mrb[4].mxu0 %vm863_vm3, %v1065_v56 }
 0x387   : > { %v4532_v57 = vpop.f32.mrb[0].mxu1 }
 0x388   : > { %v948_v58 = vmul.f32 0.35355338, %v4532_v57  ;;  %v4546_v59 = vpop.f32.mrb[4].mxu0  ;;  %v938_v60 = vpop.f32.mrb[1].mxu1 }
 0x389   : > { %v947_v61 = vmul.f32 0.35355338, %v938_v60  ;;  %v1144_v62 = vpop.f32.mrb[5].mxu0  ;;  %v1154_v6 = vmul.f32 0.35355338, %v4546_v59 }
 0x38a   : > { %v954_v63 = vsel %vm953_vm5, %v948_v58, -inf  ;;  %v1153_v0 = vmul.f32 0.35355338, %v1144_v62 }
 0x38b   : > { %955 = vmax.xlane.f32.xlu1 %v954_v63  ;;  %v950_v2 = vsel %vm949_vm6, %v947_v61, -inf  ;;  %v1158_v8 = vsel %vm953_vm5, %v1154_v6, -inf }
 0x38c   : > { %951 = vmax.xlane.f32.xlu0 %v950_v2  ;;  %v1155_v7 = vsel %vm949_vm6, %v1153_v0, -inf }
 0x390   : > { %1156 = vmax.xlane.f32.xlu0 %v1155_v7 }
 0x394   : > { %1159 = vmax.xlane.f32.xlu0 %v1158_v8 }
 0x418   : > { %v956_v9 = vpop.xlane.xlu1 %955 }
 0x419   : > { %v958_v10 = vsub.f32 %v948_v58, %v956_v9  ;;  %v952_v11 = vpop.xlane.xlu0 %951 }
 0x41a   : > { %v957_v12 = vsub.f32 %v947_v61, %v952_v11 }
 0x41b   : > { %v961_v13 = vmul.f32 1.442695, %v958_v10 }
 0x41c   : > { %v959_v14 = vmul.f32 1.442695, %v957_v12 }
 0x41d   : > { %5008 = vpow2.f32 %v961_v13  ;;  %v1157_v15 = vpop.xlane.xlu0 %1156 }
 0x41e   : > { %5010 = vpow2.f32 %v959_v14  ;;  %v1161_v16 = vsub.f32 %v1153_v0, %v1157_v15 }
 0x420   : > { %v1163_v17 = vmul.f32 1.442695, %v1161_v16 }
 0x421   : > { %v1160_v18 = vpop.xlane.xlu0 %1159 }
 0x422   : > { %5012 = vpow2.f32 %v1163_v17  ;;  %v1162_v20 = vsub.f32 %v1154_v6, %v1160_v18 }
 0x424   : > { %v1165_v21 = vmul.f32 1.442695, %v1162_v20 }
 0x426   : > { %5014 = vpow2.f32 %v1165_v21 }
 0x427   : > { %v5009_v22 = vpop.eup %5008 }
 0x428   : > { %v5011_v23 = vpop.eup %5010  ;;  %v966_v24 = vsel %vm953_vm5, %v5009_v22, 0.0 }
 0x429   : > { %967 = vadd.xlane.f32.xlu1 %v966_v24  ;;  %v963_v25 = vsel %vm949_vm6, %v5011_v23, 0.0 }
 0x42a   : > { %964 = vadd.xlane.f32.xlu0 %v963_v25 }
 0x42c   : > { %v5013_v26 = vpop.eup %5012 }
 0x42d   : > { %v1167_v27 = vsel %vm949_vm6, %v5013_v26, 0.0 }
 0x42e   : > { %1168 = vadd.xlane.f32.xlu0 %v1167_v27 }
 0x430   : > { %v5015_v28 = vpop.eup %5014 }
 0x431   : > { %v1170_v29 = vsel %vm953_vm5, %v5015_v28, 0.0 }
 0x432   : > { %1171 = vadd.xlane.f32.xlu1 %v1170_v29 }
 0x443   : > { %4912 = vrot.lane.b32.xlu1 %v5326_v45, %s5857_s25  ;;  %s5859_s25 = smov 48  }
 0x444   : > { %4907 = vrot.lane.b32.xlu0 %v5326_v45, %s5864_s5  ;;  %s5888_s5 = smov 88  }
 0x447   : > { %4917 = vrot.lane.b32.xlu1 %v5326_v45, %s5856_s26  ;;  %s5858_s26 = smov 40  }
 0x448   : > { %1429 = vrot.lane.b32.xlu0 %v5320_v43, %s5854_s2 }
 0x44b   : > { %1427 = vrot.lane.b32.xlu1 %v5318_v40, %s5854_s2  ;;  %s5885_s2 = sld [smem:[#allocation8_spill]] }
 0x44c   : > { %1713 = vrot.lane.b32.xlu0 %v5318_v40, %s5852_s27 }
 0x44f   : > { %4922 = vrot.lane.b32.xlu1 %v5326_v45, %s5851_s7  ;;  %s5887_s7 = smov 64  }
 0x451   : > { %v854_v2 = vld [vmem:[%s5885_s2 + $0x8] sm:$0xff]  ;;  %v853_v6 = vld [vmem:[%s5885_s2] sm:$0xff] }
 0x452   : > { %4554 = vmatprep.subr.mxu0 %v854_v2  ;;  %v4294_v52 = vld [vmem:[%s5885_s2 + $0x20] sm:$0xff] }
 0x453   : > { %1715 = vrot.lane.b32.xlu1 %v5320_v43, %s5852_s27  ;;  %4555 = vmatpush3.msra.mxu0 %v854_v2  ;;  %s5893_s27 = smov 112  }
 0x454   : > { %4559 = vmatprep.subr.mxu0 %v853_v6 }
 0x4b6   : > { %v968_v30 = vpop.xlane.xlu1 %967 }
 0x4b7   : > { %v965_v31 = vpop.xlane.xlu0 %964 }
 0x4b8   : > { %5016 = vrcp.f32 %v965_v31 }
 0x4b9   : > { %5018 = vrcp.f32 %v968_v30 }
 0x4bb   : > { %v1169_v32 = vpop.xlane.xlu0 %1168 }
 0x4bc   : > { %5020 = vrcp.f32 %v1169_v32 }
 0x4bf   : > { %v1172_v33 = vpop.xlane.xlu1 %1171  ;;  %v4908_v34 = vpop.permute.xlu0 %4907 }
 0x4c0   : > { %5022 = vrcp.f32 %v1172_v33  ;;  %v4910_v35 = vunpack.i.h.bf16 %v4908_v34  ;;  %v4909_v36 = vunpack.i.l.bf16 %v4908_v34 }
 0x4c2   : > { %v5017_v38 = vpop.eup %5016  ;;  %v4772_v39 = vpack.c.bf16 %v4910_v35, %v4909_v36 }
 0x4c3   : > { %v5019_v40 = vpop.eup %5018  ;;  %v4913_v41 = vpop.permute.xlu1 %4912  ;;  %v971_v42 = vmul.f32 %v5017_v38, %v5011_v23 }
 0x4c4   : > { %v4915_v43 = vunpack.i.h.bf16 %v4913_v41  ;;  %v4914_v44 = vunpack.i.l.bf16 %v4913_v41  ;;  %4774 = vmatprep.subr.msk.bf16.mxu1 %vm5378_vm9, %v4772_v39  ;;  %v972_v47 = vmul.f32 %v5019_v40, %v5009_v22  ;;  %v1430_v62 = vpop.permute.xlu0 %1429 }
 0x4c5   : > { %4777 = vmatpush3.bf16.msk.msra.mxu1 %vm5378_vm9, %v4772_v39  ;;  %4537 = vmatprep.mubr.msk.f32.mxu1 %vm949_vm6, %v971_v42 }
 0x4c6   : > { %v5021_v46 = vpop.eup %5020  ;;  %v4784_v48 = vpack.c.bf16 %v4915_v43, %v4914_v44 }
 0x4c7   : > { %v4918_v49 = vpop.permute.xlu1 %4917  ;;  %v1175_v50 = vmul.f32 %v5021_v46, %v5013_v26 }
 0x4c8   : > { %v4920_v51 = vunpack.i.h.bf16 %v4918_v49  ;;  %v4919_v53 = vunpack.i.l.bf16 %v4918_v49  ;;  %4538 = vmatmul.mubr.msk.f32.vlgmr.msra.gmra.mrb[2].mxu1 %vm949_vm6, %v972_v47  ;;  %4786 = vmatprep.subr.msk.bf16.mxu1 %vm5378_vm9, %v4784_v48  ;;  %v1714_v63 = vpop.permute.xlu0 %1713 }
 0x4c9   : > { %4789 = vmatpush3.bf16.msk.msra.mxu1 %vm5378_vm9, %v4784_v48  ;;  %4551 = vmatprep.mubr.msk.f32.mxu1 %vm949_vm6, %v1175_v50 }
 0x4ca   : > { %v5023_v54 = vpop.eup %5022  ;;  %v4790_v55 = vpack.c.bf16 %v4920_v51, %v4919_v53  ;;  %v855_v53 = vld [vmem:[%s5885_s2 + $0x10] sm:$0xff] }
 0x4cb   : > { %v1176_v56 = vmul.f32 %v5023_v54, %v5015_v28  ;;  %v1428_v57 = vpop.permute.xlu1 %1427 }
 0x4cc   : > { %4792 = vmatprep.subr.msk.bf16.mxu1 %vm5338_vm4, %v4790_v55 }
 0x4cd   : > { %4552 = vmatmul.mubr.msk.f32.vlgmr.msra.gmra.mrb[4].mxu1 %vm949_vm6, %v1176_v56 }
 0x4ce   : > { %4568 = vmatprep.mubr.msk.f32.mxu1 %vm863_vm3, %v1428_v57 }
 0x4cf   : > { %v4923_v58 = vpop.permute.xlu1 %4922 }
 0x4d0   : > { %v4925_v59 = vunpack.i.h.bf16 %v4923_v58  ;;  %v4924_v60 = vunpack.i.l.bf16 %v4923_v58 }
 0x4d2   : > { %v4802_v61 = vpack.c.bf16 %v4925_v59, %v4924_v60  ;;  %4795 = vmatpush3.bf16.xpose.msk.msra.mxu1 %vm5338_vm4, %v4790_v55 }
 0x4d3   : > { %v1716_v0 = vpop.permute.xlu1 %1715 }
 0x4d4   : > { %4804 = vmatprep.subr.msk.bf16.mxu1 %vm5338_vm4, %v4802_v61 }
 0x4d9   : > { %4569 = vmatmul.mubr.msk.f32.vlgmr.msra.gmra.mrb[6].mxu1 %vm863_vm3, %v1430_v62 }
 0x4da   : > { %4807 = vmatpush3.bf16.xpose.msk.msra.mxu1 %vm5338_vm4, %v4802_v61  ;;  %4587 = vmatprep.mubr.msk.f32.mxu1 %vm863_vm3, %v1714_v63 }
 0x4db   : > { %4602 = vmatprep.subr.bf16.mxu1 %v5128_v19 }
 0x4e1   : > { %4588 = vmatmul.mubr.msk.f32.vlgmr.msra.gmra.mrb[8].mxu1 %vm863_vm3, %v1716_v0 }
 0x4e2   : > { %4606 = vmatprep.mubr.msk.bf16.mxu1 %vm5129_vm2, %v5128_v19 }
 0x59b   : > { %v4539_v7 = vpop.f32.mrb[2].mxu1 }
 0x59c   : > { %v1053_v8 = vpop.f32.mrb[3].mxu1 }
 0x5a0   : > { %v4553_v9 = vpop.f32.mrb[4].mxu1 }
 0x5a1   : > { %v1256_v10 = vpop.f32.mrb[5].mxu1 }
 0x5a2   : > { %4556 = vmatprep.mubr.msk.f32.mxu0 %vm863_vm3, %v1256_v10 }
 0x5a3   : > { %4557 = vmatmul.mubr.msk.f32.vlgmr.msra.gmra.mrb[6].mxu0 %vm863_vm3, %v4553_v9 }
 0x5a4   : > { %4561 = vmatprep.mubr.msk.f32.mxu0 %vm863_vm3, %v1053_v8  ;;  %4560 = vmatpush3.msra.mxu0 %v853_v6  ;;  %v856_v8 = vld [vmem:[%s5885_s2 + $0x18] sm:$0xff] }
 0x5ab   : > { %4562 = vmatmul.mubr.msk.f32.vlgmr.msra.gmra.mrb[6].mxu0 %vm863_vm3, %v4539_v7 }
 0x5ac   : > { %v4570_v11 = vpop.f32.mrb[6].mxu1 }
 0x5ad   : > { %v1519_v12 = vmul.f32 0.35355338, %v4570_v11  ;;  %v1509_v13 = vpop.f32.mrb[7].mxu1 }
 0x5ae   : > { %v1518_v14 = vmul.f32 0.35355338, %v1509_v13 }
 0x5af   : > { %v1523_v15 = vsel %vm953_vm5, %v1519_v12, -inf }
 0x5b0   : > { %1524 = vmax.xlane.f32.xlu1 %v1523_v15  ;;  %v1520_v16 = vsel %vm949_vm6, %v1518_v14, -inf }
 0x5b1   : > { %1521 = vmax.xlane.f32.xlu0 %v1520_v16 }
 0x5b4   : > { %v4589_v17 = vpop.f32.mrb[8].mxu1 }
 0x5b5   : > { %v1795_v18 = vpop.f32.mrb[9].mxu1  ;;  %v1805_v21 = vmul.f32 0.35355338, %v4589_v17 }
 0x5b6   : > { %v1804_v20 = vmul.f32 0.35355338, %v1795_v18 }
 0x5b7   : > { %v1809_v23 = vsel %vm953_vm5, %v1805_v21, -inf }
 0x5b8   : > { %v1806_v22 = vsel %vm949_vm6, %v1804_v20, -inf }
 0x5b9   : > { %1807 = vmax.xlane.f32.xlu1 %v1806_v22 }
 0x5bd   : > { %1810 = vmax.xlane.f32.xlu1 %v1809_v23 }
 0x63d   : > { %v1525_v24 = vpop.xlane.xlu1 %1524 }
 0x63e   : > { %v1527_v25 = vsub.f32 %v1519_v12, %v1525_v24  ;;  %v1522_v26 = vpop.xlane.xlu0 %1521 }
 0x63f   : > { %v1526_v27 = vsub.f32 %v1518_v14, %v1522_v26 }
 0x640   : > { %v1530_v28 = vmul.f32 1.442695, %v1527_v25 }
 0x641   : > { %v1528_v29 = vmul.f32 1.442695, %v1526_v27 }
 0x642   : > { %5024 = vpow2.f32 %v1530_v28 }
 0x643   : > { %5026 = vpow2.f32 %v1528_v29 }
 0x646   : > { %v1808_v30 = vpop.xlane.xlu1 %1807 }
 0x647   : > { %v1812_v31 = vsub.f32 %v1804_v20, %v1808_v30  ;;  %v4978_v30 = vld [vmem:[%s5831_s10] sm:$0xff]  }
 0x648   : > { %4603 = vmatpush3.bf16.msra.mxu1 %v4978_v30 }
 0x649   : > { %v1814_v35 = vmul.f32 1.442695, %v1812_v31  ;;  %v4979_v31 = vld [vmem:[%s5831_s10 + $0x8] sm:$0xff]   ;;  %4604 = vmatprep.subr.bf16.mxu1 %v5128_v19 }
 0x64a   : > { %v1811_v32 = vpop.xlane.xlu1 %1810 }
 0x64b   : > { %v1813_v33 = vsub.f32 %v1805_v21, %v1811_v32 }
 0x64c   : > { %v5025_v34 = vpop.eup %5024  ;;  %4605 = vmatpush3.bf16.msra.mxu1 %v4979_v31 }
 0x64d   : > { %v1816_v36 = vmul.f32 1.442695, %v1813_v33  ;;  %v1535_v38 = vsel %vm953_vm5, %v5025_v34, 0.0  ;;  %v5027_v39 = vpop.eup %5026  ;;  %4622 = vmatprep.subr.bf16.mxu1 %v5128_v19 }
 0x64e   : > { %1536 = vadd.xlane.f32.xlu0 %v1535_v38  ;;  %v1532_v40 = vsel %vm949_vm6, %v5027_v39, 0.0 }
 0x64f   : > { %5028 = vpow2.f32 %v1816_v36 }
 0x650   : > { %5030 = vpow2.f32 %v1814_v35 }
 0x652   : > { %1533 = vadd.xlane.f32.xlu0 %v1532_v40 }
 0x659   : > { %v5029_v41 = vpop.eup %5028 }
 0x65a   : > { %v1821_v42 = vsel %vm953_vm5, %v5029_v41, 0.0  ;;  %v5031_v43 = vpop.eup %5030 }
 0x65b   : > { %1822 = vadd.xlane.f32.xlu1 %v1821_v42  ;;  %v1818_v44 = vsel %vm949_vm6, %v5031_v43, 0.0 }
 0x65f   : > { %1819 = vadd.xlane.f32.xlu1 %v1818_v44 }
 0x668   : > { %4927 = vrot.lane.b32.xlu0 %v5326_v45, %s5859_s25  ;;  %s5890_s25 = smov 120  }
 0x670   : > { %4932 = vrot.lane.b32.xlu1 %v5326_v45, %s5858_s26  ;;  %s5886_s26 = sld [smem:[#allocation9_spill]] }
 0x676   : > { %v4266_v13 = vld [vmem:[%s5886_s26] ss:$0 sm:$0xff] }
 0x6db   : > { %v1537_v46 = vpop.xlane.xlu0 %1536 }
 0x6dc   : > { %5032 = vrcp.f32 %v1537_v46  ;;  %v4268_v46 = vld [vmem:[%s5830_s9] ss:$0 sm:$0xff] }
 0x6df   : > { %v1534_v47 = vpop.xlane.xlu0 %1533 }
 0x6e0   : > { %5034 = vrcp.f32 %v1534_v47 }
 0x6e3   : > { %v4928_v48 = vpop.permute.xlu0 %4927 }
 0x6e4   : > { %v4930_v49 = vunpack.i.h.bf16 %v4928_v48  ;;  %v4929_v50 = vunpack.i.l.bf16 %v4928_v48 }
 0x6e6   : > { %v4796_v51 = vpack.c.bf16 %v4930_v49, %v4929_v50  ;;  %v5033_v55 = vpop.eup %5032 }
 0x6e7   : > { %v1541_v57 = vmul.f32 %v5033_v55, %v5025_v34  ;;  %v4983_v55 = vld [vmem:[%s5833_s12 + $0x18] sm:$0xff]  }
 0x6e8   : > { %v1823_v54 = vpop.xlane.xlu1 %1822  ;;  %4798 = vmatprep.subr.msk.bf16.mxu0 %vm5378_vm9, %v4796_v51 }
 0x6e9   : > { %4801 = vmatpush3.bf16.msk.msra.mxu0 %vm5378_vm9, %v4796_v51  ;;  %v4980_v51 = vld [vmem:[%s5833_s12] sm:$0xff]  }
 0x6ea   : > { %v5035_v45 = vpop.eup %5034  ;;  %4578 = vmatprep.subr.mxu0 %v855_v53 }
 0x6eb   : > { %v1540_v56 = vmul.f32 %v5035_v45, %v5027_v39  ;;  %v4269_v45 = vld [vmem:[%s5832_s11] ss:$0 sm:$0xff] }
 0x6ec   : > { %v1820_v58 = vpop.xlane.xlu1 %1819 }
 0x6ed   : > { %4575 = vmatprep.mubr.msk.f32.mxu0 %vm949_vm6, %v1540_v56  ;;  %5036 = vrcp.f32 %v1820_v58 }
 0x6ee   : > { %4576 = vmatmul.mubr.msk.f32.vlgmr.msra.gmra.mrb[8].mxu0 %vm949_vm6, %v1541_v57  ;;  %5038 = vrcp.f32 %v1823_v54  ;;  %v4982_v54 = vld [vmem:[%s5833_s12 + $0x10] sm:$0xff]  }
 0x6ef   : > { %4579 = vmatpush3.msra.mxu0 %v855_v53  ;;  %v4981_v53 = vld [vmem:[%s5833_s12 + $0x8] sm:$0xff]  }
 0x6f0   : > { %v4933_v59 = vpop.permute.xlu1 %4932 }
 0x6f1   : > { %v4935_v60 = vunpack.i.h.bf16 %v4933_v59  ;;  %v4934_v61 = vunpack.i.l.bf16 %v4933_v59 }
 0x6f3   : > { %v4808_v62 = vpack.c.bf16 %v4935_v60, %v4934_v61 }
 0x6f5   : > { %4810 = vmatprep.subr.msk.bf16.mxu0 %vm5378_vm9, %v4808_v62 }
 0x6f7   : > { %v5037_v63 = vpop.eup %5036 }
 0x6f8   : > { %v5039_v6 = vpop.eup %5038  ;;  %v1826_v7 = vmul.f32 %v5037_v63, %v5031_v43 }
 0x6f9   : > { %v1827_v9 = vmul.f32 %v5039_v6, %v5029_v41  ;;  %v4267_v41 = vld [vmem:[%s5829_s8] ss:$0 sm:$0xff] }
 0x7c1   : > { %v4577_v0 = vpop.f32.mrb[8].mxu0 }
 0x7c2   : > { %v1621_v2 = vpop.f32.mrb[9].mxu0 }
 0x7c3   : > { %4580 = vmatprep.mubr.msk.f32.mxu0 %vm863_vm3, %v1621_v2 }
 0x7c4   : > { %4581 = vmatmul.mubr.msk.f32.vlgmr.msra.gmra.mrb[6].mxu0 %vm863_vm3, %v4577_v0 }
 0x7c5   : > { %4813 = vmatpush3.bf16.msk.msra.mxu0 %vm5378_vm9, %v4808_v62  ;;  %4594 = vmatprep.mubr.msk.f32.mxu0 %vm949_vm6, %v1826_v7 }
 0x7c6   : > { %4597 = vmatprep.subr.mxu0 %v856_v8 }
 0x7c8   : > { %4595 = vmatmul.mubr.msk.f32.vlgmr.msra.gmra.mrb[10].mxu0 %vm949_vm6, %v1827_v9 }
 0x7c9   : > { %4598 = vmatpush3.msra.mxu0 %v856_v8 }
 0x7ca   : > { %4610 = vmatprep.subr.bf16.mxu0 %v5128_v19 }
 0x89b   : > { %v4596_v10 = vpop.f32.mrb[10].mxu0 }
 0x89c   : > { %v1907_v11 = vpop.f32.mrb[11].mxu0 }
 0x89d   : > { %4599 = vmatprep.mubr.msk.f32.mxu0 %vm863_vm3, %v1907_v11 }
 0x89e   : > { %4600 = vmatmul.mubr.msk.f32.vlgmr.msra.gmra.mrb[6].mxu0 %vm863_vm3, %v4596_v10 }
 0x89f   : > { %4618 = vmatprep.mubr.msk.bf16.mxu0 %vm5129_vm2, %v5128_v19  ;;  %4611 = vmatpush3.bf16.msra.mxu0 %v4980_v51 }
 0x8a0   : > { %4612 = vmatprep.subr.bf16.mxu0 %v5128_v19 }
 0x8a3   : > { %4613 = vmatpush3.bf16.msra.mxu0 %v4981_v53 }
 0x8a4   : > { %4614 = vmatprep.subr.bf16.mxu0 %v5128_v19 }
 0x8a7   : > { %4615 = vmatpush3.bf16.msra.mxu0 %v4982_v54  ;;  %v4284_v54 = vld [vmem:[%s5879_s6 + $0x1] ss:$0 sm:$0xff] }
 0x8a8   : > { %4616 = vmatprep.subr.bf16.mxu0 %v5128_v19 }
 0x8ab   : > { %4617 = vmatpush3.bf16.msra.mxu0 %v4983_v55 }
 0x971   : > { %v4601_v12 = vpop.f32.mrb[6].mxu0 }
 0x972   : > { %v2000_v14 = vadd.f32 %v4601_v12, %v5288_v5  ;;  %v1988_v15 = vpop.f32.mrb[7].mxu0 }
 0x973   : > { %v1999_v16 = vadd.f32 %v1988_v15, %v5283_v3 }
 0x974   : > { %v5461_v17 = vadd.f32 %v4266_v13, %v2000_v14 }
 0x975   : > { %v5463_v18 = vadd.f32 %v4266_v13, %v1999_v16 }
 0x976   : > { %v2015_v20 = vsel %vm744_vm1, %v5461_v17, 0.0 }
 0x977   : > { %2016 = vadd.xlane.f32.xlu1 %v2015_v20  ;;  %v2012_v21 = vsel %vm740_vm0, %v5463_v18, 0.0 }
 0x978   : > { %2013 = vadd.xlane.f32.xlu0 %v2012_v21  ;;  %v4280_v21 = vld [vmem:[%s5834_s13] ss:$0 sm:$0xff] }
 0xa04   : > { %v2017_v22 = vpop.xlane.xlu1 %2016 }
 0xa05   : > { %v2019_v23 = vmul.f32 0.03125, %v2017_v22  ;;  %v2014_v24 = vpop.xlane.xlu0 %2013 }
 0xa06   : > { %v2018_v25 = vmul.f32 0.03125, %v2014_v24 }
 0xa07   : > { %v2021_v5 = vsub.f32 %v5461_v17, %v2019_v23 }
 0xa08   : > { %v2020_v3 = vsub.f32 %v5463_v18, %v2018_v25 }
 0xa09   : > { %v2023_v28 = vmul.f32 %v2021_v5, %v2021_v5 }
 0xa0a   : > { %v2022_v26 = vmul.f32 %v2020_v3, %v2020_v3 }
 0xa0b   : > { %v2027_v29 = vsel %vm744_vm1, %v2023_v28, 0.0 }
 0xa0c   : > { %v2024_v27 = vsel %vm740_vm0, %v2022_v26, 0.0 }
 0xa0d   : > { %2025 = vadd.xlane.f32.xlu0 %v2024_v27 }
 0xa11   : > { %2028 = vadd.xlane.f32.xlu0 %v2027_v29 }
 0xa9a   : > { %v2026_v32 = vpop.xlane.xlu0 %2025 }
 0xa9b   : > { %v2030_v33 = vmul.f32 0.03125, %v2026_v32 }
 0xa9d   : > { %v2032_v34 = vadd.f32 1e-05, %v2030_v33 }
 0xa9e   : > { %v2029_v35 = vpop.xlane.xlu0 %2028 }
 0xa9f   : > { %5040 = vrsqrt.f32 %v2032_v34  ;;  %v2031_v36 = vmul.f32 0.03125, %v2029_v35 }
 0xaa1   : > { %v2033_v38 = vadd.f32 1e-05, %v2031_v36 }
 0xaa3   : > { %5042 = vrsqrt.f32 %v2033_v38  ;;  %v4984_v38 = vld [vmem:[%s5877_s3 + $0x10] sm:$0xff]  }
 0xaa9   : > { %v5041_v39 = vpop.eup %5040 }
 0xaaa   : > { %v2036_v40 = vmul.f32 %v5041_v39, %v2020_v3  ;;  %v4985_v39 = vld [vmem:[%s5877_s3 + $0x18] sm:$0xff]  }
 0xaac   : > { %v2044_v43 = vmul.f32 %v4267_v41, %v2036_v40 }
 0xaad   : > { %v5043_v42 = vpop.eup %5042 }
 0xaae   : > { %v2037_v44 = vmul.f32 %v5043_v42, %v2021_v5  ;;  %v2052_v48 = vadd.f32 %v4268_v46, %v2044_v43 }
 0xab0   : > { %v2045_v47 = vmul.f32 %v4267_v41, %v2037_v44 }
 0xab2   : > { %v2053_v49 = vadd.f32 %v4268_v46, %v2045_v47 }
 0xab4   : > { %v2058_v50 = vpack.c.bf16 %v2053_v49, %v2052_v48  ;;  %v4283_v49 = vld [vmem:[%s5878_s1 + $0x1] ss:$0 sm:$0xff] }
 0xab6   : > { %4607 = vmatmul.mubr.msk.bf16.vlgmr.msra.gmra.mrb[12].mxu1 %vm740_vm0, %v2058_v50 }
 0xab7   : > { %4626 = vmatprep.mubr.msk.bf16.mxu1 %vm5129_vm2, %v5128_v19  ;;  %4623 = vmatpush3.bf16.msra.mxu1 %v4984_v38 }
 0xab8   : > { %4624 = vmatprep.subr.bf16.mxu1 %v5128_v19 }
 0xabb   : > { %4625 = vmatpush3.bf16.msra.mxu1 %v4985_v39 }
 0xb89   : > { %v2115_v56 = vpop.f32.mrb[12].mxu1 }
 0xb8a   : > { %v2116_v57 = vadd.f32 %v4269_v45, %v2115_v56  ;;  %v4608_v58 = vpop.f32.mrb[13].mxu1 }
 0xb8b   : > { %v2118_v59 = vpop.f32.mrb[14].mxu1  ;;  %v4290_v58 = vld [vmem:[%s5880_s28 + $0x1] ss:$0 sm:$0xff] }
 0xb8c   : > { %v2119_v60 = vadd.f32 %v4269_v45, %v2118_v59  ;;  %2138 = vrot.lane.b32.xlu0 %v2116_v57, %s5887_s7  ;;  %v4609_v61 = vpop.f32.mrb[15].mxu1  ;;  %v4273_v62 = vmul.f32 -1.442695, %v2116_v57 }
 0xb8e   : > { %2140 = vrot.lane.b32.xlu1 %v2119_v60, %s5887_s7  ;;  %v4274_v63 = vmul.f32 -1.442695, %v2119_v60  ;;  %5044 = vpow2.f32 %v4273_v62 }
 0xb90   : > { %5046 = vpow2.f32 %v4274_v63 }
 0xb98   : > { %v5045_v0 = vpop.eup %5044 }
 0xb99   : > { %v2128_v6 = vadd.f32 1.0, %v5045_v0 }
 0xb9a   : > { %v5047_v2 = vpop.eup %5046 }
 0xb9b   : > { %v2129_v7 = vadd.f32 1.0, %v5047_v2  ;;  %5048 = vrcp.f32 %v2128_v6 }
 0xb9d   : > { %5050 = vrcp.f32 %v2129_v7 }
 0xba5   : > { %v5049_v8 = vpop.eup %5048 }
 0xba6   : > { %v2134_v11 = vmul.f32 %v5049_v8, %v2116_v57 }
 0xba7   : > { %v5051_v9 = vpop.eup %5050 }
 0xba8   : > { %v2135_v12 = vmul.f32 %v5051_v9, %v2119_v60 }
 0xbfe   : > { %v2139_v10 = vpop.permute.xlu0 %2138 }
 0xbff   : > { %v2144_v14 = vmul.f32 %v2139_v10, %v2134_v11 }
 0xc00   : > { %v2141_v13 = vpop.permute.xlu1 %2140 }
 0xc01   : > { %v2145_v15 = vmul.f32 %v2141_v13, %v2135_v12 }
 0xc03   : > { %v2154_v16 = vpack.c.bf16 %v2145_v15, %v2144_v14 }
 0xc05   : > { %4619 = vmatmul.mubr.msk.bf16.vlgmr.msra.gmra.mrb[12].mxu0 %vm2179_vm10, %v2154_v16 }
 0xcd8   : > { %v2217_v20 = vpop.f32.mrb[12].mxu0 }
 0xcd9   : > { %v2224_v22 = vadd.f32 %v2217_v20, %v5463_v18  ;;  %v4620_v23 = vpop.f32.mrb[13].mxu0 }
 0xcda   : > { %v2220_v24 = vpop.f32.mrb[14].mxu0 }
 0xcdb   : > { %v2233_v25 = vadd.f32 %v4280_v21, %v2224_v22  ;;  %v2225_v5 = vadd.f32 %v2220_v24, %v5461_v17  ;;  %v4621_v3 = vpop.f32.mrb[15].mxu0 }
 0xcdd   : > { %v5517_v26 = vadd.f32 %v2233_v25, %v5280_v1  ;;  %v2234_v27 = vadd.f32 %v4280_v21, %v2225_v5 }
 0xcdf   : > { %v5520_v28 = vadd.f32 %v2234_v27, %v5285_v4  ;;  %v2241_v29 = vsel %vm740_vm0, %v5517_v26, 0.0 }
 0xce0   : > { %2242 = vadd.xlane.f32.xlu0 %v2241_v29 }
 0xce1   : > { %v2244_v18 = vsel %vm744_vm1, %v5520_v28, 0.0 }
 0xce2   : > { %2245 = vadd.xlane.f32.xlu1 %v2244_v18 }
 0xd6d   : > { %v2243_v30 = vpop.xlane.xlu0 %2242 }
 0xd6e   : > { %v2247_v31 = vmul.f32 0.03125, %v2243_v30 }
 0xd6f   : > { %v2246_v32 = vpop.xlane.xlu1 %2245 }
 0xd70   : > { %v2249_v17 = vsub.f32 %v5517_v26, %v2247_v31  ;;  %v2248_v33 = vmul.f32 0.03125, %v2246_v32 }
 0xd72   : > { %v2250_v1 = vsub.f32 %v5520_v28, %v2248_v33  ;;  %v2251_v34 = vmul.f32 %v2249_v17, %v2249_v17 }
 0xd74   : > { %v2253_v4 = vsel %vm740_vm0, %v2251_v34, 0.0  ;;  %v2252_v35 = vmul.f32 %v2250_v1, %v2250_v1 }
 0xd75   : > { %2254 = vadd.xlane.f32.xlu0 %v2253_v4 }
 0xd76   : > { %v2256_v36 = vsel %vm744_vm1, %v2252_v35, 0.0 }
 0xd79   : > { %2257 = vadd.xlane.f32.xlu0 %v2256_v36 }
 0xe02   : > { %v2255_v40 = vpop.xlane.xlu0 %2254 }
 0xe03   : > { %v2259_v41 = vmul.f32 0.03125, %v2255_v40 }
 0xe05   : > { %v2261_v42 = vadd.f32 1e-05, %v2259_v41 }
 0xe06   : > { %v2258_v43 = vpop.xlane.xlu0 %2257 }
 0xe07   : > { %5052 = vrsqrt.f32 %v2261_v42  ;;  %v2260_v44 = vmul.f32 0.03125, %v2258_v43 }
 0xe09   : > { %v2262_v46 = vadd.f32 1e-05, %v2260_v44 }
 0xe0b   : > { %5054 = vrsqrt.f32 %v2262_v46 }
 0xe11   : > { %v5053_v47 = vpop.eup %5052 }
 0xe12   : > { %v2265_v48 = vmul.f32 %v5053_v47, %v2249_v17 }
 0xe14   : > { %v2273_v51 = vmul.f32 %v4283_v49, %v2265_v48 }
 0xe15   : > { %v5055_v50 = vpop.eup %5054 }
 0xe16   : > { %v2266_v53 = vmul.f32 %v5055_v50, %v2250_v1  ;;  %v2281_v45 = vadd.f32 %v4284_v54, %v2273_v51 }
 0xe18   : > { %v2274_v55 = vmul.f32 %v4283_v49, %v2266_v53 }
 0xe1a   : > { %v2282_v56 = vadd.f32 %v4284_v54, %v2274_v55 }
 0xe1c   : > { %v2288_v57 = vpack.c.bf16 %v2282_v56, %v2281_v45 }
 0xe1e   : > { %4627 = vmatmul.mubr.msk.bf16.vlgmr.msra.gmra.mrb[16].mxu1 %vm740_vm0, %v2288_v57 }
 0xef1   : > { %v2346_v59 = vpop.f32.mrb[16].mxu1 }
 0xef2   : > { %v5547_v60 = vadd.f32 %v4290_v58, %v2346_v59  ;;  %v4628_v61 = vpop.f32.mrb[17].mxu1 }
 0xef3   : > { %v2349_v62 = vpop.f32.mrb[18].mxu1 }
 0xef4   : > { %v5549_v63 = vadd.f32 %v4290_v58, %v2349_v62  ;;  %v4629_v0 = vpop.f32.mrb[19].mxu1  ;;  %4634 = vmatprep.mubr.msk.f32.mxu1 %vm863_vm3, %v5547_v60 }
 0xef6   : > { %v5555_v2 = vpack.i.bf16 %v5549_v63, %v5547_v60 }
 0xef8   : > { %4942 = vrot.lane.b32.xlu1 %v5555_v2, %s5888_s5  ;;  %4937 = vrot.lane.b32.xlu0 %v5555_v2, %s5889_s30  ;;  %s5894_s5 = smov 104   ;;  %s5895_s30 = smov 72  }
 0xefc   : > { %2559 = vrot.lane.b32.xlu1 %v5547_v60, %s5890_s25 }
 0xf00   : > { %2561 = vrot.lane.b32.xlu1 %v5549_v63, %s5890_s25 }
 0xf6a   : > { %v4943_v6 = vpop.permute.xlu1 %4942  ;;  %v4938_v7 = vpop.permute.xlu0 %4937 }
 0xf6b   : > { %v4945_v8 = vunpack.i.h.bf16 %v4943_v6  ;;  %v4944_v9 = vunpack.i.l.bf16 %v4943_v6  ;;  %v4940_v10 = vunpack.i.h.bf16 %v4938_v7  ;;  %v4939_v11 = vunpack.i.l.bf16 %v4938_v7 }
 0xf6d   : > { %v4826_v12 = vpack.c.bf16 %v4945_v8, %v4944_v9  ;;  %v4814_v13 = vpack.c.bf16 %v4940_v10, %v4939_v11 }
 0xf6e   : > { %v2560_v14 = vpop.permute.xlu1 %2559 }
 0xf6f   : > { %4816 = vmatprep.subr.msk.bf16.mxu1 %vm5338_vm4, %v4814_v13  ;;  %4828 = vmatprep.subr.msk.bf16.mxu0 %vm5338_vm4, %v4826_v12 }
 0xf70   : > { %4648 = vmatprep.mubr.msk.f32.mxu0 %vm863_vm3, %v2560_v14  ;;  %4819 = vmatpush3.bf16.xpose.msk.msra.mxu1 %vm5338_vm4, %v4814_v13 }
 0xf71   : > { %4831 = vmatpush3.bf16.xpose.msk.msra.mxu0 %vm5338_vm4, %v4826_v12 }
 0xf72   : > { %v2562_v15 = vpop.permute.xlu1 %2561 }
 0xf77   : > { %4635 = vmatmul.mubr.msk.f32.vlgmr.msra.gmra.mrb[10].mxu1 %vm863_vm3, %v5549_v63 }
 0xf78   : > { %4649 = vmatmul.mubr.msk.f32.vlgmr.msra.gmra.mrb[16].mxu0 %vm863_vm3, %v2562_v15 }
0x104a   : > { %v4636_v16 = vpop.f32.mrb[10].mxu1 }
0x104b   : > { %v2448_v20 = vmul.f32 0.35355338, %v4636_v16  ;;  %v4650_v21 = vpop.f32.mrb[16].mxu0  ;;  %v2438_v22 = vpop.f32.mrb[11].mxu1 }
0x104c   : > { %v2447_v23 = vmul.f32 0.35355338, %v2438_v22  ;;  %v2641_v24 = vpop.f32.mrb[17].mxu0  ;;  %v2651_v27 = vmul.f32 0.35355338, %v4650_v21 }
0x104d   : > { %v2452_v25 = vsel %vm953_vm5, %v2448_v20, -inf  ;;  %v2650_v5 = vmul.f32 0.35355338, %v2641_v24 }
0x104e   : > { %2453 = vmax.xlane.f32.xlu1 %v2452_v25  ;;  %v2449_v3 = vsel %vm949_vm6, %v2447_v23, -inf  ;;  %v2655_v18 = vsel %vm953_vm5, %v2651_v27, -inf  ;;  %v4295_v25 = vld [vmem:[%s5885_s2 + $0x28] sm:$0xff] }
0x104f   : > { %2450 = vmax.xlane.f32.xlu0 %v2449_v3  ;;  %v2652_v29 = vsel %vm949_vm6, %v2650_v5, -inf  ;;  %4658 = vmatprep.subr.mxu0 %v4295_v25 }
0x1050   : > { %4659 = vmatpush3.msra.mxu0 %v4295_v25  ;;  %v4297_v25 = vld [vmem:[%s5885_s2 + $0x38] sm:$0xff] }
0x1051   : > { %4663 = vmatprep.subr.mxu0 %v4294_v52 }
0x1053   : > { %2653 = vmax.xlane.f32.xlu0 %v2652_v29 }
0x1057   : > { %2656 = vmax.xlane.f32.xlu0 %v2655_v18 }
0x10db   : > { %v2454_v30 = vpop.xlane.xlu1 %2453 }
0x10dc   : > { %v2456_v31 = vsub.f32 %v2448_v20, %v2454_v30  ;;  %v2451_v32 = vpop.xlane.xlu0 %2450 }
0x10dd   : > { %v2455_v17 = vsub.f32 %v2447_v23, %v2451_v32 }
0x10de   : > { %v2459_v33 = vmul.f32 1.442695, %v2456_v31 }
0x10df   : > { %v2457_v1 = vmul.f32 1.442695, %v2455_v17 }
0x10e0   : > { %5056 = vpow2.f32 %v2459_v33  ;;  %v2654_v34 = vpop.xlane.xlu0 %2653 }
0x10e1   : > { %5058 = vpow2.f32 %v2457_v1  ;;  %v2658_v4 = vsub.f32 %v2650_v5, %v2654_v34 }
0x10e3   : > { %v2660_v35 = vmul.f32 1.442695, %v2658_v4 }
0x10e4   : > { %v2657_v36 = vpop.xlane.xlu0 %2656 }
0x10e5   : > { %5060 = vpow2.f32 %v2660_v35  ;;  %v2659_v38 = vsub.f32 %v2651_v27, %v2657_v36 }
0x10e7   : > { %v2662_v39 = vmul.f32 1.442695, %v2659_v38 }
0x10e9   : > { %5062 = vpow2.f32 %v2662_v39 }
0x10ea   : > { %v5057_v40 = vpop.eup %5056 }
0x10eb   : > { %v5059_v41 = vpop.eup %5058  ;;  %v2464_v42 = vsel %vm953_vm5, %v5057_v40, 0.0 }
0x10ec   : > { %2465 = vadd.xlane.f32.xlu1 %v2464_v42  ;;  %v2461_v43 = vsel %vm949_vm6, %v5059_v41, 0.0 }
0x10ed   : > { %2462 = vadd.xlane.f32.xlu0 %v2461_v43 }
0x10ef   : > { %v5061_v44 = vpop.eup %5060 }
0x10f0   : > { %v2664_v46 = vsel %vm949_vm6, %v5061_v44, 0.0 }
0x10f1   : > { %2665 = vadd.xlane.f32.xlu0 %v2664_v46 }
0x10f3   : > { %v5063_v47 = vpop.eup %5062 }
0x10f4   : > { %v2667_v48 = vsel %vm953_vm5, %v5063_v47, 0.0 }
0x10f5   : > { %2668 = vadd.xlane.f32.xlu1 %v2667_v48 }
0x1106   : > { %4952 = vrot.lane.b32.xlu1 %v5555_v2, %s5891_s29 }
0x1107   : > { %4947 = vrot.lane.b32.xlu0 %v5555_v2, %s5887_s7 }
0x110a   : > { %4957 = vrot.lane.b32.xlu1 %v5555_v2, %s5892_s0 }
0x110b   : > { %2926 = vrot.lane.b32.xlu0 %v5549_v63, %s5893_s27 }
0x110e   : > { %2924 = vrot.lane.b32.xlu1 %v5547_v60, %s5893_s27  ;;  %s730_s27 = scalar_lea.vmem %s5844_s23, %s5270_s24 }
0x110f   : > { %3210 = vrot.lane.b32.xlu0 %v5547_v60, %s5894_s5 }
0x1112   : > { %4962 = vrot.lane.b32.xlu1 %v5555_v2, %s5895_s30  ;;  %s5897_s30 = smov 40  }
0x1116   : > { %3212 = vrot.lane.b32.xlu1 %v5549_v63, %s5894_s5  ;;  %s5896_s5 = smov 48  }
0x1179   : > { %v2466_v49 = vpop.xlane.xlu1 %2465 }
0x117a   : > { %v2463_v50 = vpop.xlane.xlu0 %2462 }
0x117b   : > { %5064 = vrcp.f32 %v2463_v50 }
0x117c   : > { %5066 = vrcp.f32 %v2466_v49 }
0x117e   : > { %v2666_v51 = vpop.xlane.xlu0 %2665 }
0x117f   : > { %5068 = vrcp.f32 %v2666_v51 }
0x1182   : > { %v2669_v53 = vpop.xlane.xlu1 %2668  ;;  %v4948_v54 = vpop.permute.xlu0 %4947 }
0x1183   : > { %5070 = vrcp.f32 %v2669_v53  ;;  %v4950_v55 = vunpack.i.h.bf16 %v4948_v54  ;;  %v4949_v45 = vunpack.i.l.bf16 %v4948_v54 }
0x1185   : > { %v5065_v56 = vpop.eup %5064  ;;  %v4820_v57 = vpack.c.bf16 %v4950_v55, %v4949_v45 }
0x1186   : > { %v5067_v58 = vpop.eup %5066  ;;  %v4953_v59 = vpop.permute.xlu1 %4952  ;;  %v2469_v60 = vmul.f32 %v5065_v56, %v5059_v41 }
0x1187   : > { %v4955_v61 = vunpack.i.h.bf16 %v4953_v59  ;;  %v4954_v62 = vunpack.i.l.bf16 %v4953_v59  ;;  %4822 = vmatprep.subr.msk.bf16.mxu1 %vm5378_vm9, %v4820_v57  ;;  %v2470_v0 = vmul.f32 %v5067_v58, %v5057_v40  ;;  %v2927_v22 = vpop.permute.xlu0 %2926 }
0x1188   : > { %4825 = vmatpush3.bf16.msk.msra.mxu1 %vm5378_vm9, %v4820_v57  ;;  %4641 = vmatprep.mubr.msk.f32.mxu1 %vm949_vm6, %v2469_v60 }
0x1189   : > { %v5069_v63 = vpop.eup %5068  ;;  %v4832_v6 = vpack.c.bf16 %v4955_v61, %v4954_v62 }
0x118a   : > { %v4958_v7 = vpop.permute.xlu1 %4957  ;;  %v2672_v8 = vmul.f32 %v5069_v63, %v5061_v44 }
0x118b   : > { %v4960_v9 = vunpack.i.h.bf16 %v4958_v7  ;;  %v4959_v10 = vunpack.i.l.bf16 %v4958_v7  ;;  %4642 = vmatmul.mubr.msk.f32.vlgmr.msra.gmra.mrb[20].mxu1 %vm949_vm6, %v2470_v0  ;;  %4834 = vmatprep.subr.msk.bf16.mxu1 %vm5378_vm9, %v4832_v6  ;;  %v3211_v23 = vpop.permute.xlu0 %3210  ;;  %v4296_v7 = vld [vmem:[%s5885_s2 + $0x30] sm:$0xff] }
0x118c   : > { %4837 = vmatpush3.bf16.msk.msra.mxu1 %vm5378_vm9, %v4832_v6  ;;  %4655 = vmatprep.mubr.msk.f32.mxu1 %vm949_vm6, %v2672_v8 }
0x118d   : > { %v5071_v11 = vpop.eup %5070  ;;  %v4838_v12 = vpack.c.bf16 %v4960_v9, %v4959_v10 }
0x118e   : > { %v2673_v13 = vmul.f32 %v5071_v11, %v5063_v47  ;;  %v2925_v14 = vpop.permute.xlu1 %2924 }
0x118f   : > { %4840 = vmatprep.subr.msk.bf16.mxu1 %vm5338_vm4, %v4838_v12 }
0x1190   : > { %4656 = vmatmul.mubr.msk.f32.vlgmr.msra.gmra.mrb[22].mxu1 %vm949_vm6, %v2673_v13 }
0x1191   : > { %4672 = vmatprep.mubr.msk.f32.mxu1 %vm863_vm3, %v2925_v14 }
0x1192   : > { %v4963_v15 = vpop.permute.xlu1 %4962 }
0x1193   : > { %v4965_v16 = vunpack.i.h.bf16 %v4963_v15  ;;  %v4964_v20 = vunpack.i.l.bf16 %v4963_v15 }
0x1195   : > { %v4850_v21 = vpack.c.bf16 %v4965_v16, %v4964_v20  ;;  %4843 = vmatpush3.bf16.xpose.msk.msra.mxu1 %vm5338_vm4, %v4838_v12 }
0x1196   : > { %v3213_v24 = vpop.permute.xlu1 %3212 }
0x1197   : > { %4852 = vmatprep.subr.msk.bf16.mxu1 %vm5338_vm4, %v4850_v21 }
0x119c   : > { %4673 = vmatmul.mubr.msk.f32.vlgmr.msra.gmra.mrb[24].mxu1 %vm863_vm3, %v2927_v22 }
0x119d   : > { %4855 = vmatpush3.bf16.xpose.msk.msra.mxu1 %vm5338_vm4, %v4850_v21  ;;  %4691 = vmatprep.mubr.msk.f32.mxu1 %vm863_vm3, %v3211_v23 }
0x119e   : > { %4706 = vmatprep.subr.bf16.mxu1 %v5128_v19 }
0x11a4   : > { %4692 = vmatmul.mubr.msk.f32.vlgmr.msra.gmra.mrb[26].mxu1 %vm863_vm3, %v3213_v24 }
0x11a5   : > { %4710 = vmatprep.mubr.msk.bf16.mxu1 %vm5129_vm2, %v5128_v19 }
0x125e   : > { %v4643_v5 = vpop.f32.mrb[20].mxu1 }
0x125f   : > { %v2550_v3 = vpop.f32.mrb[21].mxu1 }
0x1263   : > { %v4657_v27 = vpop.f32.mrb[22].mxu1 }
0x1264   : > { %v2753_v29 = vpop.f32.mrb[23].mxu1 }
0x1265   : > { %4660 = vmatprep.mubr.msk.f32.mxu0 %vm863_vm3, %v2753_v29 }
0x1266   : > { %4661 = vmatmul.mubr.msk.f32.vlgmr.msra.gmra.mrb[18].mxu0 %vm863_vm3, %v4657_v27  ;;  %v4335_v27 = vld [vmem:[%s5886_s26 + $0x1] ss:$0 sm:$0xff] }
0x1267   : > { %4665 = vmatprep.mubr.msk.f32.mxu0 %vm863_vm3, %v2550_v3  ;;  %4664 = vmatpush3.msra.mxu0 %v4294_v52 }
0x126e   : > { %4666 = vmatmul.mubr.msk.f32.vlgmr.msra.gmra.mrb[18].mxu0 %vm863_vm3, %v4643_v5 }
0x126f   : > { %v4674_v18 = vpop.f32.mrb[24].mxu1 }
0x1270   : > { %v3016_v30 = vmul.f32 0.35355338, %v4674_v18  ;;  %v3006_v31 = vpop.f32.mrb[25].mxu1 }
0x1271   : > { %v3015_v32 = vmul.f32 0.35355338, %v3006_v31 }
0x1272   : > { %v3020_v17 = vsel %vm953_vm5, %v3016_v30, -inf }
0x1273   : > { %3021 = vmax.xlane.f32.xlu1 %v3020_v17  ;;  %v3017_v33 = vsel %vm949_vm6, %v3015_v32, -inf }
0x1274   : > { %3018 = vmax.xlane.f32.xlu0 %v3017_v33 }
0x1277   : > { %v4693_v1 = vpop.f32.mrb[26].mxu1 }
0x1278   : > { %v3292_v34 = vpop.f32.mrb[27].mxu1  ;;  %v3302_v35 = vmul.f32 0.35355338, %v4693_v1 }
0x1279   : > { %v3301_v4 = vmul.f32 0.35355338, %v3292_v34 }
0x127a   : > { %v3306_v38 = vsel %vm953_vm5, %v3302_v35, -inf }
0x127b   : > { %v3303_v36 = vsel %vm949_vm6, %v3301_v4, -inf }
0x127c   : > { %3304 = vmax.xlane.f32.xlu1 %v3303_v36 }
0x1280   : > { %3307 = vmax.xlane.f32.xlu1 %v3306_v38 }
0x1300   : > { %v3022_v39 = vpop.xlane.xlu1 %3021 }
0x1301   : > { %v3024_v40 = vsub.f32 %v3016_v30, %v3022_v39  ;;  %v3019_v41 = vpop.xlane.xlu0 %3018 }
0x1302   : > { %v3023_v42 = vsub.f32 %v3015_v32, %v3019_v41  ;;  %v4986_v41 = vld [vmem:[%s5831_s10 + $0x10] sm:$0xff]  }
0x1303   : > { %v3027_v43 = vmul.f32 1.442695, %v3024_v40  ;;  %4707 = vmatpush3.bf16.msra.mxu1 %v4986_v41 }
0x1304   : > { %v3025_v44 = vmul.f32 1.442695, %v3023_v42  ;;  %v4987_v42 = vld [vmem:[%s5831_s10 + $0x18] sm:$0xff]   ;;  %4708 = vmatprep.subr.bf16.mxu1 %v5128_v19 }
0x1305   : > { %5072 = vpow2.f32 %v3027_v43 }
0x1306   : > { %5074 = vpow2.f32 %v3025_v44 }
0x1307   : > { %4709 = vmatpush3.bf16.msra.mxu1 %v4987_v42 }
0x1308   : > { %4726 = vmatprep.subr.bf16.mxu1 %v5128_v19 }
0x1309   : > { %v3305_v46 = vpop.xlane.xlu1 %3304 }
0x130a   : > { %v3309_v47 = vsub.f32 %v3301_v4, %v3305_v46 }
0x130c   : > { %v3311_v51 = vmul.f32 1.442695, %v3309_v47 }
0x130d   : > { %v3308_v48 = vpop.xlane.xlu1 %3307 }
0x130e   : > { %v3310_v49 = vsub.f32 %v3302_v35, %v3308_v48 }
0x130f   : > { %v5073_v50 = vpop.eup %5072 }
0x1310   : > { %v3313_v53 = vmul.f32 1.442695, %v3310_v49  ;;  %v3032_v54 = vsel %vm953_vm5, %v5073_v50, 0.0  ;;  %v5075_v55 = vpop.eup %5074 }
0x1311   : > { %3033 = vadd.xlane.f32.xlu0 %v3032_v54  ;;  %v3029_v45 = vsel %vm949_vm6, %v5075_v55, 0.0 }
0x1312   : > { %5076 = vpow2.f32 %v3313_v53  ;;  %v4338_v53 = vld [vmem:[%s5829_s8 + $0x1] ss:$0 sm:$0xff] }
0x1313   : > { %5078 = vpow2.f32 %v3311_v51 }
0x1315   : > { %3030 = vadd.xlane.f32.xlu0 %v3029_v45 }
0x131c   : > { %v5077_v56 = vpop.eup %5076 }
0x131d   : > { %v3318_v57 = vsel %vm953_vm5, %v5077_v56, 0.0  ;;  %v5079_v58 = vpop.eup %5078 }
0x131e   : > { %3319 = vadd.xlane.f32.xlu1 %v3318_v57  ;;  %v3315_v59 = vsel %vm949_vm6, %v5079_v58, 0.0 }
0x1322   : > { %3316 = vadd.xlane.f32.xlu1 %v3315_v59 }
0x132b   : > { %4967 = vrot.lane.b32.xlu0 %v5555_v2, %s5896_s5 }
0x1333   : > { %4972 = vrot.lane.b32.xlu1 %v5555_v2, %s5897_s30 }
0x139e   : > { %v3034_v60 = vpop.xlane.xlu0 %3033 }
0x139f   : > { %5080 = vrcp.f32 %v3034_v60 }
0x13a2   : > { %v3031_v61 = vpop.xlane.xlu0 %3030 }
0x13a3   : > { %5082 = vrcp.f32 %v3031_v61  ;;  %v4988_v61 = vld [vmem:[%s5833_s12 + $0x20] sm:$0xff]  }
0x13a6   : > { %v4968_v62 = vpop.permute.xlu0 %4967 }
0x13a7   : > { %v4970_v63 = vunpack.i.h.bf16 %v4968_v62  ;;  %v4969_v0 = vunpack.i.l.bf16 %v4968_v62  ;;  %v4989_v62 = vld [vmem:[%s5833_s12 + $0x28] sm:$0xff]  }
0x13a9   : > { %v4844_v6 = vpack.c.bf16 %v4970_v63, %v4969_v0  ;;  %v5081_v9 = vpop.eup %5080  ;;  %v4990_v63 = vld [vmem:[%s5833_s12 + $0x30] sm:$0xff]   ;;  %v4991_v0 = vld [vmem:[%s5833_s12 + $0x38] sm:$0xff]  }
0x13aa   : > { %v3038_v11 = vmul.f32 %v5081_v9, %v5073_v50 }
0x13ab   : > { %v3320_v8 = vpop.xlane.xlu1 %3319  ;;  %4846 = vmatprep.subr.msk.bf16.mxu0 %vm5378_vm9, %v4844_v6 }
0x13ac   : > { %4849 = vmatpush3.bf16.msk.msra.mxu0 %vm5378_vm9, %v4844_v6  ;;  %v4345_v6 = vld [vmem:[%s5832_s11 + $0x1] ss:$0 sm:$0xff] }
0x13ad   : > { %v5083_v2 = vpop.eup %5082  ;;  %4682 = vmatprep.subr.mxu0 %v4296_v7 }
0x13ae   : > { %v3037_v10 = vmul.f32 %v5083_v2, %v5075_v55 }
0x13af   : > { %v3317_v12 = vpop.xlane.xlu1 %3316 }
0x13b0   : > { %4679 = vmatprep.mubr.msk.f32.mxu0 %vm949_vm6, %v3037_v10  ;;  %5084 = vrcp.f32 %v3317_v12 }
0x13b1   : > { %4680 = vmatmul.mubr.msk.f32.vlgmr.msra.gmra.mrb[20].mxu0 %vm949_vm6, %v3038_v11  ;;  %5086 = vrcp.f32 %v3320_v8 }
0x13b2   : > { %4683 = vmatpush3.msra.mxu0 %v4296_v7 }
0x13b3   : > { %v4973_v13 = vpop.permute.xlu1 %4972 }
0x13b4   : > { %v4975_v14 = vunpack.i.h.bf16 %v4973_v13  ;;  %v4974_v15 = vunpack.i.l.bf16 %v4973_v13 }
0x13b6   : > { %v4856_v16 = vpack.c.bf16 %v4975_v14, %v4974_v15 }
0x13b8   : > { %4858 = vmatprep.subr.msk.bf16.mxu0 %vm5378_vm9, %v4856_v16 }
0x13ba   : > { %v5085_v20 = vpop.eup %5084 }
0x13bb   : > { %v5087_v23 = vpop.eup %5086  ;;  %v3323_v24 = vmul.f32 %v5085_v20, %v5079_v58 }
0x13bc   : > { %v3324_v52 = vmul.f32 %v5087_v23, %v5077_v56  ;;  %v4339_v56 = vld [vmem:[%s5830_s9 + $0x1] ss:$0 sm:$0xff] }
0x1484   : > { %v4681_v21 = vpop.f32.mrb[20].mxu0 }
0x1485   : > { %v3118_v22 = vpop.f32.mrb[21].mxu0 }
0x1486   : > { %4684 = vmatprep.mubr.msk.f32.mxu0 %vm863_vm3, %v3118_v22 }
0x1487   : > { %4685 = vmatmul.mubr.msk.f32.vlgmr.msra.gmra.mrb[18].mxu0 %vm863_vm3, %v4681_v21 }
0x1488   : > { %4861 = vmatpush3.bf16.msk.msra.mxu0 %vm5378_vm9, %v4856_v16  ;;  %4698 = vmatprep.mubr.msk.f32.mxu0 %vm949_vm6, %v3323_v24 }
0x1489   : > { %4701 = vmatprep.subr.mxu0 %v4297_v25 }
0x148b   : > { %4699 = vmatmul.mubr.msk.f32.vlgmr.msra.gmra.mrb[22].mxu0 %vm949_vm6, %v3324_v52 }
0x148c   : > { %4702 = vmatpush3.msra.mxu0 %v4297_v25 }
0x148d   : > { %4714 = vmatprep.subr.bf16.mxu0 %v5128_v19 }
0x155e   : > { %v4700_v5 = vpop.f32.mrb[22].mxu0 }
0x155f   : > { %v3404_v3 = vpop.f32.mrb[23].mxu0 }
0x1560   : > { %4703 = vmatprep.mubr.msk.f32.mxu0 %vm863_vm3, %v3404_v3 }
0x1561   : > { %4704 = vmatmul.mubr.msk.f32.vlgmr.msra.gmra.mrb[18].mxu0 %vm863_vm3, %v4700_v5 }
0x1562   : > { %4722 = vmatprep.mubr.msk.bf16.mxu0 %vm5129_vm2, %v5128_v19  ;;  %4715 = vmatpush3.bf16.msra.mxu0 %v4988_v61 }
0x1563   : > { %4716 = vmatprep.subr.bf16.mxu0 %v5128_v19 }
0x1566   : > { %4717 = vmatpush3.bf16.msra.mxu0 %v4989_v62 }
0x1567   : > { %4718 = vmatprep.subr.bf16.mxu0 %v5128_v19 }
0x156a   : > { %4719 = vmatpush3.bf16.msra.mxu0 %v4990_v63 }
0x156b   : > { %4720 = vmatprep.subr.bf16.mxu0 %v5128_v19 }
0x156e   : > { %4721 = vmatpush3.bf16.msra.mxu0 %v4991_v0  ;;  %v4994_v0 = vld [vmem:[%s5839_s18] sm:$0xff]  }
0x156f   : > { %4746 = vmatprep.subr.bf16.mxu0 %v5128_v19 }
0x1634   : > { %v4705_v37 = vpop.f32.mrb[18].mxu0 }
0x1635   : > { %v3497_v29 = vadd.f32 %v4705_v37, %v5520_v28  ;;  %v3485_v18 = vpop.f32.mrb[19].mxu0 }
0x1636   : > { %v3496_v30 = vadd.f32 %v3485_v18, %v5517_v26 }
0x1637   : > { %v5680_v31 = vadd.f32 %v4335_v27, %v3497_v29  ;;  %v4365_v29 = vld [vmem:[%s5834_s13 + $0x1] ss:$0 sm:$0xff] }
0x1638   : > { %v5682_v32 = vadd.f32 %v4335_v27, %v3496_v30 }
0x1639   : > { %v3515_v17 = vsel %vm744_vm1, %v5680_v31, 0.0 }
0x163a   : > { %3516 = vadd.xlane.f32.xlu1 %v3515_v17  ;;  %v3512_v33 = vsel %vm740_vm0, %v5682_v32, 0.0 }
0x163b   : > { %3513 = vadd.xlane.f32.xlu0 %v3512_v33 }
0x16c7   : > { %v3517_v1 = vpop.xlane.xlu1 %3516 }
0x16c8   : > { %v3519_v34 = vmul.f32 0.03125, %v3517_v1  ;;  %v3514_v4 = vpop.xlane.xlu0 %3513 }
0x16c9   : > { %v3518_v35 = vmul.f32 0.03125, %v3514_v4 }
0x16ca   : > { %v3521_v28 = vsub.f32 %v5680_v31, %v3519_v34 }
0x16cb   : > { %v3520_v26 = vsub.f32 %v5682_v32, %v3518_v35 }
0x16cc   : > { %v3523_v39 = vmul.f32 %v3521_v28, %v3521_v28 }
0x16cd   : > { %v3522_v36 = vmul.f32 %v3520_v26, %v3520_v26 }
0x16ce   : > { %v3527_v40 = vsel %vm744_vm1, %v3523_v39, 0.0 }
0x16cf   : > { %v3524_v38 = vsel %vm740_vm0, %v3522_v36, 0.0 }
0x16d0   : > { %3525 = vadd.xlane.f32.xlu0 %v3524_v38 }
0x16d4   : > { %3528 = vadd.xlane.f32.xlu0 %v3527_v40 }
0x175d   : > { %v3526_v43 = vpop.xlane.xlu0 %3525 }
0x175e   : > { %v3530_v44 = vmul.f32 0.03125, %v3526_v43 }
0x1760   : > { %v3532_v46 = vadd.f32 1e-05, %v3530_v44  ;;  %v4992_v44 = vld [vmem:[%s5837_s16] sm:$0xff]  }
0x1761   : > { %v3529_v47 = vpop.xlane.xlu0 %3528 }
0x1762   : > { %5088 = vrsqrt.f32 %v3532_v46  ;;  %v3531_v48 = vmul.f32 0.03125, %v3529_v47  ;;  %v4993_v46 = vld [vmem:[%s5837_s16 + $0x8] sm:$0xff]  }
0x1764   : > { %v3533_v49 = vadd.f32 1e-05, %v3531_v48 }
0x1766   : > { %5090 = vrsqrt.f32 %v3533_v49 }
0x176c   : > { %v5089_v50 = vpop.eup %5088 }
0x176d   : > { %v3536_v51 = vmul.f32 %v5089_v50, %v3520_v26 }
0x176f   : > { %v3544_v55 = vmul.f32 %v4338_v53, %v3536_v51 }
0x1770   : > { %v5091_v54 = vpop.eup %5090 }
0x1771   : > { %v3537_v45 = vmul.f32 %v5091_v54, %v3521_v28  ;;  %v3552_v58 = vadd.f32 %v4339_v56, %v3544_v55 }
0x1773   : > { %v3545_v57 = vmul.f32 %v4338_v53, %v3537_v45  ;;  %v4366_v45 = vld [vmem:[%s5835_s14] ss:$0 sm:$0xff] }
0x1775   : > { %v3553_v59 = vadd.f32 %v4339_v56, %v3545_v57 }
0x1777   : > { %v3559_v60 = vpack.c.bf16 %v3553_v59, %v3552_v58  ;;  %v4367_v59 = vld [vmem:[%s5836_s15] ss:$0 sm:$0xff] }
0x1779   : > { %4711 = vmatmul.mubr.msk.bf16.vlgmr.msra.gmra.mrb[28].mxu1 %vm740_vm0, %v3559_v60 }
0x177a   : > { %4730 = vmatprep.mubr.msk.bf16.mxu1 %vm5129_vm2, %v5128_v19  ;;  %4727 = vmatpush3.bf16.msra.mxu1 %v4992_v44 }
0x177b   : > { %4728 = vmatprep.subr.bf16.mxu1 %v5128_v19 }
0x177e   : > { %4729 = vmatpush3.bf16.msra.mxu1 %v4993_v46 }
0x177f   : > { %4734 = vmatprep.subr.bf16.mxu1 %v5128_v19 }
0x184c   : > { %v3617_v7 = vpop.f32.mrb[28].mxu1 }
0x184d   : > { %v3618_v8 = vadd.f32 %v4345_v6, %v3617_v7  ;;  %v4712_v9 = vpop.f32.mrb[29].mxu1  ;;  %v4996_v7 = vld [vmem:[%s5839_s18 + $0x10] sm:$0xff]  }
0x184e   : > { %v3620_v2 = vpop.f32.mrb[30].mxu1  ;;  %v4368_v9 = vld [vmem:[%s5838_s17] ss:$0 sm:$0xff] }
0x184f   : > { %v3621_v10 = vadd.f32 %v4345_v6, %v3620_v2  ;;  %3640 = vrot.lane.b32.xlu0 %v3618_v8, %s5887_s7  ;;  %v4713_v11 = vpop.f32.mrb[31].mxu1  ;;  %v4349_v12 = vmul.f32 -1.442695, %v3618_v8  ;;  %v4995_v6 = vld [vmem:[%s5839_s18 + $0x8] sm:$0xff]  }
0x1851   : > { %3642 = vrot.lane.b32.xlu1 %v3621_v10, %s5887_s7  ;;  %v4350_v13 = vmul.f32 -1.442695, %v3621_v10  ;;  %5092 = vpow2.f32 %v4349_v12 }
0x1853   : > { %5094 = vpow2.f32 %v4350_v13 }
0x185b   : > { %v5093_v14 = vpop.eup %5092 }
0x185c   : > { %v3630_v16 = vadd.f32 1.0, %v5093_v14 }
0x185d   : > { %v5095_v15 = vpop.eup %5094 }
0x185e   : > { %v3631_v20 = vadd.f32 1.0, %v5095_v15  ;;  %5096 = vrcp.f32 %v3630_v16 }
0x1860   : > { %5098 = vrcp.f32 %v3631_v20 }
0x1868   : > { %v5097_v21 = vpop.eup %5096 }
0x1869   : > { %v3636_v24 = vmul.f32 %v5097_v21, %v3618_v8  ;;  %v4997_v8 = vld [vmem:[%s5839_s18 + $0x18] sm:$0xff]  }
0x186a   : > { %v5099_v22 = vpop.eup %5098 }
0x186b   : > { %v3637_v25 = vmul.f32 %v5099_v22, %v3621_v10 }
0x18c1   : > { %v3641_v23 = vpop.permute.xlu0 %3640 }
0x18c2   : > { %v3646_v5 = vmul.f32 %v3641_v23, %v3636_v24 }
0x18c3   : > { %v3643_v52 = vpop.permute.xlu1 %3642 }
0x18c4   : > { %v3647_v3 = vmul.f32 %v3643_v52, %v3637_v25 }
0x18c6   : > { %v3657_v37 = vpack.c.bf16 %v3647_v3, %v3646_v5 }
0x18c8   : > { %4723 = vmatmul.mubr.msk.bf16.vlgmr.msra.gmra.mrb[24].mxu0 %vm2179_vm10, %v3657_v37 }
0x18c9   : > { %4754 = vmatprep.mubr.msk.bf16.mxu0 %vm5129_vm2, %v5128_v19 }
0x199b   : > { %v3719_v27 = vpop.f32.mrb[24].mxu0 }
0x199c   : > { %v3726_v18 = vadd.f32 %v3719_v27, %v5682_v32  ;;  %v4724_v30 = vpop.f32.mrb[25].mxu0 }
0x199d   : > { %v3722_v17 = vpop.f32.mrb[26].mxu0 }
0x199e   : > { %v3727_v33 = vadd.f32 %v3722_v17, %v5680_v31  ;;  %v4725_v1 = vpop.f32.mrb[27].mxu0  ;;  %v3736_v34 = vadd.f32 %v4365_v29, %v3726_v18 }
0x19a0   : > { %v3740_v4 = vsel %vm740_vm0, %v3736_v34, 0.0  ;;  %v3737_v35 = vadd.f32 %v4365_v29, %v3727_v33 }
0x19a1   : > { %3741 = vadd.xlane.f32.xlu0 %v3740_v4  ;;  %v4999_v4 = vld [vmem:[%s5841_s20 + $0x8] sm:$0xff]  }
0x19a2   : > { %v3743_v28 = vsel %vm744_vm1, %v3737_v35, 0.0 }
0x19a3   : > { %3744 = vadd.xlane.f32.xlu1 %v3743_v28  ;;  %v5001_v28 = vld [vmem:[%s5841_s20 + $0x18] sm:$0xff]  }
0x1a2e   : > { %v3742_v26 = vpop.xlane.xlu0 %3741 }
0x1a2f   : > { %v3746_v36 = vmul.f32 0.03125, %v3742_v26  ;;  %v4372_v26 = vld [vmem:[%s5840_s19] ss:$0 sm:$0xff] }
0x1a30   : > { %v3745_v38 = vpop.xlane.xlu1 %3744 }
0x1a31   : > { %v3748_v39 = vsub.f32 %v3736_v34, %v3746_v36  ;;  %v3747_v40 = vmul.f32 0.03125, %v3745_v38  ;;  %v4998_v34 = vld [vmem:[%s5841_s20] sm:$0xff]  }
0x1a32   : > { %4747 = vmatpush3.bf16.msra.mxu0 %v4998_v34 }
0x1a33   : > { %v3749_v41 = vsub.f32 %v3737_v35, %v3747_v40  ;;  %v3750_v32 = vmul.f32 %v3748_v39, %v3748_v39  ;;  %4748 = vmatprep.subr.bf16.mxu0 %v5128_v19  ;;  %v5000_v35 = vld [vmem:[%s5841_s20 + $0x10] sm:$0xff]  }
0x1a35   : > { %v3752_v42 = vsel %vm740_vm0, %v3750_v32, 0.0  ;;  %v3751_v43 = vmul.f32 %v3749_v41, %v3749_v41 }
0x1a36   : > { %3753 = vadd.xlane.f32.xlu0 %v3752_v42  ;;  %4749 = vmatpush3.bf16.msra.mxu0 %v4999_v4 }
0x1a37   : > { %v3755_v31 = vsel %vm744_vm1, %v3751_v43, 0.0  ;;  %4750 = vmatprep.subr.bf16.mxu0 %v5128_v19 }
0x1a3a   : > { %3756 = vadd.xlane.f32.xlu0 %v3755_v31  ;;  %4751 = vmatpush3.bf16.msra.mxu0 %v5000_v35 }
0x1a3b   : > { %4752 = vmatprep.subr.bf16.mxu0 %v5128_v19 }
0x1a3e   : > { %4753 = vmatpush3.bf16.msra.mxu0 %v5001_v28 }
0x1ac3   : > { %v3754_v47 = vpop.xlane.xlu0 %3753 }
0x1ac4   : > { %v3758_v48 = vmul.f32 0.03125, %v3754_v47 }
0x1ac6   : > { %v3760_v49 = vadd.f32 1e-05, %v3758_v48 }
0x1ac7   : > { %v3757_v50 = vpop.xlane.xlu0 %3756 }
0x1ac8   : > { %5100 = vrsqrt.f32 %v3760_v49  ;;  %v3759_v51 = vmul.f32 0.03125, %v3757_v50 }
0x1aca   : > { %v3761_v53 = vadd.f32 1e-05, %v3759_v51 }
0x1acc   : > { %5102 = vrsqrt.f32 %v3761_v53 }
0x1ad2   : > { %v5101_v54 = vpop.eup %5100 }
0x1ad3   : > { %v3764_v55 = vmul.f32 %v5101_v54, %v3748_v39 }
0x1ad5   : > { %v3772_v57 = vmul.f32 %v4366_v45, %v3764_v55 }
0x1ad6   : > { %v5103_v56 = vpop.eup %5102 }
0x1ad7   : > { %v3765_v58 = vmul.f32 %v5103_v56, %v3749_v41  ;;  %v3780_v61 = vadd.f32 %v4367_v59, %v3772_v57 }
0x1ad9   : > { %v3773_v60 = vmul.f32 %v4366_v45, %v3765_v58 }
0x1adb   : > { %v3781_v62 = vadd.f32 %v4367_v59, %v3773_v60 }
0x1add   : > { %v3786_v63 = vpack.c.bf16 %v3781_v62, %v3780_v61  ;;  %v4378_v61 = vld [vmem:[%s5842_s21] ss:$0 sm:$0xff] }
0x1adf   : > { %4731 = vmatmul.mubr.msk.bf16.vlgmr.msra.gmra.mrb[32].mxu1 %vm740_vm0, %v3786_v63 }
0x1ae0   : > { %4742 = vmatprep.mubr.msk.bf16.mxu1 %vm5129_vm2, %v5128_v19  ;;  %4735 = vmatpush3.bf16.msra.mxu1 %v4994_v0 }
0x1ae1   : > { %4736 = vmatprep.subr.bf16.mxu1 %v5128_v19 }
0x1ae4   : > { %4737 = vmatpush3.bf16.msra.mxu1 %v4995_v6 }
0x1ae5   : > { %4738 = vmatprep.subr.bf16.mxu1 %v5128_v19 }
0x1ae8   : > { %4739 = vmatpush3.bf16.msra.mxu1 %v4996_v7 }
0x1ae9   : > { %4740 = vmatprep.subr.bf16.mxu1 %v5128_v19 }
0x1aec   : > { %4741 = vmatpush3.bf16.msra.mxu1 %v4997_v8 }
0x1aed   : > { %4758 = vmatprep.subr.bf16.mxu1 %v5128_v19 }
0x1bb2   : > { %v3843_v2 = vpop.f32.mrb[32].mxu1 }
0x1bb3   : > { %v3844_v10 = vadd.f32 %v4368_v9, %v3843_v2  ;;  %v4732_v11 = vpop.f32.mrb[33].mxu1 }
0x1bb4   : > { %v3846_v12 = vpop.f32.mrb[34].mxu1 }
0x1bb5   : > { %v3852_v13 = vmul.f32 0.044715, %v3844_v10  ;;  %v3847_v14 = vadd.f32 %v4368_v9, %v3846_v12  ;;  %v4733_v15 = vpop.f32.mrb[35].mxu1  ;;  %v3850_v29 = vmul.f32 0.5, %v3844_v10  ;;  %v5002_v12 = vld [vmem:[%s5843_s22] sm:$0xff]  }
0x1bb7   : > { %v3854_v16 = vmul.f32 %v3852_v13, %v3844_v10  ;;  %v3853_v20 = vmul.f32 0.044715, %v3847_v14  ;;  %v3851_v18 = vmul.f32 0.5, %v3847_v14  ;;  %v5003_v13 = vld [vmem:[%s5843_s22 + $0x8] sm:$0xff]  }
0x1bb9   : > { %v3856_v21 = vmul.f32 %v3854_v16, %v3844_v10  ;;  %v3855_v22 = vmul.f32 %v3853_v20, %v3847_v14 }
0x1bbb   : > { %v3858_v23 = vadd.f32 %v3856_v21, %v3844_v10  ;;  %v3857_v24 = vmul.f32 %v3855_v22, %v3847_v14 }
0x1bbd   : > { %v3860_v25 = vmul.f32 0.7978846, %v3858_v23  ;;  %v3859_v52 = vadd.f32 %v3857_v24, %v3847_v14 }
0x1bbf   : > { %5104 = vtanh.f32 %v3860_v25  ;;  %v3861_v5 = vmul.f32 0.7978846, %v3859_v52 }
0x1bc1   : > { %5106 = vtanh.f32 %v3861_v5 }
0x1bc9   : > { %v5105_v3 = vpop.eup %5104 }
0x1bca   : > { %v3864_v37 = vadd.f32 1.0, %v5105_v3 }
0x1bcb   : > { %v5107_v27 = vpop.eup %5106 }
0x1bcc   : > { %v3865_v30 = vadd.f32 1.0, %v5107_v27  ;;  %v3866_v17 = vmul.f32 %v3864_v37, %v3850_v29 }
0x1bce   : > { %v3867_v33 = vmul.f32 %v3865_v30, %v3851_v18 }
0x1bd0   : > { %v3876_v1 = vpack.c.bf16 %v3867_v33, %v3866_v17 }
0x1bd2   : > { %4743 = vmatmul.mubr.msk.bf16.vlgmr.msra.gmra.mrb[36].mxu1 %vm2179_vm10, %v3876_v1 }
0x1bd3   : > { %4762 = vmatprep.mubr.msk.bf16.mxu1 %vm5129_vm2, %v5128_v19  ;;  %4759 = vmatpush3.bf16.msra.mxu1 %v5002_v12 }
0x1bd4   : > { %4760 = vmatprep.subr.bf16.mxu1 %v5128_v19 }
0x1bd7   : > { %4761 = vmatpush3.bf16.msra.mxu1 %v5003_v13 }
0x1ca5   : > { %v3945_v36 = vpop.f32.mrb[36].mxu1 }
0x1ca6   : > { %v3946_v38 = vadd.f32 %v4372_v26, %v3945_v36  ;;  %v4744_v39 = vpop.f32.mrb[37].mxu1 }
0x1ca7   : > { %v3948_v40 = vpop.f32.mrb[38].mxu1 }
0x1ca8   : > { %v3954_v41 = vmul.f32 0.044715, %v3946_v38  ;;  %v3949_v32 = vadd.f32 %v4372_v26, %v3948_v40  ;;  %v4745_v42 = vpop.f32.mrb[39].mxu1  ;;  %v3952_v45 = vmul.f32 0.5, %v3946_v38 }
0x1caa   : > { %v3956_v43 = vmul.f32 %v3954_v41, %v3946_v38  ;;  %v3955_v31 = vmul.f32 0.044715, %v3949_v32  ;;  %v3953_v56 = vmul.f32 0.5, %v3949_v32 }
0x1cac   : > { %v3958_v44 = vmul.f32 %v3956_v43, %v3946_v38  ;;  %v3957_v46 = vmul.f32 %v3955_v31, %v3949_v32 }
0x1cae   : > { %v3960_v47 = vadd.f32 %v3958_v44, %v3946_v38  ;;  %v3959_v48 = vmul.f32 %v3957_v46, %v3949_v32 }
0x1cb0   : > { %v3962_v49 = vmul.f32 0.7978846, %v3960_v47  ;;  %v3961_v50 = vadd.f32 %v3959_v48, %v3949_v32 }
0x1cb2   : > { %5108 = vtanh.f32 %v3962_v49  ;;  %v3963_v51 = vmul.f32 0.7978846, %v3961_v50 }
0x1cb4   : > { %5110 = vtanh.f32 %v3963_v51 }
0x1cbc   : > { %v5109_v53 = vpop.eup %5108 }
0x1cbd   : > { %v3966_v54 = vadd.f32 1.0, %v5109_v53 }
0x1cbe   : > { %v5111_v55 = vpop.eup %5110 }
0x1cbf   : > { %v3967_v57 = vadd.f32 1.0, %v5111_v55  ;;  %v3968_v58 = vmul.f32 %v3966_v54, %v3952_v45 }
0x1cc1   : > { %v3969_v59 = vmul.f32 %v3967_v57, %v3953_v56 }
0x1cc3   : > { %v3978_v60 = vpack.c.bf16 %v3969_v59, %v3968_v58 }
0x1cc5   : > { %4755 = vmatmul.mubr.msk.bf16.vlgmr.msra.gmra.mrb[28].mxu0 %vm2179_vm10, %v3978_v60 }
0x1d98   : > { %v4047_v62 = vpop.f32.mrb[28].mxu0 }
0x1d99   : > { %v4048_v63 = vadd.f32 %v4378_v61, %v4047_v62  ;;  %v4756_v0 = vpop.f32.mrb[29].mxu0 }
0x1d9a   : > { %v4050_v6 = vpop.f32.mrb[30].mxu0 }
0x1d9b   : > { %v4051_v7 = vadd.f32 %v4378_v61, %v4050_v6  ;;  %v4757_v8 = vpop.f32.mrb[31].mxu0  ;;  %v4054_v9 = vmul.f32 %v4048_v63, %v4048_v63 }
0x1d9d   : > { %v4056_v2 = vsel %vm740_vm0, %v4054_v9, 0.0  ;;  %v4055_v10 = vmul.f32 %v4051_v7, %v4051_v7 }
0x1d9e   : > { %4057 = vadd.xlane.f32.xlu0 %v4056_v2 }
0x1d9f   : > { %v4059_v11 = vsel %vm744_vm1, %v4055_v10, 0.0 }
0x1da0   : > { %4060 = vadd.xlane.f32.xlu1 %v4059_v11 }
0x1e2b   : > { %v4058_v14 = vpop.xlane.xlu0 %4057 }
0x1e2c   : > { %5112 = vrsqrt.f32 %v4058_v14  ;;  %vm4064_vm11 = vcmp.eq.f32.partialorder %v4058_v14, inf  ;;  %v4067_v22 = vand.u32 2147483648, %v4058_v14  ;;  %vm4066_vm12 = vcmp.eq.f32.partialorder %v4058_v14, 0.0 }
0x1e2d   : > { %v4061_v15 = vpop.xlane.xlu1 %4060 }
0x1e2e   : > { %5114 = vrsqrt.f32 %v4061_v15  ;;  %vm4071_vm13 = vcmp.eq.f32.partialorder %v4061_v15, inf  ;;  %v4074_v52 = vand.u32 2147483648, %v4061_v15  ;;  %vm4073_vm14 = vcmp.eq.f32.partialorder %v4061_v15, 0.0 }
0x1e36   : > { %v5113_v16 = vpop.eup %5112 }
0x1e37   : > { %v4063_v20 = vmul.f32 %v5113_v16, %v4058_v14 }
0x1e38   : > { %v5115_v21 = vpop.eup %5114 }
0x1e39   : > { %v4065_v23 = vsel %vm4064_vm11, %v4058_v14, %v4063_v20  ;;  %v4070_v24 = vmul.f32 %v5115_v21, %v4061_v15 }
0x1e3a   : > { %v4068_v25 = vsel %vm4066_vm12, %v4067_v22, %v4065_v23 }
0x1e3b   : > { %v4076_v5 = vmax.f32 %v4068_v25, 1e-12  ;;  %v4072_v3 = vsel %vm4071_vm13, %v4061_v15, %v4070_v24 }
0x1e3c   : > { %v4075_v19 = vsel %vm4073_vm14, %v4074_v52, %v4072_v3 }
0x1e3d   : > { %5116 = vrcp.f32 %v4076_v5  ;;  %v4077_v37 = vmax.f32 %v4075_v19, 1e-12 }
0x1e3f   : > { %5118 = vrcp.f32 %v4077_v37 }
0x1e47   : > { %v5117_v27 = vpop.eup %5116 }
0x1e48   : > { %v4079_v18 = vmul.f32 %v5117_v27, %v4048_v63 }
0x1e49   : > { %v5119_v29 = vpop.eup %5118 }
0x1e4a   : > { %v4081_v30 = vmul.f32 %v5119_v29, %v4051_v7 }
0x1e4c   : > { %v4086_v17 = vpack.c.bf16 %v4081_v30, %v4079_v18 }
0x1e4e   : > { %4763 = vmatmul.mubr.msk.bf16.vlgmr.msra.gmra.mrb[40].mxu1 %vm740_vm0, %v4086_v17 }
0x1f21   : > { %v4136_v33 = vpop.f32.mrb[40].mxu1 }
0x1f22   : > { %4143 = vst.msk [vmem:[%s730_s27] sm:$0xff] %vm2179_vm10, %v4136_v33  ;;  %v4764_v1 = vpop.f32.mrb[41].mxu1 }
0x1f23   : > { %v4139_v34 = vpop.f32.mrb[42].mxu1 }
0x1f24   : > { %4145 = vst.msk [vmem:[%s730_s27 + $0x8] sm:$0x1] %vm4144_vm15, %v4139_v34  ;;  %v4765_v4 = vpop.f32.mrb[43].mxu1 }
0x1f25 PF: > { %s33_s4 = sadd.s32 1, %s5126_s4  }
0x1f26   : > { %p30_p4 = scmp.ge.s32.totalorder %s33_s4, 4  }
0x1f28   :  { %32 = sbr.rel (!%p30_p4) target bundleno = 9 (0x9), region = 157 }

</bundles_post_ra>
